<compile_context>
chip_gen: v6e
topology: v6e:2x2x1
jax: 0.10.0
libtpu: 0.0.40
codegen_flags: <defaults>
</compile_context>

<pallas_src>
import functools
import math

import jax
import jax.numpy as jnp
from jax.experimental import pallas as pl
from jax.experimental.pallas import tpu as pltpu

# ---- model config (matches the PyTorch module defaults) ----
WINDOW = 8
NUM_SERIES = 2
STATIC = 4
LATENT = 32
D_MODEL = 64
NHEAD = 4            # irrelevant for seq_len == 1 (softmax over one key == 1)
NUM_LAYERS = 2
HIDDEN = 128
OUTPUT_DIM = 2
DIM_FF = 2048        # nn.TransformerEncoderLayer default dim_feedforward
LN_EPS = 1e-5
BATCH = 2

WS = WINDOW * NUM_SERIES          # 16

# ---- activation-slab lane offsets (eps aligned with logvar output lanes) ----
EPS_OFF = 36
SEQ_OFF = EPS_OFF + LATENT        # 68
CAL_OFF = SEQ_OFF + WS            # 84

# ---- output-slab lane offsets ----
OUT_OFF = 0
MU_OFF = OUT_OFF + OUTPUT_DIM * 2     # 4
LV_OFF = MU_OFF + LATENT              # 36

# ---- 64-lane weight slab row offsets (bf16) ----
W64_ENC = 0                        # (128, 64) enc_fc packed to act layout
# per layer l: folded attention (Wv @ Wo) at rows 128 + 64*l
W64_ROWS = 128 + NUM_LAYERS * 64   # 256

# ---- 128-lane weight slab row offsets (bf16) ----
W128_ENCOUT = 0                    # (64, 128)   enc_fc_out
W128_DEC1 = 64                     # (256, 128)  dec_fc[0]: rows 0:128 consume hz, 128:256 consume t
W128_DEC2 = 320                    # (128, 128)
W128_SKIP = 448                    # (128, 128)  dec_skip packed to act layout
W128_FIN1 = 576                    # (256, 128)  final_fc[0] over [h_dec | skip]
W128_HEADH = 832                   # (128, 128)  mu_w @ cols 4:36, logvar_w @ cols 36:68
W128_HEADC = 960                   # (128, 128)  final_fc[-1] @ cols 0:4
W128_ROWS = 1088

# ---- bias slab row indices (rows are (128,) lane-padded, f32) ----
R_ENC = 0                          # enc_fc bias + pe[0]  (lanes 0:64)
# per layer l, rows 1+6l .. 6+6l: b_attn, n1_gamma, n1_beta, b2, n2_gamma, n2_beta
R_ENCOUT = 1 + 6 * NUM_LAYERS      # 13
R_HZ = R_ENCOUT + 1                # mu_b @ 4:36, logvar_b @ 36:68
R_DEC1 = R_ENCOUT + 2
R_DEC2 = R_ENCOUT + 3
R_SKIP = R_ENCOUT + 4
R_FIN1 = R_ENCOUT + 5
R_OUT = R_ENCOUT + 6               # fin2_b @ 0:4
BIAS_ROWS = 24                     # 20 used, padded to 24


def _layer_norm(x, gamma, beta):
    mu = jnp.mean(x, axis=-1, keepdims=True)
    var = jnp.mean((x - mu) ** 2, axis=-1, keepdims=True)
    return (x - mu) * jax.lax.rsqrt(var + LN_EPS) * gamma + beta


def pft_kernel(act_ref, w64_ref, w128_ref, w1_ref, w2_ref, b1_ref, bias_ref, out_ref):
    dot = functools.partial(jnp.dot, preferred_element_type=jnp.float32)
    bf16 = jnp.bfloat16

    def brow(r, width=128):
        return bias_ref[r:r + 1, 0:width]           # (1, width) f32

    act = act_ref[...]                               # (B_pad, 128) f32
    act_bf = act.astype(bf16)

    # ---- encoder fc + positional encoding row 0 (folded into the bias row) ----
    x = dot(act_bf, w64_ref[W64_ENC:W64_ENC + 128, :]) + brow(R_ENC, D_MODEL)   # (B,64)

    # ---- transformer encoder (post-norm).  seq_len==1 => attention == out_proj(V),
    #      folded host-side into one exact 64x64 matmul per layer. ----
    for l in range(NUM_LAYERS):
        rw = 128 + 64 * l
        rb = 1 + 6 * l
        attn = dot(x.astype(bf16), w64_ref[rw:rw + 64, :]) + brow(rb, D_MODEL)
        x = _layer_norm(x + attn, brow(rb + 1, D_MODEL), brow(rb + 2, D_MODEL))
        # FFN: bf16 weights on the MXU, f32 accumulation
        h = jnp.maximum(dot(x.astype(bf16), w1_ref[l]) + b1_ref[l:l + 1, :], 0.0)
        ff = dot(h.astype(bf16), w2_ref[l]) + brow(rb + 3, D_MODEL)
        x = _layer_norm(x + ff, brow(rb + 4, D_MODEL), brow(rb + 5, D_MODEL))

    # ---- enc_fc_out + fused mu/logvar head (mu @ lanes 4:36, logvar @ 36:68) ----
    h_enc = jnp.maximum(
        dot(x.astype(bf16), w128_ref[W128_ENCOUT:W128_ENCOUT + 64, :]) + brow(R_ENCOUT), 0.0)
    hz = dot(h_enc.astype(bf16), w128_ref[W128_HEADH:W128_HEADH + 128, :]) + brow(R_HZ)

    # ---- reparameterize via linearity of dec_fc[0]:
    #   act has eps @ 36:68 (aligned with logvar), x_seq @ 68:84, x_cal @ 84:88,
    #   zeros elsewhere, so t = act*exp(0.5*hz) yields eps*std @ 36:68 while
    #   x_seq/x_cal pass through (exp(0)==1) and mu lanes multiply zero.
    #   dec1 weight rows are duplicated so dec1(z) = dec1(mu via hz) + dec1(eps*std via t).
    t = act * jnp.exp(0.5 * hz)

    zin = jnp.concatenate([hz, t], axis=-1).astype(bf16)            # (B, 256) single K=256 dot
    h_dec = jnp.maximum(dot(zin, w128_ref[W128_DEC1:W128_DEC1 + 256, :]) + brow(R_DEC1), 0.0)
    h_dec = jnp.maximum(
        dot(h_dec.astype(bf16), w128_ref[W128_DEC2:W128_DEC2 + 128, :]) + brow(R_DEC2), 0.0)
    skip = dot(act_bf, w128_ref[W128_SKIP:W128_SKIP + 128, :]) + brow(R_SKIP)

    fin_in = jnp.concatenate([h_dec, skip], axis=-1).astype(bf16)   # (B, 256) single K=256 dot
    comb = jnp.maximum(dot(fin_in, w128_ref[W128_FIN1:W128_FIN1 + 256, :]) + brow(R_FIN1), 0.0)

    # ---- lane-dense packed output slab: out @ 0:4, mu @ 4:36, logvar @ 36:68 ----
    out_ref[...] = (dot(comb.astype(bf16), w128_ref[W128_HEADC:W128_HEADC + 128, :])
                    + hz + brow(R_OUT))


def _row(vec, off=0):
    r = jnp.zeros((128,), jnp.float32)
    return r.at[off:off + vec.shape[0]].set(vec)


def init_params(key):
    f32 = jnp.float32
    ki = iter(jax.random.split(key, 40))

    def linear(fan_in, fan_out):
        k1, k2 = jax.random.split(next(ki))
        bound = 1.0 / math.sqrt(fan_in)
        w = jax.random.uniform(k1, (fan_in, fan_out), f32, -bound, bound)
        b = jax.random.uniform(k2, (fan_out,), f32, -bound, bound)
        return w, b

    # ---- natural parameters ----
    w_enc, b_enc = linear(WS + STATIC, D_MODEL)
    # pe[0, :] with interleaved sin/cos layout = [sin(0), cos(0), ...] = [0,1,0,1,...]
    pe0 = jnp.tile(jnp.array([0.0, 1.0], f32), D_MODEL // 2)

    enc_packed = (jnp.zeros((128, D_MODEL), f32)
                  .at[SEQ_OFF:SEQ_OFF + WS].set(w_enc[:WS])
                  .at[CAL_OFF:CAL_OFF + STATIC].set(w_enc[WS:]))
    w64_parts = [enc_packed]

    ones64 = _row(jnp.ones((D_MODEL,), f32))
    zeros128 = jnp.zeros((128,), f32)
    bias_rows = [_row(b_enc + pe0)]
    w1_list, w2_list, b1_list = [], [], []
    for _ in range(NUM_LAYERS):
        wv, bv = linear(D_MODEL, D_MODEL)       # only V / out_proj matter for seq_len==1
        wo, bo = linear(D_MODEL, D_MODEL)
        w1, b1 = linear(D_MODEL, DIM_FF)
        w2, b2 = linear(DIM_FF, D_MODEL)
        # softmax over one key == 1  =>  attn(x) == out_proj(v_proj(x)); fold exactly.
        w_attn = wv @ wo
        b_attn = bv @ wo + bo
        w64_parts.append(w_attn)
        w1_list.append(w1)
        w2_list.append(w2)
        b1_list.append(b1)
        bias_rows += [_row(b_attn), ones64, zeros128, _row(b2), ones64, zeros128]

    encout_w, encout_b = linear(D_MODEL, HIDDEN)
    mu_w, mu_b = linear(HIDDEN, LATENT)
    lv_w, lv_b = linear(HIDDEN, LATENT)
    dec1_w, dec1_b = linear(LATENT + STATIC, HIDDEN)
    dec2_w, dec2_b = linear(HIDDEN, HIDDEN)
    skip_w, skip_b = linear(WS, HIDDEN)
    fin1_w, fin1_b = linear(2 * HIDDEN, HIDDEN)
    fin2_w, fin2_b = linear(HIDDEN, OUTPUT_DIM * 2)

    # ---- 128-lane weight slab ----
    # dec_fc[0] applied via linearity: rows 0:128 consume hz (mu @ lanes 4:36),
    # rows 128:256 consume t (eps*std @ lanes 36:68, x_cal @ 84:88).
    dec1_packed = (jnp.zeros((256, HIDDEN), f32)
                   .at[MU_OFF:MU_OFF + LATENT].set(dec1_w[:LATENT])
                   .at[128 + LV_OFF:128 + LV_OFF + LATENT].set(dec1_w[:LATENT])
                   .at[128 + CAL_OFF:128 + CAL_OFF + STATIC].set(dec1_w[LATENT:]))
    skip_packed = jnp.zeros((128, HIDDEN), f32).at[SEQ_OFF:SEQ_OFF + WS].set(skip_w)
    head_h = (jnp.zeros((HIDDEN, 128), f32)
              .at[:, MU_OFF:MU_OFF + LATENT].set(mu_w)
              .at[:, LV_OFF:LV_OFF + LATENT].set(lv_w))
    head_c = jnp.zeros((HIDDEN, 128), f32).at[:, OUT_OFF:OUT_OFF + OUTPUT_DIM * 2].set(fin2_w)

    w128 = jnp.concatenate(
        [encout_w, dec1_packed, dec2_w, skip_packed, fin1_w, head_h, head_c], axis=0)
    assert w128.shape == (W128_ROWS, 128)

    # ---- bias / LN slab (kept f32; 12 KiB) ----
    hz_b = (jnp.zeros((128,), f32)
            .at[MU_OFF:MU_OFF + LATENT].set(mu_b)
            .at[LV_OFF:LV_OFF + LATENT].set(lv_b))
    bias_rows += [_row(encout_b), hz_b, _row(dec1_b), _row(dec2_b),
                  _row(skip_b), _row(fin1_b), _row(fin2_b, OUT_OFF)]
    while len(bias_rows) < BIAS_ROWS:
        bias_rows.append(zeros128)

    w64 = jnp.concatenate(w64_parts, axis=0)
    assert w64.shape == (W64_ROWS, D_MODEL)

    return {
        'w64': w64.astype(jnp.bfloat16),                    # (256, 64)    bf16
        'w128': w128.astype(jnp.bfloat16),                  # (1088, 128)  bf16
        'w1': jnp.stack(w1_list).astype(jnp.bfloat16),      # (2, 64, 2048)
        'w2': jnp.stack(w2_list).astype(jnp.bfloat16),      # (2, 2048, 64)
        'b1': jnp.stack(b1_list),                           # (2, 2048)    f32
        'bias': jnp.stack(bias_rows),                       # (24, 128)    f32
    }


@jax.jit
def pft_forward(x_seq, x_cal, eps, p):
    B = x_seq.shape[0]
    Bp = max(8, ((B + 7) // 8) * 8)   # pad batch to the f32 sublane multiple

    # Lane-dense activation slab, built with one concatenate + one pad:
    # eps @ 36:68, x_seq_flat @ 68:84, x_cal @ 84:88.
    core = jnp.concatenate(
        [eps.astype(jnp.float32),
         x_seq.reshape(B, -1).astype(jnp.float32),
         x_cal.astype(jnp.float32)], axis=1)                           # (B, 52)
    act = jnp.pad(core, ((0, Bp - B), (EPS_OFF, 128 - (EPS_OFF + core.shape[1]))))

    vmem = pl.BlockSpec(memory_space=pltpu.MemorySpace.VMEM)
    slab = pl.pallas_call(
        pft_kernel,
        out_shape=jax.ShapeDtypeStruct((Bp, 128), jnp.float32),
        in_specs=[vmem] * 7,
        out_specs=vmem,
        cost_estimate=pl.CostEstimate(flops=2 * 700_000 * Bp,
                                      transcendentals=64 * Bp,
                                      bytes_accessed=1_400_000),
    )(act, p['w64'], p['w128'], p['w1'], p['w2'], p['b1'], p['bias'])

    out = slab[:B, OUT_OFF:OUT_OFF + OUTPUT_DIM * 2]
    mu_z = slab[:B, MU_OFF:MU_OFF + LATENT]
    logvar_z = slab[:B, LV_OFF:LV_OFF + LATENT]
    return out, mu_z, logvar_z


if __name__ == "__main__":
    key = jax.random.PRNGKey(0)
    k_param, k_seq, k_cal, k_eps = jax.random.split(key, 4)

    params = init_params(k_param)
    x_seq = jax.random.normal(k_seq, (BATCH, WINDOW, NUM_SERIES), jnp.float32)
    x_cal = jax.random.normal(k_cal, (BATCH, STATIC), jnp.float32)
    # TODO(synk): torch.randn_like eps is generated host-side (deterministic) and passed
    # into the kernel rather than using the in-kernel PRNG.
    eps = jax.random.normal(k_eps, (BATCH, LATENT), jnp.float32)

    out, mu_z, logvar_z = pft_forward(x_seq, x_cal, eps, params)
    jax.block_until_ready((out, mu_z, logvar_z))

    assert out.shape == (BATCH, OUTPUT_DIM * 2)
    assert mu_z.shape == (BATCH, LATENT)
    assert logvar_z.shape == (BATCH, LATENT)
    assert bool(jnp.all(jnp.isfinite(out)))
    assert bool(jnp.all(jnp.isfinite(mu_z)))
    assert bool(jnp.all(jnp.isfinite(logvar_z)))
    print("KERNEL_OK")
</pallas_src>

<mosaic_0001>
module attributes {stable_mosaic.version = 11 : i64} {
  func.func @pft_kernel(%arg0: memref<8x128xf32, #tpu.memory_space<vmem>>, %arg1: memref<256x64xbf16, #tpu.memory_space<vmem>>, %arg2: memref<1088x128xbf16, #tpu.memory_space<vmem>>, %arg3: memref<2x64x2048xbf16, #tpu.memory_space<vmem>>, %arg4: memref<2x2048x64xbf16, #tpu.memory_space<vmem>>, %arg5: memref<2x2048xf32, #tpu.memory_space<vmem>>, %arg6: memref<24x128xf32, #tpu.memory_space<vmem>>, %arg7: memref<8x128xf32, #tpu.memory_space<vmem>>) attributes {dimension_semantics = [], scalar_prefetch = 0 : i64, scratch_operands = 0 : i64, tpu.core_type = #tpu.core_type<tc>} {
    %c0 = arith.constant 0 : index
    %c0_0 = arith.constant 0 : index
    %0 = vector.load %arg0[%c0, %c0_0] : memref<8x128xf32, #tpu.memory_space<vmem>>, vector<8x128xf32>
    %1 = arith.truncf %0 : vector<8x128xf32> to vector<8x128xbf16>
    %c0_1 = arith.constant 0 : index
    %c0_2 = arith.constant 0 : index
    %2 = vector.load %arg1[%c0_1, %c0_2] : memref<256x64xbf16, #tpu.memory_space<vmem>>, vector<128x64xbf16>
    %cst = arith.constant dense<0.000000e+00> : vector<8x64xf32>
    %3 = tpu.matmul %1, %2, %cst {dimension_numbers = #tpu.dot_dimension_numbers<[1], [0], [0], [1], [0, 0, 1, 1], [], []>} : vector<8x128xbf16>, vector<128x64xbf16>, vector<8x64xf32> -> vector<8x64xf32>
    %c0_3 = arith.constant 0 : index
    %c0_4 = arith.constant 0 : index
    %4 = vector.load %arg6[%c0_3, %c0_4] : memref<24x128xf32, #tpu.memory_space<vmem>>, vector<1x64xf32>
    %5 = vector.broadcast %4 : vector<1x64xf32> to vector<8x64xf32>
    %6 = arith.addf %3, %5 : vector<8x64xf32>
    %7 = arith.truncf %6 : vector<8x64xf32> to vector<8x64xbf16>
    %c128 = arith.constant 128 : index
    %c0_5 = arith.constant 0 : index
    %8 = vector.load %arg1[%c128, %c0_5] : memref<256x64xbf16, #tpu.memory_space<vmem>>, vector<64x64xbf16>
    %cst_6 = arith.constant dense<0.000000e+00> : vector<8x64xf32>
    %9 = tpu.matmul %7, %8, %cst_6 {dimension_numbers = #tpu.dot_dimension_numbers<[1], [0], [0], [1], [0, 0, 1, 1], [], []>} : vector<8x64xbf16>, vector<64x64xbf16>, vector<8x64xf32> -> vector<8x64xf32>
    %c1 = arith.constant 1 : index
    %c0_7 = arith.constant 0 : index
    %10 = vector.load %arg6[%c1, %c0_7] : memref<24x128xf32, #tpu.memory_space<vmem>>, vector<1x64xf32>
    %11 = vector.broadcast %10 : vector<1x64xf32> to vector<8x64xf32>
    %12 = arith.addf %9, %11 : vector<8x64xf32>
    %13 = arith.addf %6, %12 : vector<8x64xf32>
    %c2 = arith.constant 2 : index
    %c0_8 = arith.constant 0 : index
    %14 = vector.load %arg6[%c2, %c0_8] : memref<24x128xf32, #tpu.memory_space<vmem>>, vector<1x64xf32>
    %c3 = arith.constant 3 : index
    %c0_9 = arith.constant 0 : index
    %15 = vector.load %arg6[%c3, %c0_9] : memref<24x128xf32, #tpu.memory_space<vmem>>, vector<1x64xf32>
    %cst_10 = arith.constant dense<0.000000e+00> : vector<8xf32>
    %16 = vector.multi_reduction <add>, %13, %cst_10 [1] : vector<8x64xf32> to vector<8xf32>
    %17 = vector.shape_cast %16 : vector<8xf32> to vector<8x1xf32>
    %cst_11 = arith.constant 6.400000e+01 : f32
    %18 = vector.broadcast %cst_11 : f32 to vector<8x1xf32>
    %19 = arith.divf %17, %18 : vector<8x1xf32>
    %20 = vector.broadcast %19 : vector<8x1xf32> to vector<8x64xf32>
    %21 = arith.subf %13, %20 : vector<8x64xf32>
    %22 = arith.mulf %21, %21 : vector<8x64xf32>
    %cst_12 = arith.constant dense<0.000000e+00> : vector<8xf32>
    %23 = vector.multi_reduction <add>, %22, %cst_12 [1] : vector<8x64xf32> to vector<8xf32>
    %24 = vector.shape_cast %23 : vector<8xf32> to vector<8x1xf32>
    %cst_13 = arith.constant 6.400000e+01 : f32
    %25 = vector.broadcast %cst_13 : f32 to vector<8x1xf32>
    %26 = arith.divf %24, %25 : vector<8x1xf32>
    %27 = vector.broadcast %19 : vector<8x1xf32> to vector<8x64xf32>
    %28 = arith.subf %13, %27 : vector<8x64xf32>
    %cst_14 = arith.constant 9.99999974E-6 : f32
    %29 = vector.broadcast %cst_14 : f32 to vector<8x1xf32>
    %30 = arith.addf %26, %29 : vector<8x1xf32>
    %31 = math.rsqrt %30 : vector<8x1xf32>
    %32 = vector.broadcast %31 : vector<8x1xf32> to vector<8x64xf32>
    %33 = arith.mulf %28, %32 : vector<8x64xf32>
    %34 = vector.broadcast %14 : vector<1x64xf32> to vector<8x64xf32>
    %35 = arith.mulf %33, %34 : vector<8x64xf32>
    %36 = vector.broadcast %15 : vector<1x64xf32> to vector<8x64xf32>
    %37 = arith.addf %35, %36 : vector<8x64xf32>
    %38 = arith.truncf %37 : vector<8x64xf32> to vector<8x64xbf16>
    %c0_15 = arith.constant 0 : index
    %c0_16 = arith.constant 0 : index
    %c0_17 = arith.constant 0 : index
    %39 = vector.load %arg3[%c0_15, %c0_16, %c0_17] : memref<2x64x2048xbf16, #tpu.memory_space<vmem>>, vector<1x64x2048xbf16>
    %40 = vector.shape_cast %39 : vector<1x64x2048xbf16> to vector<64x2048xbf16>
    %cst_18 = arith.constant dense<0.000000e+00> : vector<8x2048xf32>
    %41 = tpu.matmul %38, %40, %cst_18 {dimension_numbers = #tpu.dot_dimension_numbers<[1], [0], [0], [1], [0, 0, 1, 1], [], []>} : vector<8x64xbf16>, vector<64x2048xbf16>, vector<8x2048xf32> -> vector<8x2048xf32>
    %c0_19 = arith.constant 0 : index
    %c0_20 = arith.constant 0 : index
    %42 = vector.load %arg5[%c0_19, %c0_20] : memref<2x2048xf32, #tpu.memory_space<vmem>>, vector<1x2048xf32>
    %43 = vector.broadcast %42 : vector<1x2048xf32> to vector<8x2048xf32>
    %44 = arith.addf %41, %43 : vector<8x2048xf32>
    %cst_21 = arith.constant 0.000000e+00 : f32
    %45 = vector.broadcast %cst_21 : f32 to vector<8x2048xf32>
    %46 = arith.maximumf %44, %45 : vector<8x2048xf32>
    %47 = arith.truncf %46 : vector<8x2048xf32> to vector<8x2048xbf16>
    %c0_22 = arith.constant 0 : index
    %c0_23 = arith.constant 0 : index
    %c0_24 = arith.constant 0 : index
    %48 = vector.load %arg4[%c0_22, %c0_23, %c0_24] : memref<2x2048x64xbf16, #tpu.memory_space<vmem>>, vector<1x2048x64xbf16>
    %49 = vector.shape_cast %48 : vector<1x2048x64xbf16> to vector<2048x64xbf16>
    %cst_25 = arith.constant dense<0.000000e+00> : vector<8x64xf32>
    %50 = tpu.matmul %47, %49, %cst_25 {dimension_numbers = #tpu.dot_dimension_numbers<[1], [0], [0], [1], [0, 0, 1, 1], [], []>} : vector<8x2048xbf16>, vector<2048x64xbf16>, vector<8x64xf32> -> vector<8x64xf32>
    %c4 = arith.constant 4 : index
    %c0_26 = arith.constant 0 : index
    %51 = vector.load %arg6[%c4, %c0_26] : memref<24x128xf32, #tpu.memory_space<vmem>>, vector<1x64xf32>
    %52 = vector.broadcast %51 : vector<1x64xf32> to vector<8x64xf32>
    %53 = arith.addf %50, %52 : vector<8x64xf32>
    %54 = arith.addf %37, %53 : vector<8x64xf32>
    %c5 = arith.constant 5 : index
    %c0_27 = arith.constant 0 : index
    %55 = vector.load %arg6[%c5, %c0_27] : memref<24x128xf32, #tpu.memory_space<vmem>>, vector<1x64xf32>
    %c6 = arith.constant 6 : index
    %c0_28 = arith.constant 0 : index
    %56 = vector.load %arg6[%c6, %c0_28] : memref<24x128xf32, #tpu.memory_space<vmem>>, vector<1x64xf32>
    %cst_29 = arith.constant dense<0.000000e+00> : vector<8xf32>
    %57 = vector.multi_reduction <add>, %54, %cst_29 [1] : vector<8x64xf32> to vector<8xf32>
    %58 = vector.shape_cast %57 : vector<8xf32> to vector<8x1xf32>
    %cst_30 = arith.constant 6.400000e+01 : f32
    %59 = vector.broadcast %cst_30 : f32 to vector<8x1xf32>
    %60 = arith.divf %58, %59 : vector<8x1xf32>
    %61 = vector.broadcast %60 : vector<8x1xf32> to vector<8x64xf32>
    %62 = arith.subf %54, %61 : vector<8x64xf32>
    %63 = arith.mulf %62, %62 : vector<8x64xf32>
    %cst_31 = arith.constant dense<0.000000e+00> : vector<8xf32>
    %64 = vector.multi_reduction <add>, %63, %cst_31 [1] : vector<8x64xf32> to vector<8xf32>
    %65 = vector.shape_cast %64 : vector<8xf32> to vector<8x1xf32>
    %cst_32 = arith.constant 6.400000e+01 : f32
    %66 = vector.broadcast %cst_32 : f32 to vector<8x1xf32>
    %67 = arith.divf %65, %66 : vector<8x1xf32>
    %68 = vector.broadcast %60 : vector<8x1xf32> to vector<8x64xf32>
    %69 = arith.subf %54, %68 : vector<8x64xf32>
    %cst_33 = arith.constant 9.99999974E-6 : f32
    %70 = vector.broadcast %cst_33 : f32 to vector<8x1xf32>
    %71 = arith.addf %67, %70 : vector<8x1xf32>
    %72 = math.rsqrt %71 : vector<8x1xf32>
    %73 = vector.broadcast %72 : vector<8x1xf32> to vector<8x64xf32>
    %74 = arith.mulf %69, %73 : vector<8x64xf32>
    %75 = vector.broadcast %55 : vector<1x64xf32> to vector<8x64xf32>
    %76 = arith.mulf %74, %75 : vector<8x64xf32>
    %77 = vector.broadcast %56 : vector<1x64xf32> to vector<8x64xf32>
    %78 = arith.addf %76, %77 : vector<8x64xf32>
    %79 = arith.truncf %78 : vector<8x64xf32> to vector<8x64xbf16>
    %c192 = arith.constant 192 : index
    %c0_34 = arith.constant 0 : index
    %80 = vector.load %arg1[%c192, %c0_34] : memref<256x64xbf16, #tpu.memory_space<vmem>>, vector<64x64xbf16>
    %cst_35 = arith.constant dense<0.000000e+00> : vector<8x64xf32>
    %81 = tpu.matmul %79, %80, %cst_35 {dimension_numbers = #tpu.dot_dimension_numbers<[1], [0], [0], [1], [0, 0, 1, 1], [], []>} : vector<8x64xbf16>, vector<64x64xbf16>, vector<8x64xf32> -> vector<8x64xf32>
    %c7 = arith.constant 7 : index
    %c0_36 = arith.constant 0 : index
    %82 = vector.load %arg6[%c7, %c0_36] : memref<24x128xf32, #tpu.memory_space<vmem>>, vector<1x64xf32>
    %83 = vector.broadcast %82 : vector<1x64xf32> to vector<8x64xf32>
    %84 = arith.addf %81, %83 : vector<8x64xf32>
    %85 = arith.addf %78, %84 : vector<8x64xf32>
    %c8 = arith.constant 8 : index
    %c0_37 = arith.constant 0 : index
    %86 = vector.load %arg6[%c8, %c0_37] : memref<24x128xf32, #tpu.memory_space<vmem>>, vector<1x64xf32>
    %c9 = arith.constant 9 : index
    %c0_38 = arith.constant 0 : index
    %87 = vector.load %arg6[%c9, %c0_38] : memref<24x128xf32, #tpu.memory_space<vmem>>, vector<1x64xf32>
    %cst_39 = arith.constant dense<0.000000e+00> : vector<8xf32>
    %88 = vector.multi_reduction <add>, %85, %cst_39 [1] : vector<8x64xf32> to vector<8xf32>
    %89 = vector.shape_cast %88 : vector<8xf32> to vector<8x1xf32>
    %cst_40 = arith.constant 6.400000e+01 : f32
    %90 = vector.broadcast %cst_40 : f32 to vector<8x1xf32>
    %91 = arith.divf %89, %90 : vector<8x1xf32>
    %92 = vector.broadcast %91 : vector<8x1xf32> to vector<8x64xf32>
    %93 = arith.subf %85, %92 : vector<8x64xf32>
    %94 = arith.mulf %93, %93 : vector<8x64xf32>
    %cst_41 = arith.constant dense<0.000000e+00> : vector<8xf32>
    %95 = vector.multi_reduction <add>, %94, %cst_41 [1] : vector<8x64xf32> to vector<8xf32>
    %96 = vector.shape_cast %95 : vector<8xf32> to vector<8x1xf32>
    %cst_42 = arith.constant 6.400000e+01 : f32
    %97 = vector.broadcast %cst_42 : f32 to vector<8x1xf32>
    %98 = arith.divf %96, %97 : vector<8x1xf32>
    %99 = vector.broadcast %91 : vector<8x1xf32> to vector<8x64xf32>
    %100 = arith.subf %85, %99 : vector<8x64xf32>
    %cst_43 = arith.constant 9.99999974E-6 : f32
    %101 = vector.broadcast %cst_43 : f32 to vector<8x1xf32>
    %102 = arith.addf %98, %101 : vector<8x1xf32>
    %103 = math.rsqrt %102 : vector<8x1xf32>
    %104 = vector.broadcast %103 : vector<8x1xf32> to vector<8x64xf32>
    %105 = arith.mulf %100, %104 : vector<8x64xf32>
    %106 = vector.broadcast %86 : vector<1x64xf32> to vector<8x64xf32>
    %107 = arith.mulf %105, %106 : vector<8x64xf32>
    %108 = vector.broadcast %87 : vector<1x64xf32> to vector<8x64xf32>
    %109 = arith.addf %107, %108 : vector<8x64xf32>
    %110 = arith.truncf %109 : vector<8x64xf32> to vector<8x64xbf16>
    %c1_44 = arith.constant 1 : index
    %c0_45 = arith.constant 0 : index
    %c0_46 = arith.constant 0 : index
    %111 = vector.load %arg3[%c1_44, %c0_45, %c0_46] : memref<2x64x2048xbf16, #tpu.memory_space<vmem>>, vector<1x64x2048xbf16>
    %112 = vector.shape_cast %111 : vector<1x64x2048xbf16> to vector<64x2048xbf16>
    %cst_47 = arith.constant dense<0.000000e+00> : vector<8x2048xf32>
    %113 = tpu.matmul %110, %112, %cst_47 {dimension_numbers = #tpu.dot_dimension_numbers<[1], [0], [0], [1], [0, 0, 1, 1], [], []>} : vector<8x64xbf16>, vector<64x2048xbf16>, vector<8x2048xf32> -> vector<8x2048xf32>
    %c1_48 = arith.constant 1 : index
    %c0_49 = arith.constant 0 : index
    %114 = vector.load %arg5[%c1_48, %c0_49] : memref<2x2048xf32, #tpu.memory_space<vmem>>, vector<1x2048xf32>
    %115 = vector.broadcast %114 : vector<1x2048xf32> to vector<8x2048xf32>
    %116 = arith.addf %113, %115 : vector<8x2048xf32>
    %cst_50 = arith.constant 0.000000e+00 : f32
    %117 = vector.broadcast %cst_50 : f32 to vector<8x2048xf32>
    %118 = arith.maximumf %116, %117 : vector<8x2048xf32>
    %119 = arith.truncf %118 : vector<8x2048xf32> to vector<8x2048xbf16>
    %c1_51 = arith.constant 1 : index
    %c0_52 = arith.constant 0 : index
    %c0_53 = arith.constant 0 : index
    %120 = vector.load %arg4[%c1_51, %c0_52, %c0_53] : memref<2x2048x64xbf16, #tpu.memory_space<vmem>>, vector<1x2048x64xbf16>
    %121 = vector.shape_cast %120 : vector<1x2048x64xbf16> to vector<2048x64xbf16>
    %cst_54 = arith.constant dense<0.000000e+00> : vector<8x64xf32>
    %122 = tpu.matmul %119, %121, %cst_54 {dimension_numbers = #tpu.dot_dimension_numbers<[1], [0], [0], [1], [0, 0, 1, 1], [], []>} : vector<8x2048xbf16>, vector<2048x64xbf16>, vector<8x64xf32> -> vector<8x64xf32>
    %c10 = arith.constant 10 : index
    %c0_55 = arith.constant 0 : index
    %123 = vector.load %arg6[%c10, %c0_55] : memref<24x128xf32, #tpu.memory_space<vmem>>, vector<1x64xf32>
    %124 = vector.broadcast %123 : vector<1x64xf32> to vector<8x64xf32>
    %125 = arith.addf %122, %124 : vector<8x64xf32>
    %126 = arith.addf %109, %125 : vector<8x64xf32>
    %c11 = arith.constant 11 : index
    %c0_56 = arith.constant 0 : index
    %127 = vector.load %arg6[%c11, %c0_56] : memref<24x128xf32, #tpu.memory_space<vmem>>, vector<1x64xf32>
    %c12 = arith.constant 12 : index
    %c0_57 = arith.constant 0 : index
    %128 = vector.load %arg6[%c12, %c0_57] : memref<24x128xf32, #tpu.memory_space<vmem>>, vector<1x64xf32>
    %cst_58 = arith.constant dense<0.000000e+00> : vector<8xf32>
    %129 = vector.multi_reduction <add>, %126, %cst_58 [1] : vector<8x64xf32> to vector<8xf32>
    %130 = vector.shape_cast %129 : vector<8xf32> to vector<8x1xf32>
    %cst_59 = arith.constant 6.400000e+01 : f32
    %131 = vector.broadcast %cst_59 : f32 to vector<8x1xf32>
    %132 = arith.divf %130, %131 : vector<8x1xf32>
    %133 = vector.broadcast %132 : vector<8x1xf32> to vector<8x64xf32>
    %134 = arith.subf %126, %133 : vector<8x64xf32>
    %135 = arith.mulf %134, %134 : vector<8x64xf32>
    %cst_60 = arith.constant dense<0.000000e+00> : vector<8xf32>
    %136 = vector.multi_reduction <add>, %135, %cst_60 [1] : vector<8x64xf32> to vector<8xf32>
    %137 = vector.shape_cast %136 : vector<8xf32> to vector<8x1xf32>
    %cst_61 = arith.constant 6.400000e+01 : f32
    %138 = vector.broadcast %cst_61 : f32 to vector<8x1xf32>
    %139 = arith.divf %137, %138 : vector<8x1xf32>
    %140 = vector.broadcast %132 : vector<8x1xf32> to vector<8x64xf32>
    %141 = arith.subf %126, %140 : vector<8x64xf32>
    %cst_62 = arith.constant 9.99999974E-6 : f32
    %142 = vector.broadcast %cst_62 : f32 to vector<8x1xf32>
    %143 = arith.addf %139, %142 : vector<8x1xf32>
    %144 = math.rsqrt %143 : vector<8x1xf32>
    %145 = vector.broadcast %144 : vector<8x1xf32> to vector<8x64xf32>
    %146 = arith.mulf %141, %145 : vector<8x64xf32>
    %147 = vector.broadcast %127 : vector<1x64xf32> to vector<8x64xf32>
    %148 = arith.mulf %146, %147 : vector<8x64xf32>
    %149 = vector.broadcast %128 : vector<1x64xf32> to vector<8x64xf32>
    %150 = arith.addf %148, %149 : vector<8x64xf32>
    %151 = arith.truncf %150 : vector<8x64xf32> to vector<8x64xbf16>
    %c0_63 = arith.constant 0 : index
    %c0_64 = arith.constant 0 : index
    %152 = vector.load %arg2[%c0_63, %c0_64] : memref<1088x128xbf16, #tpu.memory_space<vmem>>, vector<64x128xbf16>
    %cst_65 = arith.constant dense<0.000000e+00> : vector<8x128xf32>
    %153 = tpu.matmul %151, %152, %cst_65 {dimension_numbers = #tpu.dot_dimension_numbers<[1], [0], [0], [1], [0, 0, 1, 1], [], []>} : vector<8x64xbf16>, vector<64x128xbf16>, vector<8x128xf32> -> vector<8x128xf32>
    %c13 = arith.constant 13 : index
    %c0_66 = arith.constant 0 : index
    %154 = vector.load %arg6[%c13, %c0_66] : memref<24x128xf32, #tpu.memory_space<vmem>>, vector<1x128xf32>
    %155 = vector.broadcast %154 : vector<1x128xf32> to vector<8x128xf32>
    %156 = arith.addf %153, %155 : vector<8x128xf32>
    %cst_67 = arith.constant 0.000000e+00 : f32
    %157 = vector.broadcast %cst_67 : f32 to vector<8x128xf32>
    %158 = arith.maximumf %156, %157 : vector<8x128xf32>
    %159 = arith.truncf %158 : vector<8x128xf32> to vector<8x128xbf16>
    %c832 = arith.constant 832 : index
    %c0_68 = arith.constant 0 : index
    %160 = vector.load %arg2[%c832, %c0_68] : memref<1088x128xbf16, #tpu.memory_space<vmem>>, vector<128x128xbf16>
    %cst_69 = arith.constant dense<0.000000e+00> : vector<8x128xf32>
    %161 = tpu.matmul %159, %160, %cst_69 {dimension_numbers = #tpu.dot_dimension_numbers<[1], [0], [0], [1], [0, 0, 1, 1], [], []>} : vector<8x128xbf16>, vector<128x128xbf16>, vector<8x128xf32> -> vector<8x128xf32>
    %c14 = arith.constant 14 : index
    %c0_70 = arith.constant 0 : index
    %162 = vector.load %arg6[%c14, %c0_70] : memref<24x128xf32, #tpu.memory_space<vmem>>, vector<1x128xf32>
    %163 = vector.broadcast %162 : vector<1x128xf32> to vector<8x128xf32>
    %164 = arith.addf %161, %163 : vector<8x128xf32>
    %cst_71 = arith.constant 5.000000e-01 : f32
    %165 = vector.broadcast %cst_71 : f32 to vector<8x128xf32>
    %166 = arith.mulf %165, %164 : vector<8x128xf32>
    %167 = math.exp %166 : vector<8x128xf32>
    %168 = arith.mulf %0, %167 : vector<8x128xf32>
    %169 = tpu.concatenate %164, %168 in 1 : vector<8x128xf32>, vector<8x128xf32> -> vector<8x256xf32>
    %170 = arith.truncf %169 : vector<8x256xf32> to vector<8x256xbf16>
    %c64 = arith.constant 64 : index
    %c0_72 = arith.constant 0 : index
    %171 = vector.load %arg2[%c64, %c0_72] : memref<1088x128xbf16, #tpu.memory_space<vmem>>, vector<256x128xbf16>
    %cst_73 = arith.constant dense<0.000000e+00> : vector<8x128xf32>
    %172 = tpu.matmul %170, %171, %cst_73 {dimension_numbers = #tpu.dot_dimension_numbers<[1], [0], [0], [1], [0, 0, 1, 1], [], []>} : vector<8x256xbf16>, vector<256x128xbf16>, vector<8x128xf32> -> vector<8x128xf32>
    %c15 = arith.constant 15 : index
    %c0_74 = arith.constant 0 : index
    %173 = vector.load %arg6[%c15, %c0_74] : memref<24x128xf32, #tpu.memory_space<vmem>>, vector<1x128xf32>
    %174 = vector.broadcast %173 : vector<1x128xf32> to vector<8x128xf32>
    %175 = arith.addf %172, %174 : vector<8x128xf32>
    %cst_75 = arith.constant 0.000000e+00 : f32
    %176 = vector.broadcast %cst_75 : f32 to vector<8x128xf32>
    %177 = arith.maximumf %175, %176 : vector<8x128xf32>
    %178 = arith.truncf %177 : vector<8x128xf32> to vector<8x128xbf16>
    %c320 = arith.constant 320 : index
    %c0_76 = arith.constant 0 : index
    %179 = vector.load %arg2[%c320, %c0_76] : memref<1088x128xbf16, #tpu.memory_space<vmem>>, vector<128x128xbf16>
    %cst_77 = arith.constant dense<0.000000e+00> : vector<8x128xf32>
    %180 = tpu.matmul %178, %179, %cst_77 {dimension_numbers = #tpu.dot_dimension_numbers<[1], [0], [0], [1], [0, 0, 1, 1], [], []>} : vector<8x128xbf16>, vector<128x128xbf16>, vector<8x128xf32> -> vector<8x128xf32>
    %c16 = arith.constant 16 : index
    %c0_78 = arith.constant 0 : index
    %181 = vector.load %arg6[%c16, %c0_78] : memref<24x128xf32, #tpu.memory_space<vmem>>, vector<1x128xf32>
    %182 = vector.broadcast %181 : vector<1x128xf32> to vector<8x128xf32>
    %183 = arith.addf %180, %182 : vector<8x128xf32>
    %cst_79 = arith.constant 0.000000e+00 : f32
    %184 = vector.broadcast %cst_79 : f32 to vector<8x128xf32>
    %185 = arith.maximumf %183, %184 : vector<8x128xf32>
    %c448 = arith.constant 448 : index
    %c0_80 = arith.constant 0 : index
    %186 = vector.load %arg2[%c448, %c0_80] : memref<1088x128xbf16, #tpu.memory_space<vmem>>, vector<128x128xbf16>
    %cst_81 = arith.constant dense<0.000000e+00> : vector<8x128xf32>
    %187 = tpu.matmul %1, %186, %cst_81 {dimension_numbers = #tpu.dot_dimension_numbers<[1], [0], [0], [1], [0, 0, 1, 1], [], []>} : vector<8x128xbf16>, vector<128x128xbf16>, vector<8x128xf32> -> vector<8x128xf32>
    %c17 = arith.constant 17 : index
    %c0_82 = arith.constant 0 : index
    %188 = vector.load %arg6[%c17, %c0_82] : memref<24x128xf32, #tpu.memory_space<vmem>>, vector<1x128xf32>
    %189 = vector.broadcast %188 : vector<1x128xf32> to vector<8x128xf32>
    %190 = arith.addf %187, %189 : vector<8x128xf32>
    %191 = tpu.concatenate %185, %190 in 1 : vector<8x128xf32>, vector<8x128xf32> -> vector<8x256xf32>
    %192 = arith.truncf %191 : vector<8x256xf32> to vector<8x256xbf16>
    %c576 = arith.constant 576 : index
    %c0_83 = arith.constant 0 : index
    %193 = vector.load %arg2[%c576, %c0_83] : memref<1088x128xbf16, #tpu.memory_space<vmem>>, vector<256x128xbf16>
    %cst_84 = arith.constant dense<0.000000e+00> : vector<8x128xf32>
    %194 = tpu.matmul %192, %193, %cst_84 {dimension_numbers = #tpu.dot_dimension_numbers<[1], [0], [0], [1], [0, 0, 1, 1], [], []>} : vector<8x256xbf16>, vector<256x128xbf16>, vector<8x128xf32> -> vector<8x128xf32>
    %c18 = arith.constant 18 : index
    %c0_85 = arith.constant 0 : index
    %195 = vector.load %arg6[%c18, %c0_85] : memref<24x128xf32, #tpu.memory_space<vmem>>, vector<1x128xf32>
    %196 = vector.broadcast %195 : vector<1x128xf32> to vector<8x128xf32>
    %197 = arith.addf %194, %196 : vector<8x128xf32>
    %cst_86 = arith.constant 0.000000e+00 : f32
    %198 = vector.broadcast %cst_86 : f32 to vector<8x128xf32>
    %199 = arith.maximumf %197, %198 : vector<8x128xf32>
    %200 = arith.truncf %199 : vector<8x128xf32> to vector<8x128xbf16>
    %c960 = arith.constant 960 : index
    %c0_87 = arith.constant 0 : index
    %201 = vector.load %arg2[%c960, %c0_87] : memref<1088x128xbf16, #tpu.memory_space<vmem>>, vector<128x128xbf16>
    %cst_88 = arith.constant dense<0.000000e+00> : vector<8x128xf32>
    %202 = tpu.matmul %200, %201, %cst_88 {dimension_numbers = #tpu.dot_dimension_numbers<[1], [0], [0], [1], [0, 0, 1, 1], [], []>} : vector<8x128xbf16>, vector<128x128xbf16>, vector<8x128xf32> -> vector<8x128xf32>
    %203 = arith.addf %202, %164 : vector<8x128xf32>
    %c19 = arith.constant 19 : index
    %c0_89 = arith.constant 0 : index
    %204 = vector.load %arg6[%c19, %c0_89] : memref<24x128xf32, #tpu.memory_space<vmem>>, vector<1x128xf32>
    %205 = vector.broadcast %204 : vector<1x128xf32> to vector<8x128xf32>
    %206 = arith.addf %203, %205 : vector<8x128xf32>
    %c0_90 = arith.constant 0 : index
    %c0_91 = arith.constant 0 : index
    %207 = vector.load %arg7[%c0_90, %c0_91] : memref<8x128xf32, #tpu.memory_space<vmem>>, vector<8x128xf32>
    tpu.vector_store %arg7[%c0_90, %c0_91], %206 {strides = array<i32>} : memref<8x128xf32, #tpu.memory_space<vmem>>, vector<8x128xf32>,
    return
  }
}

</mosaic_0001>

<bundles_post_ra>
// kernel: pft_forward.1
= control target key start
LH: loop header
LB: loop body
LE: loop exit
PB: predicated region body
PF: predicated region fallthrough
CT: control target
= control target key end

     0   :  { %v7433_v0 = vmov 0.0   ;;  %vm7434_vm0 = vmmov 0   ;;  %vm176_vm1 = vcmask 523264   ;;  %s9244_s1 = inlined_call_operand.vmem [shape: bf16[256,64], index: 1, kind: input, shape index: {}]   ;;  %s9245_s0 = inlined_call_operand.vmem [shape: f32[8,128], index: 0, kind: input, shape index: {}]   ;;  %s9246_s6 = inlined_call_operand.vmem [shape: f32[24,128], index: 6, kind: input, shape index: {}]   ;;  %s9247_s3 = inlined_call_operand.vmem [shape: bf16[2,64,2048], index: 3, kind: input, shape index: {}]   ;;  %s9248_s4 = inlined_call_operand.vmem [shape: bf16[2,2048,64], index: 4, kind: input, shape index: {}]   ;;  %s9249_s5 = inlined_call_operand.vmem [shape: f32[2,2048], index: 5, kind: input, shape index: {}]   ;;  %s9250_s2 = inlined_call_operand.vmem [shape: bf16[1088,128], index: 2, kind: input, shape index: {}]   ;;  %s9251_s7 = inlined_call_operand.vmem [shape: f32[8,128], index: 7, kind: output, shape index: {}]  }
   0x1   :  { %6943 = vmatprep.subr.bf16.mxu0 %v7433_v0  ;;  %v7082_v1 = vld [vmem:[%s9244_s1 + $0x38] sm:$0xff]   ;;  %6959 = vmatprep.mubr.msk.bf16.mxu0 %vm7434_vm0, %v7433_v0  ;;  %v7083_v2 = vld [vmem:[%s9244_s1 + $0x30] sm:$0xff]   ;;  %v7084_v3 = vld [vmem:[%s9244_s1 + $0x28] sm:$0xff]  }
   0x2   :  { %6963 = vmatprep.subr.bf16.mxu1 %v7433_v0  ;;  %6971 = vmatprep.mubr.msk.bf16.mxu1 %vm7434_vm0, %v7433_v0  ;;  %v7090_v4 = vld [vmem:[%s9244_s1 + $0x58] sm:$0xff]   ;;  %v7085_v5 = vld [vmem:[%s9244_s1 + $0x20] sm:$0xff]   ;;  %v7091_v6 = vld [vmem:[%s9244_s1 + $0x50] sm:$0xff]  }
   0x3   :  { %6944 = vmatpush3.bf16.msra.mxu0 %v7082_v1  ;;  %6964 = vmatpush3.bf16.msra.mxu1 %v7090_v4  ;;  %v7086_v7 = vld [vmem:[%s9244_s1 + $0x18] sm:$0xff]   ;;  %v7092_v8 = vld [vmem:[%s9244_s1 + $0x48] sm:$0xff]   ;;  %v7087_v9 = vld [vmem:[%s9244_s1 + $0x10] sm:$0xff]  }
   0x4   :  { %6945 = vmatprep.subr.bf16.mxu0 %v7433_v0  ;;  %6965 = vmatprep.subr.bf16.mxu1 %v7433_v0  ;;  %v7088_v10 = vld [vmem:[%s9244_s1 + $0x8] sm:$0xff]   ;;  %v7089_v11 = vld [vmem:[%s9244_s1] sm:$0xff]   ;;  %v298_v4 = vld [vmem:[%s9247_s3 + $0x190] sm:$0xff] }
   0x5   :  { %v27_v12 = vld [vmem:[%s9245_s0] sm:$0xff]  ;;  %v297_v37 = vld [vmem:[%s9247_s3 + $0x188] sm:$0xff] }
   0x6   :  { %v7528_v13 = vpack.c.bf16 %v27_v12, %v27_v12  ;;  %v7093_v14 = vld [vmem:[%s9244_s1 + $0x40] sm:$0xff]   ;;  %v305_v39 = vld [vmem:[%s9247_s3 + $0x1c8] sm:$0xff]  ;;  %v7435_v12 = vmov 0  }
   0x7   :  { %6946 = vmatpush3.bf16.msra.mxu0 %v7083_v2  ;;  %6966 = vmatpush3.bf16.msra.mxu1 %v7091_v6  ;;  %v5657_v15 = vld [vmem:[%s9246_s6] ss:$0 sm:$0xff]  ;;  %v5666_v22 = vld [vmem:[%s9246_s6 + $0x1] ss:$0 sm:$0xff]  ;;  %v5725_v41 = vcombine.low %v297_v37, %v305_v39  ;;  %v5726_v42 = vcombine.high %v297_v37, %v305_v39  ;;  %v281_v45 = vld [vmem:[%s9247_s3 + $0x108] sm:$0xff] }
   0x8   :  { %6947 = vmatprep.subr.bf16.mxu0 %v7433_v0  ;;  %6967 = vmatprep.subr.bf16.mxu1 %v7433_v0  ;;  %v296_v35 = vld [vmem:[%s9247_s3 + $0x180] sm:$0xff]  ;;  %v289_v47 = vld [vmem:[%s9247_s3 + $0x148] sm:$0xff]  ;;  %v299_v6 = vld [vmem:[%s9247_s3 + $0x198] sm:$0xff] }
   0x9   :  { %v304_v36 = vld [vmem:[%s9247_s3 + $0x1c0] sm:$0xff]  ;;  %v5709_v49 = vcombine.low %v281_v45, %v289_v47  ;;  %v5710_v50 = vcombine.high %v281_v45, %v289_v47  ;;  %v265_v53 = vld [vmem:[%s9247_s3 + $0x88] sm:$0xff]  ;;  %v258_v37 = vld [vmem:[%s9247_s3 + $0x50] sm:$0xff] }
   0xa   :  { %v5724_v38 = vcombine.high %v296_v35, %v304_v36  ;;  %v5723_v40 = vcombine.low %v296_v35, %v304_v36  ;;  %v280_v43 = vld [vmem:[%s9247_s3 + $0x100] sm:$0xff]  ;;  %v273_v55 = vld [vmem:[%s9247_s3 + $0xc8] sm:$0xff]  ;;  %v250_v36 = vld [vmem:[%s9247_s3 + $0x10] sm:$0xff] }
   0xb   :  { %6948 = vmatpush3.bf16.msra.mxu0 %v7084_v3  ;;  %6968 = vmatpush3.bf16.msra.mxu1 %v7092_v8  ;;  %v288_v44 = vld [vmem:[%s9247_s3 + $0x140] sm:$0xff]  ;;  %v5693_v57 = vcombine.low %v265_v53, %v273_v55  ;;  %v5694_v58 = vcombine.high %v265_v53, %v273_v55  ;;  %v249_v61 = vld [vmem:[%s9247_s3 + $0x8] sm:$0xff]  ;;  %v307_v8 = vld [vmem:[%s9247_s3 + $0x1d8] sm:$0xff] }
   0xc   :  { %6949 = vmatprep.subr.bf16.mxu0 %v7433_v0  ;;  %6969 = vmatprep.subr.bf16.mxu1 %v7433_v0  ;;  %v5708_v46 = vcombine.high %v280_v43, %v288_v44  ;;  %v5707_v48 = vcombine.low %v280_v43, %v288_v44  ;;  %v264_v51 = vld [vmem:[%s9247_s3 + $0x80] sm:$0xff]  ;;  %v257_v63 = vld [vmem:[%s9247_s3 + $0x48] sm:$0xff]  ;;  %v259_v39 = vld [vmem:[%s9247_s3 + $0x58] sm:$0xff] }
   0xd   :  { %v272_v52 = vld [vmem:[%s9247_s3 + $0xc0] sm:$0xff]  ;;  %v5677_v2 = vcombine.low %v249_v61, %v257_v63  ;;  %v5678_v3 = vcombine.high %v249_v61, %v257_v63  ;;  %v309_v47 = vld [vmem:[%s9247_s3 + $0x1e8] sm:$0xff] }
   0xe   :  { %v5692_v54 = vcombine.high %v264_v51, %v272_v52  ;;  %v5691_v56 = vcombine.low %v264_v51, %v272_v52  ;;  %v248_v59 = vld [vmem:[%s9247_s3] sm:$0xff]  ;;  %v293_v55 = vld [vmem:[%s9247_s3 + $0x168] sm:$0xff] }
   0xf   :  { %6950 = vmatpush3.bf16.msra.mxu0 %v7085_v5  ;;  %6970 = vmatpush3.bf16.msra.mxu1 %v7093_v14  ;;  %v256_v60 = vld [vmem:[%s9247_s3 + $0x40] sm:$0xff]  ;;  %v306_v5 = vld [vmem:[%s9247_s3 + $0x1d0] sm:$0xff]  ;;  %v277_v63 = vld [vmem:[%s9247_s3 + $0xe8] sm:$0xff] }
  0x10   :  { %6951 = vmatprep.subr.bf16.mxu0 %v7433_v0  ;;  %728 = vmatprep.subr.bf16.mxu1 %v5724_v38  ;;  %v5676_v62 = vcombine.high %v248_v59, %v256_v60  ;;  %v5675_v1 = vcombine.low %v248_v59, %v256_v60  ;;  %v251_v38 = vld [vmem:[%s9247_s3 + $0x18] sm:$0xff]  ;;  %v300_v44 = vld [vmem:[%s9247_s3 + $0x1a0] sm:$0xff] }
  0x11   :  { %v308_v45 = vld [vmem:[%s9247_s3 + $0x1e0] sm:$0xff]  ;;  %v5681_v51 = vcombine.low %v251_v38, %v259_v39 }
  0x12   :  { %v284_v52 = vld [vmem:[%s9247_s3 + $0x120] sm:$0xff] }
  0x13   :  { %6952 = vmatpush3.bf16.msra.mxu0 %v7086_v7  ;;  %v5728_v7 = vcombine.high %v298_v4, %v306_v5  ;;  %v292_v53 = vld [vmem:[%s9247_s3 + $0x160] sm:$0xff] }
  0x14   :  { %6953 = vmatprep.subr.bf16.mxu0 %v7433_v0  ;;  %v268_v60 = vld [vmem:[%s9247_s3 + $0xa0] sm:$0xff] }
  0x15   :  { %v276_v61 = vld [vmem:[%s9247_s3 + $0xe0] sm:$0xff] }
  0x17   :  { %6954 = vmatpush3.bf16.msra.mxu0 %v7087_v9  ;;  %v5727_v9 = vcombine.low %v298_v4, %v306_v5  ;;  %v252_v5 = vld [vmem:[%s9247_s3 + $0x20] sm:$0xff] }
  0x18   :  { %6955 = vmatprep.subr.bf16.mxu0 %v7433_v0 }
  0x1b   :  { %6956 = vmatpush3.bf16.msra.mxu0 %v7088_v10  ;;  %v5729_v10 = vcombine.low %v299_v6, %v307_v8 }
  0x1c   :  { %6957 = vmatprep.subr.bf16.mxu0 %v7433_v0 }
  0x1f   :  { %6958 = vmatpush3.bf16.msra.mxu0 %v7089_v11  ;;  %v5730_v11 = vcombine.high %v299_v6, %v307_v8  ;;  %v260_v6 = vld [vmem:[%s9247_s3 + $0x60] sm:$0xff]  ;;  %v261_v8 = vld [vmem:[%s9247_s3 + $0x68] sm:$0xff] }
  0x20   :  { %769 = vmatprep.subr.bf16.mxu0 %v5726_v42 }
  0x22   :  { %6960 = vmatmul.mubr.bf16.vlgmr.msra.gmra.mxu0 %v7528_v13 }
  0x23   :  { %770 = vmatpush1.bf16.msra.mxu0 %v5725_v41  ;;  %793 = vmatprep.mubr.bf16.mxu0 %v7435_v12 }
  0x24   :  { %771 = vmatprep.subr.bf16.mxu0 %v5710_v50  ;;  %v5679_v50 = vcombine.low %v250_v36, %v258_v37 }
  0x27   :  { %772 = vmatpush1.bf16.msra.mxu0 %v5709_v49  ;;  %v5682_v49 = vcombine.high %v251_v38, %v259_v39 }
  0x28   :  { %773 = vmatprep.subr.bf16.mxu0 %v5694_v58  ;;  %v5731_v58 = vcombine.low %v300_v44, %v308_v45 }
  0x2b   :  { %774 = vmatpush1.bf16.msra.mxu0 %v5693_v57 }
  0x2c   :  { %775 = vmatprep.subr.bf16.mxu0 %v5678_v3  ;;  %v5715_v3 = vcombine.low %v284_v52, %v292_v53 }
  0x2f   :  { %776 = vmatpush1.bf16.msra.mxu0 %v5677_v2 }
  0x30   :  { %851 = vmatprep.subr.bf16.mxu0 %v5730_v11  ;;  %v5699_v11 = vcombine.low %v268_v60, %v276_v61 }
  0xe2   :  { %v132_v16 = vpop.f32.mrf.mxu0 }
  0xe3   :  { %v133_v17 = vadd.f32 %v5657_v15, %v132_v16 }
  0xe4   :  { %v6961_v18 = vpop.f32.mrf.mxu0 }
  0xe5   :  { %v138_v19 = vpack.c.bf16 %v133_v17, %v133_v17 }
  0xe6   :  { %v135_v20 = vpop.f32.mrf.mxu0 }
  0xe7   :  { %6972 = vmatmul.mubr.msk.bf16.vlgmr.msra.gmra.mxu1 %vm176_vm1, %v138_v19  ;;  %v5673_v19 = vld [vmem:[%s9246_s6 + $0x3] ss:$0 sm:$0xff] }
  0xe8   :  { %v6962_v21 = vpop.f32.mrf.mxu0  ;;  %729 = vmatpush1.bf16.msra.mxu1 %v5723_v40  ;;  %752 = vmatprep.mubr.bf16.mxu1 %v7435_v12 }
  0xe9   :  { %730 = vmatprep.subr.bf16.mxu1 %v5708_v46  ;;  %v282_v21 = vld [vmem:[%s9247_s3 + $0x110] sm:$0xff]  ;;  %v301_v46 = vld [vmem:[%s9247_s3 + $0x1a8] sm:$0xff] }
  0xea   :  { %v5734_v57 = vcombine.high %v301_v46, %v309_v47  ;;  %v5733_v59 = vcombine.low %v301_v46, %v309_v47 }
  0xec   :  { %731 = vmatpush1.bf16.msra.mxu1 %v5707_v48  ;;  %v5680_v48 = vcombine.high %v250_v36, %v258_v37  ;;  %v279_v36 = vld [vmem:[%s9247_s3 + $0xf8] sm:$0xff] }
  0xed   :  { %732 = vmatprep.subr.bf16.mxu1 %v5692_v54  ;;  %v285_v54 = vld [vmem:[%s9247_s3 + $0x128] sm:$0xff] }
  0xee   :  { %v5718_v2 = vcombine.high %v285_v54, %v293_v55  ;;  %v5717_v4 = vcombine.low %v285_v54, %v293_v55  ;;  %v7096_v55 = vld [vmem:[%s9248_s4 + $0x38] sm:$0xff]  }
  0xf0   :  { %733 = vmatpush1.bf16.msra.mxu1 %v5691_v56  ;;  %v5732_v56 = vcombine.high %v300_v44, %v308_v45  ;;  %v263_v44 = vld [vmem:[%s9247_s3 + $0x78] sm:$0xff] }
  0xf1   :  { %734 = vmatprep.subr.bf16.mxu1 %v5676_v62  ;;  %v269_v62 = vld [vmem:[%s9247_s3 + $0xa8] sm:$0xff] }
  0xf4   :  { %735 = vmatpush1.bf16.msra.mxu1 %v5675_v1  ;;  %v5716_v1 = vcombine.high %v284_v52, %v292_v53  ;;  %v7095_v52 = vld [vmem:[%s9248_s4 + $0xf8] sm:$0xff]  }
  0xf5   :  { %810 = vmatprep.subr.bf16.mxu1 %v5728_v7  ;;  %v253_v7 = vld [vmem:[%s9247_s3 + $0x28] sm:$0xff] }
 0x1a7   :  { %v214_v23 = vpop.f32.mrf.mxu1 }
 0x1a8   :  { %v215_v24 = vadd.f32 %v5666_v22, %v214_v23  ;;  %v290_v22 = vld [vmem:[%s9247_s3 + $0x150] sm:$0xff]  ;;  %v283_v23 = vld [vmem:[%s9247_s3 + $0x118] sm:$0xff] }
 0x1a9   :  { %v6973_v25 = vpop.f32.mrf.mxu1 }
 0x1aa   :  { %v220_v26 = vadd.f32 %v215_v24, %v133_v17  ;;  %v5672_v17 = vld [vmem:[%s9246_s6 + $0x2] ss:$0 sm:$0xff]  ;;  %v291_v24 = vld [vmem:[%s9247_s3 + $0x158] sm:$0xff] }
 0x1ab   :  { %v217_v27 = vpop.f32.mrf.mxu1  ;;  %v5713_v35 = vcombine.low %v283_v23, %v291_v24 }
 0x1ac   :  { %v223_v28 = vsel %vm176_vm1, %v220_v26, 0.0  ;;  %v266_v27 = vld [vmem:[%s9247_s3 + $0x90] sm:$0xff] }
 0x1ad   :  { %224 = vadd.xlane.f32.xlu0 %v223_v28  ;;  %v6974_v29 = vpop.f32.mrf.mxu1  ;;  %v274_v28 = vld [vmem:[%s9247_s3 + $0xd0] sm:$0xff] }
 0x1ae   :  { %v267_v29 = vld [vmem:[%s9247_s3 + $0x98] sm:$0xff]  ;;  %v5696_v40 = vcombine.high %v266_v27, %v274_v28  ;;  %v5695_v42 = vcombine.low %v266_v27, %v274_v28 }
 0x1af   :  { %v295_v27 = vld [vmem:[%s9247_s3 + $0x178] sm:$0xff] }
 0x236   :  { %v225_v30 = vpop.xlane.xlu0 %224 }
 0x237   :  { %v227_v31 = vmul.f32 0.015625, %v225_v30  ;;  %v275_v30 = vld [vmem:[%s9247_s3 + $0xd8] sm:$0xff] }
 0x238   :  { %v5698_v41 = vcombine.high %v267_v29, %v275_v30  ;;  %v5697_v43 = vcombine.low %v267_v29, %v275_v30 }
 0x239   :  { %v7542_v32 = vsub.f32 %v220_v26, %v227_v31 }
 0x23b   :  { %v229_v33 = vmul.f32 %v7542_v32, %v7542_v32 }
 0x23d   :  { %v230_v34 = vsel %vm176_vm1, %v229_v33, 0.0  ;;  %v5714_v33 = vcombine.high %v283_v23, %v291_v24  ;;  %v286_v23 = vld [vmem:[%s9247_s3 + $0x130] sm:$0xff] }
 0x23e   :  { %231 = vadd.xlane.f32.xlu0 %v230_v34  ;;  %v5711_v34 = vcombine.low %v282_v21, %v290_v22  ;;  %v294_v24 = vld [vmem:[%s9247_s3 + $0x170] sm:$0xff] }
 0x23f   :  { %v5720_v37 = vcombine.high %v286_v23, %v294_v24  ;;  %v5719_v39 = vcombine.low %v286_v23, %v294_v24  ;;  %v7126_v23 = vld [vmem:[%s9248_s4 + $0x178] sm:$0xff]  }
 0x240   :  { %v7127_v24 = vld [vmem:[%s9248_s4 + $0x1f8] sm:$0xff]  }
 0x2c7   :  { %v232_v14 = vpop.xlane.xlu0 %231 }
 0x2c8   :  { %v233_v15 = vmul.f32 0.015625, %v232_v14  ;;  %v5701_v14 = vcombine.low %v269_v62, %v277_v63 }
 0x2ca   :  { %v234_v16 = vadd.f32 1e-05, %v233_v15  ;;  %v302_v15 = vld [vmem:[%s9247_s3 + $0x1b0] sm:$0xff] }
 0x2cc   :  { %7422 = vrsqrt.f32 %v234_v16  ;;  %v310_v16 = vld [vmem:[%s9247_s3 + $0x1f0] sm:$0xff] }
 0x2cd   :  { %v5736_v28 = vcombine.high %v302_v15, %v310_v16  ;;  %v5735_v30 = vcombine.low %v302_v15, %v310_v16  ;;  %v7118_v15 = vld [vmem:[%s9248_s4 + $0x48] sm:$0xff]  }
 0x2ce   :  { %v7119_v16 = vld [vmem:[%s9248_s4 + $0xc8] sm:$0xff]  }
 0x2d9   :  { %v7423_v18 = vpop.eup %7422 }
 0x2da   :  { %v236_v20 = vmul.f32 %v7423_v18, %v7542_v32  ;;  %v5712_v32 = vcombine.high %v282_v21, %v290_v22  ;;  %v311_v18 = vld [vmem:[%s9247_s3 + $0x1f8] sm:$0xff]  ;;  %v5683_v21 = vcombine.low %v252_v5, %v260_v6  ;;  %v5685_v22 = vcombine.low %v253_v7, %v261_v8 }
 0x2dc   :  { %v241_v25 = vmul.f32 %v5672_v17, %v236_v20  ;;  %v303_v17 = vld [vmem:[%s9247_s3 + $0x1b8] sm:$0xff]  ;;  %v5686_v20 = vcombine.high %v253_v7, %v261_v8 }
 0x2dd   :  { %v5738_v29 = vcombine.high %v303_v17, %v311_v18  ;;  %v7112_v7 = vld [vmem:[%s9248_s4 + $0x18] sm:$0xff]  }
 0x2de   :  { %v7628_v26 = vadd.f32 %v5673_v19, %v241_v25  ;;  %v5684_v19 = vcombine.high %v252_v5, %v260_v6  ;;  %v287_v25 = vld [vmem:[%s9247_s3 + $0x138] sm:$0xff] }
 0x2df   :  { %v5722_v38 = vcombine.high %v287_v25, %v295_v27  ;;  %v7110_v5 = vld [vmem:[%s9248_s4 + $0x58] sm:$0xff]  }
 0x2e0   :  { %v7644_v31 = vpack.c.bf16 %v7628_v26, %v7628_v26  ;;  %v7111_v6 = vld [vmem:[%s9248_s4 + $0xd8] sm:$0xff]  }
 0x2e1   :  { %v7113_v8 = vld [vmem:[%s9248_s4 + $0x98] sm:$0xff]  }
 0x2e2   :  { %5739 = vmatmul.mubr.msk.bf16.vlgmr.msra.gmra.mxu1 %vm176_vm1, %v7644_v31  ;;  %5740 = vmatmul.mubr.msk.bf16.vlgmr.msra.gmra.mxu0 %vm176_vm1, %v7644_v31 }
 0x2e3   :  { %811 = vmatpush1.bf16.msra.mxu1 %v5727_v9  ;;  %852 = vmatpush1.bf16.msra.mxu0 %v5729_v10  ;;  %v5700_v9 = vcombine.high %v268_v60, %v276_v61  ;;  %v5702_v10 = vcombine.high %v269_v62, %v277_v63  ;;  %v7101_v60 = vld [vmem:[%s9248_s4 + $0xb0] sm:$0xff]   ;;  %v7102_v61 = vld [vmem:[%s9248_s4 + $0x68] sm:$0xff]  }
 0x2e4   :  { %812 = vmatprep.subr.bf16.mxu1 %v5712_v32  ;;  %853 = vmatprep.subr.bf16.mxu0 %v5714_v33  ;;  %v5737_v32 = vcombine.low %v303_v17, %v311_v18  ;;  %v270_v33 = vld [vmem:[%s9247_s3 + $0xb0] sm:$0xff]  ;;  %v7103_v62 = vld [vmem:[%s9248_s4 + $0xe8] sm:$0xff]  }
 0x2e5   :  { %834 = vmatprep.mubr.bf16.mxu1 %v7435_v12  ;;  %875 = vmatprep.mubr.bf16.mxu0 %v7435_v12  ;;  %v7104_v63 = vld [vmem:[%s9248_s4 + $0x28] sm:$0xff]  }
 0x2e6   :  { %v7120_v17 = vld [vmem:[%s9248_s4 + $0x8] sm:$0xff]  }
 0x2e7   :  { %813 = vmatpush1.bf16.msra.mxu1 %v5711_v34  ;;  %854 = vmatpush1.bf16.msra.mxu0 %v5713_v35  ;;  %v278_v34 = vld [vmem:[%s9247_s3 + $0xf0] sm:$0xff]  ;;  %v271_v35 = vld [vmem:[%s9247_s3 + $0xb8] sm:$0xff]  ;;  %v7121_v18 = vld [vmem:[%s9248_s4 + $0x88] sm:$0xff]  }
 0x2e8   :  { %814 = vmatprep.subr.bf16.mxu1 %v5696_v40  ;;  %855 = vmatprep.subr.bf16.mxu0 %v5698_v41  ;;  %v5721_v40 = vcombine.low %v287_v25, %v295_v27  ;;  %v254_v41 = vld [vmem:[%s9247_s3 + $0x30] sm:$0xff]  ;;  %v5704_v45 = vcombine.high %v270_v33, %v278_v34  ;;  %v5706_v46 = vcombine.high %v271_v35, %v279_v36  ;;  %v317_v25 = vlaneseq }
 0x2e9   :  { %v5703_v47 = vcombine.low %v270_v33, %v278_v34 }
 0x2ea   :  { %v7878_v27 = vshrl.u32 %v317_v25, 7 }
 0x2eb   :  { %815 = vmatpush1.bf16.msra.mxu1 %v5695_v42  ;;  %856 = vmatpush1.bf16.msra.mxu0 %v5697_v43  ;;  %v262_v42 = vld [vmem:[%s9247_s3 + $0x70] sm:$0xff]  ;;  %v255_v43 = vld [vmem:[%s9247_s3 + $0x38] sm:$0xff] }
 0x2ec   :  { %816 = vmatprep.subr.bf16.mxu1 %v5680_v48  ;;  %857 = vmatprep.subr.bf16.mxu0 %v5682_v49  ;;  %v5705_v48 = vcombine.low %v271_v35, %v279_v36  ;;  %v5688_v49 = vcombine.high %v254_v41, %v262_v42  ;;  %v5687_v53 = vcombine.low %v254_v41, %v262_v42  ;;  %v7895_v33 = vsub.s32 3, %v7878_v27 }
 0x2ed   :  { %v5689_v54 = vcombine.low %v255_v43, %v263_v44 }
 0x2ef   :  { %817 = vmatpush1.bf16.msra.mxu1 %v5679_v50  ;;  %858 = vmatpush1.bf16.msra.mxu0 %v5681_v51  ;;  %v5690_v50 = vcombine.high %v255_v43, %v263_v44  ;;  %v7094_v51 = vld [vmem:[%s9248_s4 + $0x78] sm:$0xff]  }
 0x2f0   :  { %892 = vmatprep.subr.bf16.mxu1 %v5732_v56  ;;  %933 = vmatprep.subr.bf16.mxu0 %v5734_v57  ;;  %v7097_v56 = vld [vmem:[%s9248_s4 + $0xb8] sm:$0xff]   ;;  %v7098_v57 = vld [vmem:[%s9248_s4 + $0x70] sm:$0xff]  }
 0x2f2   :  { %5741 = vmatmul.mubr.msk.bf16.vlgmr.msra.gmra.mxu1 %vm176_vm1, %v7644_v31  ;;  %5742 = vmatmul.mubr.msk.bf16.vlgmr.msra.gmra.mxu0 %vm176_vm1, %v7644_v31 }
 0x2f3   :  { %893 = vmatpush1.bf16.msra.mxu1 %v5731_v58  ;;  %934 = vmatpush1.bf16.msra.mxu0 %v5733_v59  ;;  %v7099_v58 = vld [vmem:[%s9248_s4 + $0xf0] sm:$0xff]  }
 0x2f4   :  { %894 = vmatprep.subr.bf16.mxu1 %v5716_v1  ;;  %935 = vmatprep.subr.bf16.mxu0 %v5718_v2  ;;  %v7100_v59 = vld [vmem:[%s9248_s4 + $0x30] sm:$0xff]   ;;  %v7106_v1 = vld [vmem:[%s9248_s4 + $0x60] sm:$0xff]  }
 0x2f5   :  { %916 = vmatprep.mubr.bf16.mxu1 %v7435_v12  ;;  %957 = vmatprep.mubr.bf16.mxu0 %v7435_v12  ;;  %v7107_v2 = vld [vmem:[%s9248_s4 + $0xe0] sm:$0xff]  }
 0x2f7   :  { %895 = vmatpush1.bf16.msra.mxu1 %v5715_v3  ;;  %936 = vmatpush1.bf16.msra.mxu0 %v5717_v4  ;;  %v7108_v3 = vld [vmem:[%s9248_s4 + $0x20] sm:$0xff]  }
 0x2f8   :  { %896 = vmatprep.subr.bf16.mxu1 %v5700_v9  ;;  %937 = vmatprep.subr.bf16.mxu0 %v5702_v10  ;;  %v7109_v4 = vld [vmem:[%s9248_s4 + $0xa0] sm:$0xff]   ;;  %v7114_v9 = vld [vmem:[%s9248_s4 + $0x50] sm:$0xff]  }
 0x2f9   :  { %v7115_v10 = vld [vmem:[%s9248_s4 + $0xd0] sm:$0xff]  }
 0x2fb   :  { %897 = vmatpush1.bf16.msra.mxu1 %v5699_v11  ;;  %938 = vmatpush1.bf16.msra.mxu0 %v5701_v14  ;;  %v7116_v11 = vld [vmem:[%s9248_s4 + $0x10] sm:$0xff]  }
 0x2fc   :  { %898 = vmatprep.subr.bf16.mxu1 %v5684_v19  ;;  %939 = vmatprep.subr.bf16.mxu0 %v5686_v20  ;;  %v7117_v14 = vld [vmem:[%s9248_s4 + $0x90] sm:$0xff]   ;;  %v7122_v19 = vld [vmem:[%s9248_s4 + $0x40] sm:$0xff]  }
 0x2fd   :  { %v7123_v20 = vld [vmem:[%s9248_s4 + $0xc0] sm:$0xff]  }
 0x2ff   :  { %899 = vmatpush1.bf16.msra.mxu1 %v5683_v21  ;;  %940 = vmatpush1.bf16.msra.mxu0 %v5685_v22  ;;  %v7124_v21 = vld [vmem:[%s9248_s4] sm:$0xff]  }
 0x300   :  { %974 = vmatprep.subr.bf16.mxu1 %v5736_v28  ;;  %1015 = vmatprep.subr.bf16.mxu0 %v5738_v29  ;;  %v7125_v22 = vld [vmem:[%s9248_s4 + $0x80] sm:$0xff]   ;;  %v7881_v28 = vsub.s32 0, %v7878_v27  ;;  %v7884_v29 = vsub.s32 2, %v7878_v27 }
 0x302   :  { %5743 = vmatmul.mubr.msk.bf16.vlgmr.msra.gmra.mxu1 %vm176_vm1, %v7644_v31  ;;  %5744 = vmatmul.mubr.msk.bf16.vlgmr.msra.gmra.mxu0 %vm176_vm1, %v7644_v31 }
 0x303   :  { %975 = vmatpush1.bf16.msra.mxu1 %v5735_v30  ;;  %1016 = vmatpush1.bf16.msra.mxu0 %v5737_v32  ;;  %v7889_v30 = vld [vmem:[%s9249_s5] ss:$2 sm:$0xff]  ;;  %v7892_v32 = vsub.s32 1, %v7878_v27 }
 0x304   :  { %976 = vmatprep.subr.bf16.mxu1 %v5720_v37  ;;  %1017 = vmatprep.subr.bf16.mxu0 %v5722_v38  ;;  %v320_v34 = vrot.slane %v7889_v30, %v7881_v28  ;;  %v328_v35 = vrot.slane %v7889_v30, %v7884_v29  ;;  %v332_v37 = vrot.slane %v7889_v30, %v7895_v33 }
 0x305   :  { %998 = vmatprep.mubr.bf16.mxu1 %v7435_v12  ;;  %1039 = vmatprep.mubr.bf16.mxu0 %v7435_v12  ;;  %v324_v36 = vrot.slane %v7889_v30, %v7892_v32 }
 0x307   :  { %977 = vmatpush1.bf16.msra.mxu1 %v5719_v39  ;;  %1018 = vmatpush1.bf16.msra.mxu0 %v5721_v40 }
 0x308   :  { %978 = vmatprep.subr.bf16.mxu1 %v5704_v45  ;;  %1019 = vmatprep.subr.bf16.mxu0 %v5706_v46 }
 0x30b   :  { %979 = vmatpush1.bf16.msra.mxu1 %v5703_v47  ;;  %1020 = vmatpush1.bf16.msra.mxu0 %v5705_v48 }
 0x30c   :  { %980 = vmatprep.subr.bf16.mxu1 %v5688_v49  ;;  %1021 = vmatprep.subr.bf16.mxu0 %v5690_v50 }
 0x30f   :  { %981 = vmatpush1.bf16.msra.mxu1 %v5687_v53  ;;  %1022 = vmatpush1.bf16.msra.mxu0 %v5689_v54 }
 0x310   :  { %6501 = vmatprep.subr.bf16.mxu1 %v7094_v51  ;;  %6523 = vmatprep.subr.bf16.mxu0 %v7095_v52 }
 0x312   :  { %5745 = vmatmul.mubr.msk.bf16.vlgmr.msra.gmra.mxu1 %vm176_vm1, %v7644_v31  ;;  %5746 = vmatmul.mubr.msk.bf16.vlgmr.msra.gmra.mxu0 %vm176_vm1, %v7644_v31  ;;  %v7105_v31 = vld [vmem:[%s9248_s4 + $0xa8] sm:$0xff]  }
 0x313   :  { %6502 = vmatpush3.bf16.msra.mxu1 %v7096_v55  ;;  %6524 = vmatpush3.bf16.msra.mxu0 %v7097_v56  ;;  %v7128_v56 = vld [vmem:[%s9248_s4 + $0x138] sm:$0xff]  }
 0x314   :  { %6503 = vmatprep.subr.bf16.mxu1 %v7098_v57  ;;  %6525 = vmatprep.subr.bf16.mxu0 %v7099_v58  ;;  %v7129_v57 = vld [vmem:[%s9248_s4 + $0x1b8] sm:$0xff]  }
 0x317   :  { %6504 = vmatpush3.bf16.msra.mxu1 %v7100_v59  ;;  %6526 = vmatpush3.bf16.msra.mxu0 %v7101_v60  ;;  %v7130_v60 = vld [vmem:[%s9248_s4 + $0x170] sm:$0xff]  }
 0x318   :  { %6505 = vmatprep.subr.bf16.mxu1 %v7102_v61  ;;  %6527 = vmatprep.subr.bf16.mxu0 %v7103_v62  ;;  %v7131_v61 = vld [vmem:[%s9248_s4 + $0x1f0] sm:$0xff]  }
 0x319   :  { %v7132_v62 = vld [vmem:[%s9248_s4 + $0x130] sm:$0xff]  }
 0x31b   :  { %6506 = vmatpush3.bf16.msra.mxu1 %v7104_v63  ;;  %6528 = vmatpush3.bf16.msra.mxu0 %v7105_v31  ;;  %v7133_v63 = vld [vmem:[%s9248_s4 + $0x1b0] sm:$0xff]   ;;  %v7924_v31 = vsub.s32 5, %v7878_v27 }
 0x31c   :  { %6507 = vmatprep.subr.bf16.mxu1 %v7106_v1  ;;  %6529 = vmatprep.subr.bf16.mxu0 %v7107_v2  ;;  %v7927_v1 = vsub.s32 7, %v7878_v27  ;;  %v7134_v2 = vld [vmem:[%s9248_s4 + $0x168] sm:$0xff]  }
 0x31f   :  { %6508 = vmatpush3.bf16.msra.mxu1 %v7108_v3  ;;  %6530 = vmatpush3.bf16.msra.mxu0 %v7109_v4  ;;  %v7135_v3 = vld [vmem:[%s9248_s4 + $0x1e8] sm:$0xff]   ;;  %v340_v4 = vrot.slane %v7889_v30, %v7924_v31 }
 0x320   :  { %6509 = vmatprep.subr.bf16.mxu1 %v7110_v5  ;;  %6531 = vmatprep.subr.bf16.mxu0 %v7111_v6  ;;  %v348_v5 = vrot.slane %v7889_v30, %v7927_v1  ;;  %v7136_v6 = vld [vmem:[%s9248_s4 + $0x128] sm:$0xff]  }
 0x323   :  { %6510 = vmatpush3.bf16.msra.mxu1 %v7112_v7  ;;  %6532 = vmatpush3.bf16.msra.mxu0 %v7113_v8  ;;  %v7137_v7 = vld [vmem:[%s9248_s4 + $0x1a8] sm:$0xff]  }
 0x324   :  { %6511 = vmatprep.subr.bf16.mxu1 %v7114_v9  ;;  %6533 = vmatprep.subr.bf16.mxu0 %v7115_v10  ;;  %v7138_v10 = vld [vmem:[%s9248_s4 + $0x160] sm:$0xff]  }
 0x327   :  { %6512 = vmatpush3.bf16.msra.mxu1 %v7116_v11  ;;  %6534 = vmatpush3.bf16.msra.mxu0 %v7117_v14  ;;  %v7139_v11 = vld [vmem:[%s9248_s4 + $0x1e0] sm:$0xff]  }
 0x328   :  { %6513 = vmatprep.subr.bf16.mxu1 %v7118_v15  ;;  %6535 = vmatprep.subr.bf16.mxu0 %v7119_v16 }
 0x32b   :  { %6514 = vmatpush3.bf16.msra.mxu1 %v7120_v17  ;;  %6536 = vmatpush3.bf16.msra.mxu0 %v7121_v18  ;;  %v7140_v18 = vld [vmem:[%s9248_s4 + $0x120] sm:$0xff]  }
 0x32c   :  { %6515 = vmatprep.subr.bf16.mxu1 %v7122_v19  ;;  %6537 = vmatprep.subr.bf16.mxu0 %v7123_v20  ;;  %v7141_v19 = vld [vmem:[%s9248_s4 + $0x1a0] sm:$0xff]  }
 0x32f   :  { %6516 = vmatpush3.bf16.msra.mxu1 %v7124_v21  ;;  %6538 = vmatpush3.bf16.msra.mxu0 %v7125_v22  ;;  %v7142_v22 = vld [vmem:[%s9248_s4 + $0x158] sm:$0xff]  }
 0x330   :  { %6545 = vmatprep.subr.bf16.mxu1 %v7126_v23  ;;  %6567 = vmatprep.subr.bf16.mxu0 %v7127_v24  ;;  %v7143_v23 = vld [vmem:[%s9248_s4 + $0x1d8] sm:$0xff]  }
 0x3a2   :  { %v754_v38 = vpop.f32.mrf.mxu1  ;;  %v795_v39 = vpop.f32.mrf.mxu0 }
 0x3a3   :  { %v755_v40 = vadd.f32 %v754_v38, %v320_v34  ;;  %v796_v41 = vadd.f32 %v795_v39, %v328_v35  ;;  %v7144_v38 = vld [vmem:[%s9248_s4 + $0x118] sm:$0xff]  }
 0x3a4   :  { %v756_v42 = vpop.f32.mrf.mxu1  ;;  %v797_v43 = vpop.f32.mrf.mxu0  ;;  %v7145_v39 = vld [vmem:[%s9248_s4 + $0x198] sm:$0xff]  }
 0x3a5   :  { %v757_v44 = vadd.f32 %v756_v42, %v324_v36  ;;  %v798_v45 = vadd.f32 %v797_v43, %v332_v37  ;;  %v1048_v46 = vmax.f32 %v755_v40, 0.0  ;;  %v1050_v47 = vmax.f32 %v796_v41, 0.0  ;;  %v7146_v42 = vld [vmem:[%s9248_s4 + $0x150] sm:$0xff]  }
 0x3a6   :  { %v758_v48 = vpop.f32.mrf.mxu1  ;;  %v799_v49 = vpop.f32.mrf.mxu0  ;;  %v7970_v40 = vsub.s32 4, %v7878_v27  ;;  %v7973_v41 = vsub.s32 6, %v7878_v27  ;;  %v7147_v43 = vld [vmem:[%s9248_s4 + $0x1d0] sm:$0xff]  }
 0x3a7   :  { %v1049_v50 = vmax.f32 %v757_v44, 0.0  ;;  %v1051_v51 = vmax.f32 %v798_v45, 0.0  ;;  %v1064_v58 = vpack.c.bf16 %v1048_v46, %v1048_v46  ;;  %v1066_v59 = vpack.c.bf16 %v1050_v47, %v1050_v47  ;;  %v7148_v44 = vld [vmem:[%s9248_s4 + $0x110] sm:$0xff]   ;;  %v7150_v47 = vld [vmem:[%s9248_s4 + $0x148] sm:$0xff]  }
 0x3a8   :  { %v759_v52 = vpop.f32.mrf.mxu1  ;;  %v800_v53 = vpop.f32.mrf.mxu0  ;;  %v7149_v27 = vld [vmem:[%s9248_s4 + $0x190] sm:$0xff]   ;;  %v336_v45 = vrot.slane %v7889_v30, %v7970_v40  ;;  %v344_v46 = vrot.slane %v7889_v30, %v7973_v41  ;;  %v7151_v48 = vld [vmem:[%s9248_s4 + $0x1c8] sm:$0xff]  }
 0x3a9   :  { %v1065_v54 = vpack.c.bf16 %v1049_v50, %v1049_v50  ;;  %v1067_v55 = vpack.c.bf16 %v1051_v51, %v1051_v51  ;;  %v8000_v49 = vld [vmem:[%s9249_s5 + $0x10] ss:$2 sm:$0xff]  ;;  %v7152_v51 = vld [vmem:[%s9248_s4 + $0x108] sm:$0xff]  }
 0x3aa   :  { %v356_v30 = vrot.slane %v8000_v49, %v7892_v32  ;;  %v364_v50 = vrot.slane %v8000_v49, %v7895_v33  ;;  %v7153_v52 = vld [vmem:[%s9248_s4 + $0x188] sm:$0xff]  }
 0x3ab   :  { %2141 = vmatprep.mubr.bf16.mxu1 %v1065_v54  ;;  %2181 = vmatprep.mubr.bf16.mxu0 %v1067_v55 }
 0x3ac   :  { %2142 = vmatmul.mubr.bf16.vlgmr.msra.gmra.mxu1 %v1064_v58  ;;  %2182 = vmatmul.mubr.bf16.vlgmr.msra.gmra.mxu0 %v1066_v59  ;;  %v7155_v58 = vld [vmem:[%s9248_s4 + $0x1c0] sm:$0xff]  }
 0x3ad   :  { %6546 = vmatpush3.bf16.msra.mxu1 %v7128_v56  ;;  %6568 = vmatpush3.bf16.msra.mxu0 %v7129_v57  ;;  %v7154_v57 = vld [vmem:[%s9248_s4 + $0x140] sm:$0xff]  }
 0x3ae   :  { %6547 = vmatprep.subr.bf16.mxu1 %v7130_v60  ;;  %6569 = vmatprep.subr.bf16.mxu0 %v7131_v61 }
 0x3b1   :  { %6548 = vmatpush3.bf16.msra.mxu1 %v7132_v62  ;;  %6570 = vmatpush3.bf16.msra.mxu0 %v7133_v63  ;;  %v7156_v63 = vld [vmem:[%s9248_s4 + $0x100] sm:$0xff]  }
 0x3b2   :  { %v836_v8 = vpop.f32.mrf.mxu1  ;;  %v877_v9 = vpop.f32.mrf.mxu0  ;;  %6549 = vmatprep.subr.bf16.mxu1 %v7134_v2  ;;  %6571 = vmatprep.subr.bf16.mxu0 %v7135_v3  ;;  %v7157_v2 = vld [vmem:[%s9248_s4 + $0x180] sm:$0xff]  }
 0x3b3   :  { %v837_v53 = vadd.f32 %v836_v8, %v336_v45  ;;  %v878_v54 = vadd.f32 %v877_v9, %v344_v46  ;;  %v7159_v8 = vld [vmem:[%s9248_s4 + $0x2f8] sm:$0xff]  }
 0x3b4   :  { %v838_v14 = vpop.f32.mrf.mxu1  ;;  %v879_v15 = vpop.f32.mrf.mxu0 }
 0x3b5   :  { %v839_v16 = vadd.f32 %v838_v14, %v340_v4  ;;  %v880_v17 = vadd.f32 %v879_v15, %v348_v5  ;;  %6550 = vmatpush3.bf16.msra.mxu1 %v7136_v6  ;;  %6572 = vmatpush3.bf16.msra.mxu0 %v7137_v7  ;;  %v1052_v3 = vmax.f32 %v837_v53, 0.0  ;;  %v1054_v4 = vmax.f32 %v878_v54, 0.0  ;;  %v7158_v7 = vld [vmem:[%s9248_s4 + $0x278] sm:$0xff]   ;;  %v7178_v54 = vld [vmem:[%s9248_s4 + $0x250] sm:$0xff]  }
 0x3b6   :  { %v840_v20 = vpop.f32.mrf.mxu1  ;;  %v881_v21 = vpop.f32.mrf.mxu0  ;;  %6551 = vmatprep.subr.bf16.mxu1 %v7138_v10  ;;  %6573 = vmatprep.subr.bf16.mxu0 %v7139_v11  ;;  %v7160_v15 = vld [vmem:[%s9248_s4 + $0x238] sm:$0xff]  }
 0x3b7   :  { %v1053_v24 = vmax.f32 %v839_v16, 0.0  ;;  %v1055_v25 = vmax.f32 %v880_v17, 0.0  ;;  %v1068_v16 = vpack.c.bf16 %v1052_v3, %v1052_v3  ;;  %v1070_v17 = vpack.c.bf16 %v1054_v4, %v1054_v4  ;;  %v7162_v20 = vld [vmem:[%s9248_s4 + $0x270] sm:$0xff]   ;;  %v7177_v53 = vld [vmem:[%s9248_s4 + $0x298] sm:$0xff]   ;;  %v7184_v4 = vld [vmem:[%s9248_s4 + $0x208] sm:$0xff]  }
 0x3b8   :  { %v841_v34 = vpop.f32.mrf.mxu1  ;;  %v882_v35 = vpop.f32.mrf.mxu0  ;;  %v7163_v21 = vld [vmem:[%s9248_s4 + $0x2f0] sm:$0xff]   ;;  %v380_v3 = vrot.slane %v8000_v49, %v7927_v1 }
 0x3b9   :  { %v1069_v36 = vpack.c.bf16 %v1053_v24, %v1053_v24  ;;  %v1071_v37 = vpack.c.bf16 %v1055_v25, %v1055_v25  ;;  %6552 = vmatpush3.bf16.msra.mxu1 %v7140_v18  ;;  %6574 = vmatpush3.bf16.msra.mxu0 %v7141_v19  ;;  %v7161_v18 = vld [vmem:[%s9248_s4 + $0x2b8] sm:$0xff]   ;;  %v7165_v24 = vld [vmem:[%s9248_s4 + $0x2b0] sm:$0xff]   ;;  %v7166_v25 = vld [vmem:[%s9248_s4 + $0x268] sm:$0xff]  }
 0x3ba   :  { %6553 = vmatprep.subr.bf16.mxu1 %v7142_v22  ;;  %6575 = vmatprep.subr.bf16.mxu0 %v7143_v23  ;;  %v7164_v23 = vld [vmem:[%s9248_s4 + $0x230] sm:$0xff]   ;;  %v7167_v34 = vld [vmem:[%s9248_s4 + $0x2e8] sm:$0xff]  }
 0x3bb   :  { %2221 = vmatprep.mubr.bf16.mxu1 %v1069_v36  ;;  %2261 = vmatprep.mubr.bf16.mxu0 %v1071_v37  ;;  %v7168_v35 = vld [vmem:[%s9248_s4 + $0x228] sm:$0xff]  }
 0x3bd   :  { %6554 = vmatpush3.bf16.msra.mxu1 %v7144_v38  ;;  %6576 = vmatpush3.bf16.msra.mxu0 %v7145_v39  ;;  %v7169_v38 = vld [vmem:[%s9248_s4 + $0x2a8] sm:$0xff]   ;;  %v7170_v39 = vld [vmem:[%s9248_s4 + $0x260] sm:$0xff]  }
 0x3be   :  { %6555 = vmatprep.subr.bf16.mxu1 %v7146_v42  ;;  %6577 = vmatprep.subr.bf16.mxu0 %v7147_v43  ;;  %v7171_v42 = vld [vmem:[%s9248_s4 + $0x2e0] sm:$0xff]  }
 0x3c1   :  { %6556 = vmatpush3.bf16.msra.mxu1 %v7148_v44  ;;  %6578 = vmatpush3.bf16.msra.mxu0 %v7149_v27  ;;  %v7172_v27 = vld [vmem:[%s9248_s4 + $0x220] sm:$0xff]  }
 0x3c2   :  { %v8012_v55 = vpop.f32.mrf.mxu1  ;;  %v8014_v56 = vpop.f32.mrf.mxu0  ;;  %6557 = vmatprep.subr.bf16.mxu1 %v7150_v47  ;;  %6579 = vmatprep.subr.bf16.mxu0 %v7151_v48  ;;  %v7173_v47 = vld [vmem:[%s9248_s4 + $0x2a0] sm:$0xff]   ;;  %v7174_v48 = vld [vmem:[%s9248_s4 + $0x258] sm:$0xff]  }
 0x3c4   :  { %v920_v59 = vpop.f32.mrf.mxu1  ;;  %v961_v60 = vpop.f32.mrf.mxu0 }
 0x3c5   :  { %v921_v61 = vadd.f32 %v920_v59, %v356_v30  ;;  %v962_v62 = vadd.f32 %v961_v60, %v364_v50  ;;  %6558 = vmatpush3.bf16.msra.mxu1 %v7152_v51  ;;  %6580 = vmatpush3.bf16.msra.mxu0 %v7153_v52  ;;  %v7175_v30 = vld [vmem:[%s9248_s4 + $0x2d8] sm:$0xff]   ;;  %v352_v59 = vrot.slane %v8000_v49, %v7881_v28  ;;  %v7181_v60 = vld [vmem:[%s9248_s4 + $0x290] sm:$0xff]  }
 0x3c6   :  { %v922_v5 = vpop.f32.mrf.mxu1  ;;  %v963_v6 = vpop.f32.mrf.mxu0  ;;  %6559 = vmatprep.subr.bf16.mxu1 %v7154_v57  ;;  %6581 = vmatprep.subr.bf16.mxu0 %v7155_v58  ;;  %v7176_v52 = vld [vmem:[%s9248_s4 + $0x218] sm:$0xff]   ;;  %v7179_v57 = vld [vmem:[%s9248_s4 + $0x2d0] sm:$0xff]  }
 0x3c7   :  { %v1057_v9 = vmax.f32 %v921_v61, 0.0  ;;  %v1059_v10 = vmax.f32 %v962_v62, 0.0  ;;  %v7180_v58 = vld [vmem:[%s9248_s4 + $0x210] sm:$0xff]   ;;  %v7182_v61 = vld [vmem:[%s9248_s4 + $0x248] sm:$0xff]   ;;  %v360_v62 = vrot.slane %v8000_v49, %v7884_v29  ;;  %v919_v5 = vadd.f32 %v8012_v55, %v352_v59  ;;  %v7188_v55 = vld [vmem:[%s9248_s4 + $0x200] sm:$0xff]  }
 0x3c8   :  { %v923_v11 = vpop.f32.mrf.mxu1  ;;  %v964_v14 = vpop.f32.mrf.mxu0  ;;  %v7185_v6 = vld [vmem:[%s9248_s4 + $0x288] sm:$0xff]   ;;  %v7213_v59 = vld [vmem:[%s9248_s4 + $0x390] sm:$0xff]  }
 0x3c9   :  { %6560 = vmatpush3.bf16.msra.mxu1 %v7156_v63  ;;  %6582 = vmatpush3.bf16.msra.mxu0 %v7157_v2  ;;  %v1073_v19 = vpack.c.bf16 %v1057_v9, %v1057_v9  ;;  %v1075_v22 = vpack.c.bf16 %v1059_v10, %v1059_v10  ;;  %v7183_v63 = vld [vmem:[%s9248_s4 + $0x2c8] sm:$0xff]   ;;  %v372_v2 = vrot.slane %v8000_v49, %v7924_v31  ;;  %v7187_v9 = vld [vmem:[%s9248_s4 + $0x2c0] sm:$0xff]   ;;  %v1056_v14 = vmax.f32 %v919_v5, 0.0 }
 0x3ca   :  { %6589 = vmatprep.subr.bf16.mxu1 %v7158_v7  ;;  %6611 = vmatprep.subr.bf16.mxu0 %v7159_v8  ;;  %v7186_v7 = vld [vmem:[%s9248_s4 + $0x240] sm:$0xff]   ;;  %v960_v8 = vadd.f32 %v8014_v56, %v360_v62  ;;  %v7190_v56 = vld [vmem:[%s9248_s4 + $0x378] sm:$0xff]   ;;  %v7215_v62 = vld [vmem:[%s9248_s4 + $0x3c8] sm:$0xff]  }
 0x3cb   :  { %v7219_v5 = vld [vmem:[%s9248_s4 + $0x3c0] sm:$0xff]  }
 0x3cc   :  { %2222 = vmatmul.mubr.bf16.vlgmr.msra.gmra.mxu1 %v1068_v16  ;;  %2262 = vmatmul.mubr.bf16.vlgmr.msra.gmra.mxu0 %v1070_v17  ;;  %v1058_v16 = vmax.f32 %v960_v8, 0.0  ;;  %v7191_v17 = vld [vmem:[%s9248_s4 + $0x3f8] sm:$0xff]  }
 0x3cd   :  { %6590 = vmatpush3.bf16.msra.mxu1 %v7160_v15  ;;  %2301 = vmatprep.mubr.bf16.mxu1 %v1073_v19  ;;  %v7189_v15 = vld [vmem:[%s9248_s4 + $0x280] sm:$0xff]  }
 0x3ce   :  { %6612 = vmatpush3.bf16.msra.mxu0 %v7161_v18  ;;  %2341 = vmatprep.mubr.bf16.mxu0 %v1075_v22  ;;  %v7193_v22 = vld [vmem:[%s9248_s4 + $0x3b8] sm:$0xff]  }
 0x3cf   :  { %6591 = vmatprep.subr.bf16.mxu1 %v7162_v20  ;;  %6613 = vmatprep.subr.bf16.mxu0 %v7163_v21  ;;  %v7192_v20 = vld [vmem:[%s9248_s4 + $0x338] sm:$0xff]   ;;  %v1072_v21 = vpack.c.bf16 %v1056_v14, %v1056_v14 }
 0x3d1   :  { %6592 = vmatpush3.bf16.msra.mxu1 %v7164_v23  ;;  %v1074_v23 = vpack.c.bf16 %v1058_v16, %v1058_v16 }
 0x3d2   :  { %6614 = vmatpush3.bf16.msra.mxu0 %v7165_v24  ;;  %v8061_v36 = vpop.f32.mrf.mxu1  ;;  %v8063_v37 = vpop.f32.mrf.mxu0  ;;  %6593 = vmatprep.subr.bf16.mxu1 %v7166_v25  ;;  %v7194_v24 = vld [vmem:[%s9248_s4 + $0x370] sm:$0xff]  }
 0x3d3   :  { %6615 = vmatprep.subr.bf16.mxu0 %v7167_v34  ;;  %v7195_v34 = vld [vmem:[%s9248_s4 + $0x3f0] sm:$0xff]  }
 0x3d4   :  { %v1002_v43 = vpop.f32.mrf.mxu1  ;;  %v1043_v44 = vpop.f32.mrf.mxu0 }
 0x3d5   :  { %6594 = vmatpush3.bf16.msra.mxu1 %v7168_v35  ;;  %v1003_v10 = vadd.f32 %v1002_v43, %v372_v2  ;;  %v1044_v11 = vadd.f32 %v1043_v44, %v380_v3  ;;  %v7199_v43 = vld [vmem:[%s9248_s4 + $0x3e8] sm:$0xff]  }
 0x3d6   :  { %6616 = vmatpush3.bf16.msra.mxu0 %v7169_v38  ;;  %v1004_v45 = vpop.f32.mrf.mxu1  ;;  %v1045_v46 = vpop.f32.mrf.mxu0  ;;  %6595 = vmatprep.subr.bf16.mxu1 %v7170_v39  ;;  %v7196_v38 = vld [vmem:[%s9248_s4 + $0x330] sm:$0xff]   ;;  %v7200_v44 = vld [vmem:[%s9248_s4 + $0x328] sm:$0xff]  }
 0x3d7   :  { %6617 = vmatprep.subr.bf16.mxu0 %v7171_v42  ;;  %v1061_v18 = vmax.f32 %v1003_v10, 0.0  ;;  %v1063_v19 = vmax.f32 %v1044_v11, 0.0  ;;  %v7197_v39 = vld [vmem:[%s9248_s4 + $0x3b0] sm:$0xff]   ;;  %v7198_v42 = vld [vmem:[%s9248_s4 + $0x368] sm:$0xff]   ;;  %v7202_v45 = vld [vmem:[%s9248_s4 + $0x360] sm:$0xff]  }
 0x3d8   :  { %v1005_v50 = vpop.f32.mrf.mxu1  ;;  %v1046_v51 = vpop.f32.mrf.mxu0  ;;  %v7203_v46 = vld [vmem:[%s9248_s4 + $0x3e0] sm:$0xff]   ;;  %v7217_v3 = vld [vmem:[%s9248_s4 + $0x388] sm:$0xff]  }
 0x3d9   :  { %6596 = vmatpush3.bf16.msra.mxu1 %v7172_v27  ;;  %v1077_v25 = vpack.c.bf16 %v1061_v18, %v1061_v18  ;;  %v1079_v35 = vpack.c.bf16 %v1063_v19, %v1063_v19  ;;  %v7201_v27 = vld [vmem:[%s9248_s4 + $0x3a8] sm:$0xff]   ;;  %v7207_v50 = vld [vmem:[%s9248_s4 + $0x3d8] sm:$0xff]  }
 0x3da   :  { %6618 = vmatpush3.bf16.msra.mxu0 %v7173_v47  ;;  %6597 = vmatprep.subr.bf16.mxu1 %v7174_v48  ;;  %v7204_v47 = vld [vmem:[%s9248_s4 + $0x320] sm:$0xff]   ;;  %v7208_v51 = vld [vmem:[%s9248_s4 + $0x318] sm:$0xff]  }
 0x3db   :  { %6619 = vmatprep.subr.bf16.mxu0 %v7175_v30  ;;  %v7205_v48 = vld [vmem:[%s9248_s4 + $0x3a0] sm:$0xff]   ;;  %v7206_v30 = vld [vmem:[%s9248_s4 + $0x358] sm:$0xff]  }
 0x3dd   :  { %6598 = vmatpush3.bf16.msra.mxu1 %v7176_v52  ;;  %v7209_v52 = vld [vmem:[%s9248_s4 + $0x398] sm:$0xff]  }
 0x3de   :  { %6620 = vmatpush3.bf16.msra.mxu0 %v7177_v53  ;;  %6599 = vmatprep.subr.bf16.mxu1 %v7178_v54  ;;  %v7210_v53 = vld [vmem:[%s9248_s4 + $0x350] sm:$0xff]  }
 0x3df   :  { %6621 = vmatprep.subr.bf16.mxu0 %v7179_v57  ;;  %v7211_v54 = vld [vmem:[%s9248_s4 + $0x3d0] sm:$0xff]  }
 0x3e0   :  { %v7212_v57 = vld [vmem:[%s9248_s4 + $0x310] sm:$0xff]  }
 0x3e1   :  { %6600 = vmatpush3.bf16.msra.mxu1 %v7180_v58  ;;  %v368_v58 = vrot.slane %v8000_v49, %v7970_v40 }
 0x3e2   :  { %6622 = vmatpush3.bf16.msra.mxu0 %v7181_v60  ;;  %6601 = vmatprep.subr.bf16.mxu1 %v7182_v61  ;;  %v7214_v60 = vld [vmem:[%s9248_s4 + $0x348] sm:$0xff]   ;;  %v376_v61 = vrot.slane %v8000_v49, %v7973_v41  ;;  %v7218_v49 = vld [vmem:[%s9248_s4 + $0x340] sm:$0xff]  }
 0x3e3   :  { %6623 = vmatprep.subr.bf16.mxu0 %v7183_v63  ;;  %v7216_v63 = vld [vmem:[%s9248_s4 + $0x308] sm:$0xff]   ;;  %v1001_v2 = vadd.f32 %v8061_v36, %v368_v58  ;;  %v7220_v36 = vld [vmem:[%s9248_s4 + $0x300] sm:$0xff]  }
 0x3e5   :  { %6602 = vmatpush3.bf16.msra.mxu1 %v7184_v4  ;;  %v1042_v4 = vadd.f32 %v8063_v37, %v376_v61 }
 0x3e6   :  { %6624 = vmatpush3.bf16.msra.mxu0 %v7185_v6  ;;  %6603 = vmatprep.subr.bf16.mxu1 %v7186_v7  ;;  %v1060_v6 = vmax.f32 %v1001_v2, 0.0  ;;  %v7221_v7 = vld [vmem:[%s9248_s4 + $0x380] sm:$0xff]  }
 0x3e7   :  { %6625 = vmatprep.subr.bf16.mxu0 %v7187_v9  ;;  %v1062_v8 = vmax.f32 %v1042_v4, 0.0 }
 0x3e8   :  { %v1076_v37 = vpack.c.bf16 %v1060_v6, %v1060_v6 }
 0x3e9   :  { %6604 = vmatpush3.bf16.msra.mxu1 %v7188_v55  ;;  %v1078_v9 = vpack.c.bf16 %v1062_v8, %v1062_v8  ;;  %v5747_v55 = vld [vmem:[%s9246_s6 + $0x4] ss:$0 sm:$0xff] }
 0x3ea   :  { %6626 = vmatpush3.bf16.msra.mxu0 %v7189_v15  ;;  %6633 = vmatprep.subr.bf16.mxu1 %v7190_v56 }
 0x3eb   :  { %6655 = vmatprep.subr.bf16.mxu0 %v7191_v17 }
 0x3ec   :  { %2302 = vmatmul.mubr.bf16.vlgmr.msra.gmra.mxu1 %v1072_v21 }
 0x3ed   :  { %2342 = vmatmul.mubr.bf16.vlgmr.msra.gmra.mxu0 %v1074_v23  ;;  %6634 = vmatpush3.bf16.msra.mxu1 %v7192_v20 }
 0x3ee   :  { %2381 = vmatprep.mubr.bf16.mxu1 %v1077_v25  ;;  %6656 = vmatpush3.bf16.msra.mxu0 %v7193_v22 }
 0x3ef   :  { %2421 = vmatprep.mubr.bf16.mxu0 %v1079_v35  ;;  %6635 = vmatprep.subr.bf16.mxu1 %v7194_v24 }
 0x3f0   :  { %6657 = vmatprep.subr.bf16.mxu0 %v7195_v34 }
 0x3f1   :  { %6636 = vmatpush3.bf16.msra.mxu1 %v7196_v38 }
 0x3f2   :  { %6658 = vmatpush3.bf16.msra.mxu0 %v7197_v39  ;;  %6637 = vmatprep.subr.bf16.mxu1 %v7198_v42 }
 0x3f3   :  { %6659 = vmatprep.subr.bf16.mxu0 %v7199_v43 }
 0x3f5   :  { %6638 = vmatpush3.bf16.msra.mxu1 %v7200_v44 }
 0x3f6   :  { %6660 = vmatpush3.bf16.msra.mxu0 %v7201_v27  ;;  %6639 = vmatprep.subr.bf16.mxu1 %v7202_v45 }
 0x3f7   :  { %6661 = vmatprep.subr.bf16.mxu0 %v7203_v46 }
 0x3f9   :  { %6640 = vmatpush3.bf16.msra.mxu1 %v7204_v47 }
 0x3fa   :  { %6662 = vmatpush3.bf16.msra.mxu0 %v7205_v48  ;;  %6641 = vmatprep.subr.bf16.mxu1 %v7206_v30 }
 0x3fb   :  { %6663 = vmatprep.subr.bf16.mxu0 %v7207_v50 }
 0x3fd   :  { %6642 = vmatpush3.bf16.msra.mxu1 %v7208_v51 }
 0x3fe   :  { %6664 = vmatpush3.bf16.msra.mxu0 %v7209_v52  ;;  %6643 = vmatprep.subr.bf16.mxu1 %v7210_v53 }
 0x3ff   :  { %6665 = vmatprep.subr.bf16.mxu0 %v7211_v54 }
 0x401   :  { %6644 = vmatpush3.bf16.msra.mxu1 %v7212_v57 }
 0x402   :  { %6666 = vmatpush3.bf16.msra.mxu0 %v7213_v59  ;;  %6645 = vmatprep.subr.bf16.mxu1 %v7214_v60 }
 0x403   :  { %6667 = vmatprep.subr.bf16.mxu0 %v7215_v62 }
 0x405   :  { %6646 = vmatpush3.bf16.msra.mxu1 %v7216_v63 }
 0x406   :  { %6668 = vmatpush3.bf16.msra.mxu0 %v7217_v3  ;;  %6647 = vmatprep.subr.bf16.mxu1 %v7218_v49 }
 0x407   :  { %6669 = vmatprep.subr.bf16.mxu0 %v7219_v5 }
 0x409   :  { %6648 = vmatpush3.bf16.msra.mxu1 %v7220_v36 }
 0x40a   :  { %6670 = vmatpush3.bf16.msra.mxu0 %v7221_v7  ;;  %6975 = vmatprep.subr.bf16.mxu1 %v7433_v0 }
 0x40c   :  { %2382 = vmatmul.mubr.bf16.vlgmr.msra.gmra.mxu1 %v1076_v37 }
 0x40d   :  { %2422 = vmatmul.mubr.bf16.vlgmr.msra.gmra.mxu0 %v1078_v9  ;;  %6983 = vmatprep.mubr.msk.bf16.mxu1 %vm7434_vm0, %v7433_v0 }
 0x40e   :  { %3069 = vmatprep.mubr.bf16.mxu0 %v7435_v12 }
 0x46c   :  { %v6517_v10 = vpop.f32.mrf.mxu1  ;;  %v6539_v11 = vpop.f32.mrf.mxu0 }
 0x46e   :  { %v6518_v14 = vpop.f32.mrf.mxu1  ;;  %v6540_v15 = vpop.f32.mrf.mxu0 }
 0x46f   :  { %v6519_v56 = vadd.f32 %v6518_v14, %v6517_v10  ;;  %v6541_v16 = vadd.f32 %v6540_v15, %v6539_v11  ;;  %v7222_v15 = vld [vmem:[%s9244_s1 + $0x78] sm:$0xff]  }
 0x470   :  { %v6520_v17 = vpop.f32.mrf.mxu1  ;;  %v6542_v18 = vpop.f32.mrf.mxu0  ;;  %6976 = vmatpush3.bf16.msra.mxu1 %v7222_v15  ;;  %v5887_v15 = vld [vmem:[%s9247_s3 + $0x208] sm:$0xff] }
 0x471   :  { %v2144_v19 = vadd.f32 %v6519_v56, %v5747_v55  ;;  %6977 = vmatprep.subr.bf16.mxu1 %v7433_v0  ;;  %v7224_v56 = vld [vmem:[%s9244_s1 + $0x68] sm:$0xff]  }
 0x472   :  { %v6521_v20 = vpop.f32.mrf.mxu1  ;;  %v6543_v21 = vpop.f32.mrf.mxu0 }
 0x473   :  { %v2184_v22 = vadd.f32 %v6541_v16, %v2144_v19  ;;  %v7225_v16 = vld [vmem:[%s9244_s1 + $0x60] sm:$0xff]  }
 0x474   :  { %v5876_v21 = vld [vmem:[%s9246_s6 + $0x5] ss:$0 sm:$0xff] }
 0x48c   :  { %v6561_v23 = vpop.f32.mrf.mxu1  ;;  %v6583_v24 = vpop.f32.mrf.mxu0 }
 0x48e   :  { %v6562_v25 = vpop.f32.mrf.mxu1  ;;  %v6584_v34 = vpop.f32.mrf.mxu0 }
 0x48f   :  { %v6563_v50 = vadd.f32 %v6562_v25, %v6561_v23  ;;  %v6585_v52 = vadd.f32 %v6584_v34, %v6583_v24  ;;  %v5877_v23 = vld [vmem:[%s9246_s6 + $0x6] ss:$0 sm:$0xff] }
 0x490   :  { %v6564_v35 = vpop.f32.mrf.mxu1  ;;  %v6586_v38 = vpop.f32.mrf.mxu0 }
 0x491   :  { %v2224_v51 = vadd.f32 %v6563_v50, %v2184_v22  ;;  %v5878_v35 = vld [vmem:[%s9246_s6 + $0x7] ss:$0 sm:$0xff] }
 0x492   :  { %v6565_v39 = vpop.f32.mrf.mxu1  ;;  %v6587_v42 = vpop.f32.mrf.mxu0 }
 0x493   :  { %v2264_v54 = vadd.f32 %v6585_v52, %v2224_v51  ;;  %v5934_v51 = vld [vmem:[%s9247_s3 + $0x380] sm:$0xff] }
 0x494   :  { %v5942_v52 = vld [vmem:[%s9247_s3 + $0x3c0] sm:$0xff] }
 0x4ac   :  { %v6605_v43 = vpop.f32.mrf.mxu1 }
 0x4ad   :  { %v6627_v44 = vpop.f32.mrf.mxu0 }
 0x4ae   :  { %v6606_v27 = vpop.f32.mrf.mxu1 }
 0x4af   :  { %v6628_v45 = vpop.f32.mrf.mxu0  ;;  %v6607_v53 = vadd.f32 %v6606_v27, %v6605_v43 }
 0x4b0   :  { %v6608_v46 = vpop.f32.mrf.mxu1  ;;  %v6629_v59 = vadd.f32 %v6628_v45, %v6627_v44 }
 0x4b1   :  { %v6630_v47 = vpop.f32.mrf.mxu0  ;;  %v2304_v57 = vadd.f32 %v6607_v53, %v2264_v54  ;;  %v5935_v53 = vld [vmem:[%s9247_s3 + $0x388] sm:$0xff]  ;;  %v6001_v54 = vcombine.high %v5934_v51, %v5942_v52 }
 0x4b2   :  { %v6609_v48 = vpop.f32.mrf.mxu1 }
 0x4b3   :  { %v6631_v30 = vpop.f32.mrf.mxu0  ;;  %v2344_v62 = vadd.f32 %v6629_v59, %v2304_v57  ;;  %v5943_v57 = vld [vmem:[%s9247_s3 + $0x3c8] sm:$0xff]  ;;  %3045 = vmatprep.subr.bf16.mxu0 %v6001_v54  ;;  %v5904_v54 = vld [vmem:[%s9247_s3 + $0x290] sm:$0xff] }
 0x4b4   :  { %v6002_v59 = vcombine.low %v5935_v53, %v5943_v57 }
 0x4cc   :  { %v6649_v58 = vpop.f32.mrf.mxu1 }
 0x4cd   :  { %v6671_v60 = vpop.f32.mrf.mxu0 }
 0x4ce   :  { %v6650_v61 = vpop.f32.mrf.mxu1 }
 0x4cf   :  { %v6651_v63 = vadd.f32 %v6650_v61, %v6649_v58  ;;  %v6672_v2 = vpop.f32.mrf.mxu0  ;;  %v6000_v58 = vcombine.low %v5934_v51, %v5942_v52  ;;  %v5918_v61 = vld [vmem:[%s9247_s3 + $0x300] sm:$0xff] }
 0x4d0   :  { %v6652_v3 = vpop.f32.mrf.mxu1  ;;  %v6673_v4 = vadd.f32 %v6672_v2, %v6671_v60  ;;  %v6003_v60 = vcombine.high %v5935_v53, %v5943_v57  ;;  %v5912_v57 = vld [vmem:[%s9247_s3 + $0x2d0] sm:$0xff] }
 0x4d1   :  { %v2384_v49 = vadd.f32 %v6651_v63, %v2344_v62  ;;  %v6674_v5 = vpop.f32.mrf.mxu0  ;;  %3046 = vmatpush1.bf16.msra.mxu0 %v6000_v58  ;;  %v5926_v62 = vld [vmem:[%s9247_s3 + $0x340] sm:$0xff]  ;;  %v5919_v63 = vld [vmem:[%s9247_s3 + $0x308] sm:$0xff]  ;;  %v5905_v58 = vld [vmem:[%s9247_s3 + $0x298] sm:$0xff] }
 0x4d2   :  { %v6653_v36 = vpop.f32.mrf.mxu1  ;;  %v5985_v2 = vcombine.high %v5918_v61, %v5926_v62  ;;  %v5927_v3 = vld [vmem:[%s9247_s3 + $0x348] sm:$0xff] }
 0x4d3   :  { %v2424_v6 = vadd.f32 %v6673_v4, %v2384_v49  ;;  %v6675_v7 = vpop.f32.mrf.mxu0  ;;  %v5984_v49 = vcombine.low %v5918_v61, %v5926_v62  ;;  %v5986_v4 = vcombine.low %v5919_v63, %v5927_v3  ;;  %v5987_v5 = vcombine.high %v5919_v63, %v5927_v3  ;;  %v5902_v36 = vld [vmem:[%s9247_s3 + $0x280] sm:$0xff]  ;;  %v5896_v3 = vld [vmem:[%s9247_s3 + $0x250] sm:$0xff] }
 0x4d4   :  { %3047 = vmatprep.subr.bf16.mxu0 %v5985_v2  ;;  %v5903_v7 = vld [vmem:[%s9247_s3 + $0x288] sm:$0xff]  ;;  %v5973_v62 = vcombine.high %v5904_v54, %v5912_v57  ;;  %v5888_v2 = vld [vmem:[%s9247_s3 + $0x210] sm:$0xff] }
 0x4d5   :  { %v2429_v8 = vadd.f32 %v2424_v6, %v7628_v26  ;;  %v7223_v26 = vld [vmem:[%s9244_s1 + $0x70] sm:$0xff]   ;;  %3048 = vmatpush1.bf16.msra.mxu0 %v5984_v49  ;;  %v5910_v6 = vld [vmem:[%s9247_s3 + $0x2c0] sm:$0xff]  ;;  %v5889_v49 = vld [vmem:[%s9247_s3 + $0x218] sm:$0xff] }
 0x4d6   :  { %6978 = vmatpush3.bf16.msra.mxu1 %v7223_v26 }
 0x4d7   :  { %v2432_v37 = vsel %vm176_vm1, %v2429_v8, 0.0  ;;  %6979 = vmatprep.subr.bf16.mxu1 %v7433_v0 }
 0x4d8   :  { %2433 = vadd.xlane.f32.xlu1 %v2432_v37  ;;  %v5911_v37 = vld [vmem:[%s9247_s3 + $0x2c8] sm:$0xff] }
 0x4da   :  { %6980 = vmatpush3.bf16.msra.mxu1 %v7224_v56  ;;  %v5895_v56 = vld [vmem:[%s9247_s3 + $0x248] sm:$0xff] }
 0x4db   :  { %6981 = vmatprep.subr.bf16.mxu1 %v7433_v0 }
 0x4de   :  { %6982 = vmatpush3.bf16.msra.mxu1 %v7225_v16 }
 0x4df   :  { %3086 = vmatprep.subr.bf16.mxu1 %v6003_v60 }
 0x561   :  { %v2434_v9 = vpop.xlane.xlu1 %2433 }
 0x562   :  { %v2435_v10 = vmul.f32 0.015625, %v2434_v9  ;;  %v5968_v9 = vcombine.low %v5902_v36, %v5910_v6 }
 0x564   :  { %v2436_v11 = vsub.f32 %v2429_v8, %v2435_v10  ;;  %v5969_v8 = vcombine.high %v5902_v36, %v5910_v6  ;;  %v5970_v10 = vcombine.low %v5903_v7, %v5911_v37  ;;  %v5957_v6 = vcombine.high %v5888_v2, %v5896_v3 }
 0x566   :  { %v2437_v55 = vmul.f32 %v2436_v11, %v2436_v11  ;;  %3049 = vmatprep.subr.bf16.mxu0 %v5969_v8  ;;  %v5938_v8 = vld [vmem:[%s9247_s3 + $0x3a0] sm:$0xff] }
 0x567   :  { %3050 = vmatpush1.bf16.msra.mxu0 %v5968_v9  ;;  %v5939_v9 = vld [vmem:[%s9247_s3 + $0x3a8] sm:$0xff] }
 0x568   :  { %v2438_v14 = vsel %vm176_vm1, %v2437_v55, 0.0  ;;  %v5886_v55 = vld [vmem:[%s9247_s3 + $0x200] sm:$0xff] }
 0x569   :  { %2439 = vadd.xlane.f32.xlu1 %v2438_v14  ;;  %v5894_v14 = vld [vmem:[%s9247_s3 + $0x240] sm:$0xff] }
 0x56a   :  { %v5953_v26 = vcombine.high %v5886_v55, %v5894_v14  ;;  %v5952_v16 = vcombine.low %v5886_v55, %v5894_v14 }
 0x56c   :  { %3051 = vmatprep.subr.bf16.mxu0 %v5953_v26  ;;  %v5922_v26 = vld [vmem:[%s9247_s3 + $0x320] sm:$0xff] }
 0x56d   :  { %3052 = vmatpush1.bf16.msra.mxu0 %v5952_v16  ;;  %v5923_v16 = vld [vmem:[%s9247_s3 + $0x328] sm:$0xff] }
 0x5f2   :  { %v2440_v17 = vpop.xlane.xlu1 %2439 }
 0x5f3   :  { %v2441_v18 = vmul.f32 0.015625, %v2440_v17  ;;  %v5954_v17 = vcombine.low %v5887_v15, %v5895_v56 }
 0x5f5   :  { %v2442_v19 = vadd.f32 1e-05, %v2441_v18  ;;  %v5955_v18 = vcombine.high %v5887_v15, %v5895_v56  ;;  %v5930_v56 = vld [vmem:[%s9247_s3 + $0x360] sm:$0xff] }
 0x5f7   :  { %7424 = vrsqrt.f32 %v2442_v19  ;;  %v5936_v19 = vld [vmem:[%s9247_s3 + $0x390] sm:$0xff] }
 0x604   :  { %v7425_v20 = vpop.eup %7424 }
 0x605   :  { %v2444_v22 = vmul.f32 %v7425_v20, %v2436_v11  ;;  %v5971_v11 = vcombine.high %v5903_v7, %v5911_v37  ;;  %v5944_v20 = vld [vmem:[%s9247_s3 + $0x3d0] sm:$0xff]  ;;  %v5946_v37 = vld [vmem:[%s9247_s3 + $0x3e0] sm:$0xff] }
 0x606   :  { %v6009_v14 = vcombine.high %v5938_v8, %v5946_v37 }
 0x607   :  { %v2449_v24 = vmul.f32 %v5876_v21, %v2444_v22  ;;  %v5937_v21 = vld [vmem:[%s9247_s3 + $0x398] sm:$0xff]  ;;  %v6004_v22 = vcombine.low %v5936_v19, %v5944_v20 }
 0x609   :  { %v2454_v25 = vadd.f32 %v5877_v23, %v2449_v24  ;;  %v6005_v23 = vcombine.high %v5936_v19, %v5944_v20  ;;  %v5945_v24 = vld [vmem:[%s9247_s3 + $0x3d8] sm:$0xff]  ;;  %v5993_v20 = vcombine.high %v5922_v26, %v5930_v56 }
 0x60b   :  { %v2455_v34 = vpack.c.bf16 %v2454_v25, %v2454_v25  ;;  %3127 = vmatprep.subr.bf16.mxu0 %v6005_v23  ;;  %v5914_v23 = vld [vmem:[%s9247_s3 + $0x2e0] sm:$0xff] }
 0x60d   :  { %6984 = vmatmul.mubr.msk.bf16.vlgmr.msra.gmra.mxu1 %vm176_vm1, %v2455_v34  ;;  %v6007_v34 = vcombine.high %v5937_v21, %v5945_v24 }
 0x60e   :  { %3110 = vmatprep.mubr.bf16.mxu1 %v7435_v12  ;;  %3087 = vmatpush1.bf16.msra.mxu1 %v6002_v59  ;;  %v5913_v59 = vld [vmem:[%s9247_s3 + $0x2d8] sm:$0xff] }
 0x60f   :  { %3088 = vmatprep.subr.bf16.mxu1 %v5987_v5  ;;  %v5975_v63 = vcombine.high %v5905_v58, %v5913_v59  ;;  %v5972_v5 = vcombine.low %v5904_v54, %v5912_v57  ;;  %v5974_v36 = vcombine.low %v5905_v58, %v5913_v59  ;;  %v5949_v54 = vld [vmem:[%s9247_s3 + $0x3f8] sm:$0xff] }
 0x612   :  { %3089 = vmatpush1.bf16.msra.mxu1 %v5986_v4  ;;  %v5897_v4 = vld [vmem:[%s9247_s3 + $0x258] sm:$0xff] }
 0x613   :  { %3090 = vmatprep.subr.bf16.mxu1 %v5971_v11  ;;  %v5959_v7 = vcombine.high %v5889_v49, %v5897_v4  ;;  %v5956_v11 = vcombine.low %v5888_v2, %v5896_v3  ;;  %v5958_v55 = vcombine.low %v5889_v49, %v5897_v4  ;;  %v5933_v2 = vld [vmem:[%s9247_s3 + $0x378] sm:$0xff] }
 0x616   :  { %3091 = vmatpush1.bf16.msra.mxu1 %v5970_v10  ;;  %v5947_v10 = vld [vmem:[%s9247_s3 + $0x3e8] sm:$0xff] }
 0x617   :  { %3092 = vmatprep.subr.bf16.mxu1 %v5955_v18  ;;  %v6011_v15 = vcombine.high %v5939_v9, %v5947_v10  ;;  %v6008_v18 = vcombine.low %v5938_v8, %v5946_v37  ;;  %v6010_v19 = vcombine.low %v5939_v9, %v5947_v10  ;;  %v5917_v8 = vld [vmem:[%s9247_s3 + $0x2f8] sm:$0xff] }
 0x61a   :  { %3093 = vmatpush1.bf16.msra.mxu1 %v5954_v17  ;;  %v5931_v17 = vld [vmem:[%s9247_s3 + $0x368] sm:$0xff] }
 0x61b   :  { %3168 = vmatprep.subr.bf16.mxu1 %v6007_v34  ;;  %v5992_v34 = vcombine.low %v5922_v26, %v5930_v56  ;;  %v5901_v26 = vld [vmem:[%s9247_s3 + $0x278] sm:$0xff] }
 0x6cd   :  { %v2530_v38 = vpop.f32.mrf.mxu1 }
 0x6ce   :  { %v2531_v39 = vadd.f32 %v5878_v35, %v2530_v38 }
 0x6cf   :  { %v6985_v42 = vpop.f32.mrf.mxu1 }
 0x6d0   :  { %v2536_v43 = vadd.f32 %v2531_v39, %v2454_v25  ;;  %v6006_v25 = vcombine.low %v5937_v21, %v5945_v24  ;;  %v5995_v21 = vcombine.high %v5923_v16, %v5931_v17  ;;  %v5907_v24 = vld [vmem:[%s9247_s3 + $0x2a8] sm:$0xff] }
 0x6d1   :  { %v2533_v44 = vpop.f32.mrf.mxu1 }
 0x6d2   :  { %v2539_v27 = vsel %vm176_vm1, %v2536_v43, 0.0 }
 0x6d3   :  { %2540 = vadd.xlane.f32.xlu0 %v2539_v27  ;;  %v6986_v45 = vpop.f32.mrf.mxu1  ;;  %v5885_v27 = vld [vmem:[%s9246_s6 + $0x9] ss:$0 sm:$0xff] }
 0x75c   :  { %v2541_v46 = vpop.xlane.xlu0 %2540 }
 0x75d   :  { %v2542_v47 = vmul.f32 0.015625, %v2541_v46  ;;  %v5920_v46 = vld [vmem:[%s9247_s3 + $0x310] sm:$0xff] }
 0x75f   :  { %v8277_v48 = vsub.f32 %v2536_v43, %v2542_v47  ;;  %v5884_v43 = vld [vmem:[%s9246_s6 + $0x8] ss:$0 sm:$0xff]  ;;  %v5928_v47 = vld [vmem:[%s9247_s3 + $0x350] sm:$0xff] }
 0x760   :  { %v5989_v52 = vcombine.high %v5920_v46, %v5928_v47  ;;  %v5988_v60 = vcombine.low %v5920_v46, %v5928_v47 }
 0x761   :  { %v2544_v30 = vmul.f32 %v8277_v48, %v8277_v48 }
 0x763   :  { %v2545_v50 = vsel %vm176_vm1, %v2544_v30, 0.0  ;;  %v5921_v30 = vld [vmem:[%s9247_s3 + $0x318] sm:$0xff] }
 0x764   :  { %2546 = vadd.xlane.f32.xlu1 %v2545_v50 }
 0x7ed   :  { %v2547_v35 = vpop.xlane.xlu1 %2546 }
 0x7ee   :  { %v2548_v38 = vmul.f32 0.015625, %v2547_v35  ;;  %v5994_v35 = vcombine.low %v5923_v16, %v5931_v17 }
 0x7f0   :  { %v2549_v39 = vadd.f32 1e-05, %v2548_v38 }
 0x7f2   :  { %7426 = vrsqrt.f32 %v2549_v39 }
 0x7ff   :  { %v7427_v42 = vpop.eup %7426 }
 0x800   :  { %v2551_v44 = vmul.f32 %v7427_v42, %v8277_v48  ;;  %v5929_v48 = vld [vmem:[%s9247_s3 + $0x358] sm:$0xff]  ;;  %v5890_v42 = vld [vmem:[%s9247_s3 + $0x220] sm:$0xff] }
 0x801   :  { %v5991_v53 = vcombine.high %v5921_v30, %v5929_v48  ;;  %v5990_v61 = vcombine.low %v5921_v30, %v5929_v48  ;;  %v5940_v48 = vld [vmem:[%s9247_s3 + $0x3b0] sm:$0xff] }
 0x802   :  { %v2556_v45 = vmul.f32 %v5884_v43, %v2551_v44  ;;  %v5898_v43 = vld [vmem:[%s9247_s3 + $0x260] sm:$0xff]  ;;  %v5891_v44 = vld [vmem:[%s9247_s3 + $0x228] sm:$0xff] }
 0x803   :  { %v5961_v47 = vcombine.high %v5890_v42, %v5898_v43  ;;  %v5960_v57 = vcombine.low %v5890_v42, %v5898_v43  ;;  %v7237_v42 = vld [vmem:[%s9248_s4 + $0x4a8] sm:$0xff]   ;;  %v7238_v43 = vld [vmem:[%s9248_s4 + $0x460] sm:$0xff]  }
 0x804   :  { %v8361_v50 = vadd.f32 %v5885_v27, %v2556_v45  ;;  %v5899_v27 = vld [vmem:[%s9247_s3 + $0x268] sm:$0xff] }
 0x805   :  { %v5963_v30 = vcombine.high %v5891_v44, %v5899_v27  ;;  %v5962_v58 = vcombine.low %v5891_v44, %v5899_v27  ;;  %v7239_v44 = vld [vmem:[%s9248_s4 + $0x4e0] sm:$0xff]  }
 0x806   :  { %v8365_v51 = vpack.c.bf16 %v8361_v50, %v8361_v50  ;;  %v7240_v27 = vld [vmem:[%s9248_s4 + $0x420] sm:$0xff]  }
 0x808   :  { %6016 = vmatmul.mubr.msk.bf16.vlgmr.msra.gmra.mxu0 %vm176_vm1, %v8365_v51  ;;  %6017 = vmatmul.mubr.msk.bf16.vlgmr.msra.gmra.mxu1 %vm176_vm1, %v8365_v51 }
 0x809   :  { %3128 = vmatpush1.bf16.msra.mxu0 %v6004_v22  ;;  %3169 = vmatpush1.bf16.msra.mxu1 %v6006_v25  ;;  %v5906_v22 = vld [vmem:[%s9247_s3 + $0x2a0] sm:$0xff]  ;;  %v5915_v25 = vld [vmem:[%s9247_s3 + $0x2e8] sm:$0xff] }
 0x80a   :  { %3129 = vmatprep.subr.bf16.mxu0 %v5989_v52  ;;  %3170 = vmatprep.subr.bf16.mxu1 %v5991_v53  ;;  %v5977_v38 = vcombine.high %v5906_v22, %v5914_v23  ;;  %v5979_v39 = vcombine.high %v5907_v24, %v5915_v25  ;;  %v5976_v45 = vcombine.low %v5906_v22, %v5914_v23  ;;  %v5948_v52 = vld [vmem:[%s9247_s3 + $0x3f0] sm:$0xff]  ;;  %v5941_v53 = vld [vmem:[%s9247_s3 + $0x3b8] sm:$0xff] }
 0x80b   :  { %3151 = vmatprep.mubr.bf16.mxu0 %v7435_v12  ;;  %3192 = vmatprep.mubr.bf16.mxu1 %v7435_v12  ;;  %v5978_v46 = vcombine.low %v5907_v24, %v5915_v25  ;;  %v6013_v59 = vcombine.high %v5940_v48, %v5948_v52  ;;  %v6012_v3 = vcombine.low %v5940_v48, %v5948_v52  ;;  %v7228_v22 = vld [vmem:[%s9248_s4 + $0x438] sm:$0xff]   ;;  %v7230_v24 = vld [vmem:[%s9248_s4 + $0x470] sm:$0xff]  }
 0x80c   :  { %v6014_v49 = vcombine.low %v5941_v53, %v5949_v54  ;;  %v7229_v23 = vld [vmem:[%s9248_s4 + $0x4b8] sm:$0xff]   ;;  %v7231_v25 = vld [vmem:[%s9248_s4 + $0x4f0] sm:$0xff]  }
 0x80d   :  { %3130 = vmatpush1.bf16.msra.mxu0 %v5988_v60  ;;  %3171 = vmatpush1.bf16.msra.mxu1 %v5990_v61  ;;  %v6015_v60 = vcombine.high %v5941_v53, %v5949_v54  ;;  %v5924_v61 = vld [vmem:[%s9247_s3 + $0x330] sm:$0xff]  ;;  %v7245_v48 = vld [vmem:[%s9248_s4 + $0x498] sm:$0xff]  }
 0x80e   :  { %3131 = vmatprep.subr.bf16.mxu0 %v5973_v62  ;;  %3172 = vmatprep.subr.bf16.mxu1 %v5975_v63  ;;  %v5932_v62 = vld [vmem:[%s9247_s3 + $0x370] sm:$0xff]  ;;  %v5925_v63 = vld [vmem:[%s9247_s3 + $0x338] sm:$0xff] }
 0x80f   :  { %v5997_v4 = vcombine.high %v5924_v61, %v5932_v62  ;;  %v5996_v37 = vcombine.low %v5924_v61, %v5932_v62  ;;  %v5998_v9 = vcombine.low %v5925_v63, %v5933_v2  ;;  %v7246_v52 = vld [vmem:[%s9248_s4 + $0x450] sm:$0xff]   ;;  %v7253_v61 = vld [vmem:[%s9248_s4 + $0x488] sm:$0xff]   ;;  %v7254_v62 = vld [vmem:[%s9248_s4 + $0x440] sm:$0xff]  }
 0x810   :  { %v7247_v53 = vld [vmem:[%s9248_s4 + $0x4d0] sm:$0xff]  }
 0x811   :  { %3132 = vmatpush1.bf16.msra.mxu0 %v5972_v5  ;;  %3173 = vmatpush1.bf16.msra.mxu1 %v5974_v36  ;;  %v5999_v5 = vcombine.high %v5925_v63, %v5933_v2  ;;  %v5908_v36 = vld [vmem:[%s9247_s3 + $0x2b0] sm:$0xff]  ;;  %v7255_v63 = vld [vmem:[%s9248_s4 + $0x4c0] sm:$0xff]  }
 0x812   :  { %3133 = vmatprep.subr.bf16.mxu0 %v5957_v6  ;;  %3174 = vmatprep.subr.bf16.mxu1 %v5959_v7  ;;  %v5916_v6 = vld [vmem:[%s9247_s3 + $0x2f0] sm:$0xff]  ;;  %v5909_v7 = vld [vmem:[%s9247_s3 + $0x2b8] sm:$0xff]  ;;  %v7256_v2 = vld [vmem:[%s9248_s4 + $0x400] sm:$0xff]  }
 0x813   :  { %v5981_v10 = vcombine.high %v5908_v36, %v5916_v6  ;;  %v5980_v56 = vcombine.low %v5908_v36, %v5916_v6  ;;  %v5982_v16 = vcombine.low %v5909_v7, %v5917_v8  ;;  %v7248_v54 = vld [vmem:[%s9248_s4 + $0x410] sm:$0xff]  }
 0x815   :  { %3134 = vmatpush1.bf16.msra.mxu0 %v5956_v11  ;;  %3175 = vmatpush1.bf16.msra.mxu1 %v5958_v55  ;;  %v5983_v11 = vcombine.high %v5909_v7, %v5917_v8  ;;  %v5892_v55 = vld [vmem:[%s9247_s3 + $0x230] sm:$0xff] }
 0x816   :  { %3209 = vmatprep.subr.bf16.mxu0 %v6009_v14  ;;  %3250 = vmatprep.subr.bf16.mxu1 %v6011_v15  ;;  %v5900_v14 = vld [vmem:[%s9247_s3 + $0x270] sm:$0xff]  ;;  %v5893_v15 = vld [vmem:[%s9247_s3 + $0x238] sm:$0xff] }
 0x817   :  { %v5965_v17 = vcombine.high %v5892_v55, %v5900_v14 }
 0x818   :  { %6018 = vmatmul.mubr.msk.bf16.vlgmr.msra.gmra.mxu0 %vm176_vm1, %v8365_v51  ;;  %6019 = vmatmul.mubr.msk.bf16.vlgmr.msra.gmra.mxu1 %vm176_vm1, %v8365_v51 }
 0x819   :  { %3210 = vmatpush1.bf16.msra.mxu0 %v6008_v18  ;;  %3251 = vmatpush1.bf16.msra.mxu1 %v6010_v19  ;;  %v5967_v18 = vcombine.high %v5893_v15, %v5901_v26  ;;  %v5964_v19 = vcombine.low %v5892_v55, %v5900_v14 }
 0x81a   :  { %3211 = vmatprep.subr.bf16.mxu0 %v5993_v20  ;;  %3252 = vmatprep.subr.bf16.mxu1 %v5995_v21  ;;  %v5966_v20 = vcombine.low %v5893_v15, %v5901_v26  ;;  %v7226_v21 = vld [vmem:[%s9248_s4 + $0x478] sm:$0xff]  }
 0x81b   :  { %3233 = vmatprep.mubr.bf16.mxu0 %v7435_v12  ;;  %3274 = vmatprep.mubr.bf16.mxu1 %v7435_v12 }
 0x81d   :  { %3212 = vmatpush1.bf16.msra.mxu0 %v5992_v34  ;;  %3253 = vmatpush1.bf16.msra.mxu1 %v5994_v35  ;;  %v7232_v34 = vld [vmem:[%s9248_s4 + $0x430] sm:$0xff]  }
 0x81e   :  { %3213 = vmatprep.subr.bf16.mxu0 %v5977_v38  ;;  %3254 = vmatprep.subr.bf16.mxu1 %v5979_v39  ;;  %v7233_v35 = vld [vmem:[%s9248_s4 + $0x4b0] sm:$0xff]   ;;  %v7234_v38 = vld [vmem:[%s9248_s4 + $0x468] sm:$0xff]  }
 0x81f   :  { %v7236_v39 = vld [vmem:[%s9248_s4 + $0x428] sm:$0xff]  }
 0x821   :  { %3214 = vmatpush1.bf16.msra.mxu0 %v5976_v45  ;;  %3255 = vmatpush1.bf16.msra.mxu1 %v5978_v46  ;;  %v7241_v45 = vld [vmem:[%s9248_s4 + $0x4a0] sm:$0xff]   ;;  %v7242_v46 = vld [vmem:[%s9248_s4 + $0x458] sm:$0xff]  }
 0x822   :  { %3215 = vmatprep.subr.bf16.mxu0 %v5961_v47  ;;  %3256 = vmatprep.subr.bf16.mxu1 %v5963_v30  ;;  %v7243_v47 = vld [vmem:[%s9248_s4 + $0x4d8] sm:$0xff]  }
 0x823   :  { %v7244_v30 = vld [vmem:[%s9248_s4 + $0x418] sm:$0xff]  }
 0x825   :  { %3216 = vmatpush1.bf16.msra.mxu0 %v5960_v57  ;;  %3257 = vmatpush1.bf16.msra.mxu1 %v5962_v58  ;;  %v7249_v57 = vld [vmem:[%s9248_s4 + $0x490] sm:$0xff]   ;;  %v7250_v58 = vld [vmem:[%s9248_s4 + $0x448] sm:$0xff]  }
 0x826   :  { %3291 = vmatprep.subr.bf16.mxu0 %v6013_v59  ;;  %3332 = vmatprep.subr.bf16.mxu1 %v6015_v60  ;;  %v7251_v59 = vld [vmem:[%s9248_s4 + $0x4c8] sm:$0xff]  }
 0x827   :  { %v7252_v60 = vld [vmem:[%s9248_s4 + $0x408] sm:$0xff]  }
 0x828   :  { %6020 = vmatmul.mubr.msk.bf16.vlgmr.msra.gmra.mxu0 %vm176_vm1, %v8365_v51  ;;  %6021 = vmatmul.mubr.msk.bf16.vlgmr.msra.gmra.mxu1 %vm176_vm1, %v8365_v51 }
 0x829   :  { %3292 = vmatpush1.bf16.msra.mxu0 %v6012_v3  ;;  %3333 = vmatpush1.bf16.msra.mxu1 %v6014_v49  ;;  %v7257_v3 = vld [vmem:[%s9248_s4 + $0x480] sm:$0xff]   ;;  %v7258_v49 = vld [vmem:[%s9248_s4 + $0x578] sm:$0xff]  }
 0x82a   :  { %3293 = vmatprep.subr.bf16.mxu0 %v5997_v4  ;;  %3334 = vmatprep.subr.bf16.mxu1 %v5999_v5  ;;  %v7259_v4 = vld [vmem:[%s9248_s4 + $0x5f8] sm:$0xff]   ;;  %v8614_v5 = vld [vmem:[%s9249_s5 + $0x1] ss:$2 sm:$0xff] }
 0x82b   :  { %3315 = vmatprep.mubr.bf16.mxu0 %v7435_v12  ;;  %3356 = vmatprep.mubr.bf16.mxu1 %v7435_v12  ;;  %v7227_v12 = vld [vmem:[%s9248_s4 + $0x4f8] sm:$0xff]   ;;  %v2637_v36 = vrot.slane %v8614_v5, %v7881_v28  ;;  %v2645_v6 = vrot.slane %v8614_v5, %v7884_v29  ;;  %v2641_v7 = vrot.slane %v8614_v5, %v7892_v32 }
 0x82c   :  { %v2649_v8 = vrot.slane %v8614_v5, %v7895_v33 }
 0x82d   :  { %3294 = vmatpush1.bf16.msra.mxu0 %v5996_v37  ;;  %3335 = vmatpush1.bf16.msra.mxu1 %v5998_v9 }
 0x82e   :  { %3295 = vmatprep.subr.bf16.mxu0 %v5981_v10  ;;  %3336 = vmatprep.subr.bf16.mxu1 %v5983_v11 }
 0x831   :  { %3296 = vmatpush1.bf16.msra.mxu0 %v5980_v56  ;;  %3337 = vmatpush1.bf16.msra.mxu1 %v5982_v16 }
 0x832   :  { %3297 = vmatprep.subr.bf16.mxu0 %v5965_v17  ;;  %3338 = vmatprep.subr.bf16.mxu1 %v5967_v18 }
 0x835   :  { %3298 = vmatpush1.bf16.msra.mxu0 %v5964_v19  ;;  %3339 = vmatpush1.bf16.msra.mxu1 %v5966_v20 }
 0x836   :  { %6682 = vmatprep.subr.bf16.mxu0 %v7226_v21  ;;  %6704 = vmatprep.subr.bf16.mxu1 %v7227_v12 }
 0x838   :  { %6022 = vmatmul.mubr.msk.bf16.vlgmr.msra.gmra.mxu0 %vm176_vm1, %v8365_v51  ;;  %6023 = vmatmul.mubr.msk.bf16.vlgmr.msra.gmra.mxu1 %vm176_vm1, %v8365_v51  ;;  %v7235_v51 = vld [vmem:[%s9248_s4 + $0x4e8] sm:$0xff]  }
 0x839   :  { %6683 = vmatpush3.bf16.msra.mxu0 %v7228_v22  ;;  %6705 = vmatpush3.bf16.msra.mxu1 %v7229_v23 }
 0x83a   :  { %6684 = vmatprep.subr.bf16.mxu0 %v7230_v24  ;;  %6706 = vmatprep.subr.bf16.mxu1 %v7231_v25  ;;  %v7260_v24 = vld [vmem:[%s9248_s4 + $0x538] sm:$0xff]  }
 0x83b   :  { %v7261_v25 = vld [vmem:[%s9248_s4 + $0x5b8] sm:$0xff]  }
 0x83d   :  { %6685 = vmatpush3.bf16.msra.mxu0 %v7232_v34  ;;  %6707 = vmatpush3.bf16.msra.mxu1 %v7233_v35 }
 0x83e   :  { %6686 = vmatprep.subr.bf16.mxu0 %v7234_v38  ;;  %6708 = vmatprep.subr.bf16.mxu1 %v7235_v51  ;;  %v7262_v38 = vld [vmem:[%s9248_s4 + $0x570] sm:$0xff]  }
 0x83f   :  { %v7263_v51 = vld [vmem:[%s9248_s4 + $0x5f0] sm:$0xff]  }
 0x841   :  { %6687 = vmatpush3.bf16.msra.mxu0 %v7236_v39  ;;  %6709 = vmatpush3.bf16.msra.mxu1 %v7237_v42  ;;  %v7264_v39 = vld [vmem:[%s9248_s4 + $0x530] sm:$0xff]  }
 0x842   :  { %6688 = vmatprep.subr.bf16.mxu0 %v7238_v43  ;;  %6710 = vmatprep.subr.bf16.mxu1 %v7239_v44  ;;  %v7265_v42 = vld [vmem:[%s9248_s4 + $0x5b0] sm:$0xff]   ;;  %v7266_v43 = vld [vmem:[%s9248_s4 + $0x568] sm:$0xff]  }
 0x843   :  { %v7267_v44 = vld [vmem:[%s9248_s4 + $0x5e8] sm:$0xff]  }
 0x845   :  { %6689 = vmatpush3.bf16.msra.mxu0 %v7240_v27  ;;  %6711 = vmatpush3.bf16.msra.mxu1 %v7241_v45  ;;  %v2657_v27 = vrot.slane %v8614_v5, %v7924_v31  ;;  %v2665_v45 = vrot.slane %v8614_v5, %v7927_v1 }
 0x846   :  { %6690 = vmatprep.subr.bf16.mxu0 %v7242_v46  ;;  %6712 = vmatprep.subr.bf16.mxu1 %v7243_v47  ;;  %v7268_v46 = vld [vmem:[%s9248_s4 + $0x528] sm:$0xff]  }
 0x847   :  { %v7269_v47 = vld [vmem:[%s9248_s4 + $0x5a8] sm:$0xff]  }
 0x849   :  { %6691 = vmatpush3.bf16.msra.mxu0 %v7244_v30  ;;  %6713 = vmatpush3.bf16.msra.mxu1 %v7245_v48 }
 0x84a   :  { %6692 = vmatprep.subr.bf16.mxu0 %v7246_v52  ;;  %6714 = vmatprep.subr.bf16.mxu1 %v7247_v53  ;;  %v7270_v52 = vld [vmem:[%s9248_s4 + $0x560] sm:$0xff]  }
 0x84b   :  { %v7271_v53 = vld [vmem:[%s9248_s4 + $0x5e0] sm:$0xff]  }
 0x84d   :  { %6693 = vmatpush3.bf16.msra.mxu0 %v7248_v54  ;;  %6715 = vmatpush3.bf16.msra.mxu1 %v7249_v57 }
 0x84e   :  { %6694 = vmatprep.subr.bf16.mxu0 %v7250_v58  ;;  %6716 = vmatprep.subr.bf16.mxu1 %v7251_v59 }
 0x851   :  { %6695 = vmatpush3.bf16.msra.mxu0 %v7252_v60  ;;  %6717 = vmatpush3.bf16.msra.mxu1 %v7253_v61  ;;  %v7272_v60 = vld [vmem:[%s9248_s4 + $0x520] sm:$0xff]  }
 0x852   :  { %6696 = vmatprep.subr.bf16.mxu0 %v7254_v62  ;;  %6718 = vmatprep.subr.bf16.mxu1 %v7255_v63  ;;  %v7273_v61 = vld [vmem:[%s9248_s4 + $0x5a0] sm:$0xff]  }
 0x855   :  { %6697 = vmatpush3.bf16.msra.mxu0 %v7256_v2  ;;  %6719 = vmatpush3.bf16.msra.mxu1 %v7257_v3  ;;  %v7274_v2 = vld [vmem:[%s9248_s4 + $0x558] sm:$0xff]  }
 0x856   :  { %6726 = vmatprep.subr.bf16.mxu0 %v7258_v49  ;;  %6748 = vmatprep.subr.bf16.mxu1 %v7259_v4  ;;  %v7275_v3 = vld [vmem:[%s9248_s4 + $0x5d8] sm:$0xff]  }
 0x8c8   :  { %v3071_v37 = vpop.f32.mrf.mxu0  ;;  %v3112_v9 = vpop.f32.mrf.mxu1 }
 0x8c9   :  { %v3072_v10 = vadd.f32 %v3071_v37, %v2637_v36  ;;  %v3113_v11 = vadd.f32 %v3112_v9, %v2645_v6  ;;  %v7276_v37 = vld [vmem:[%s9248_s4 + $0x518] sm:$0xff]  }
 0x8ca   :  { %v3073_v55 = vpop.f32.mrf.mxu0  ;;  %v3114_v14 = vpop.f32.mrf.mxu1  ;;  %v7277_v9 = vld [vmem:[%s9248_s4 + $0x598] sm:$0xff]  }
 0x8cb   :  { %v3074_v15 = vadd.f32 %v3073_v55, %v2641_v7  ;;  %v3115_v26 = vadd.f32 %v3114_v14, %v2649_v8  ;;  %v3365_v56 = vmax.f32 %v3072_v10, 0.0  ;;  %v3367_v16 = vmax.f32 %v3113_v11, 0.0  ;;  %v7278_v10 = vld [vmem:[%s9248_s4 + $0x550] sm:$0xff]  }
 0x8cc   :  { %v3075_v17 = vpop.f32.mrf.mxu0  ;;  %v3116_v18 = vpop.f32.mrf.mxu1  ;;  %v7279_v11 = vld [vmem:[%s9248_s4 + $0x5d0] sm:$0xff]  }
 0x8cd   :  { %v3366_v19 = vmax.f32 %v3074_v15, 0.0  ;;  %v3368_v20 = vmax.f32 %v3115_v26, 0.0  ;;  %v3381_v34 = vpack.c.bf16 %v3365_v56, %v3365_v56  ;;  %v3383_v35 = vpack.c.bf16 %v3367_v16, %v3367_v16  ;;  %v7280_v55 = vld [vmem:[%s9248_s4 + $0x510] sm:$0xff]   ;;  %v7282_v56 = vld [vmem:[%s9248_s4 + $0x548] sm:$0xff]  }
 0x8ce   :  { %v3076_v21 = vpop.f32.mrf.mxu0  ;;  %v3117_v12 = vpop.f32.mrf.mxu1  ;;  %v7281_v14 = vld [vmem:[%s9248_s4 + $0x590] sm:$0xff]   ;;  %v2653_v15 = vrot.slane %v8614_v5, %v7970_v40  ;;  %v2661_v26 = vrot.slane %v8614_v5, %v7973_v41  ;;  %v7283_v16 = vld [vmem:[%s9248_s4 + $0x5c8] sm:$0xff]  }
 0x8cf   :  { %v3382_v22 = vpack.c.bf16 %v3366_v19, %v3366_v19  ;;  %v3384_v23 = vpack.c.bf16 %v3368_v20, %v3368_v20  ;;  %v8707_v17 = vld [vmem:[%s9249_s5 + $0x11] ss:$2 sm:$0xff]  ;;  %v7284_v19 = vld [vmem:[%s9248_s4 + $0x508] sm:$0xff]  }
 0x8d0   :  { %v2673_v5 = vrot.slane %v8707_v17, %v7892_v32  ;;  %v2681_v18 = vrot.slane %v8707_v17, %v7895_v33  ;;  %v7285_v20 = vld [vmem:[%s9248_s4 + $0x588] sm:$0xff]   ;;  %v7286_v32 = vld [vmem:[%s9248_s4 + $0x540] sm:$0xff]  }
 0x8d1   :  { %4459 = vmatprep.mubr.bf16.mxu0 %v3382_v22  ;;  %4499 = vmatprep.mubr.bf16.mxu1 %v3384_v23  ;;  %v7287_v33 = vld [vmem:[%s9248_s4 + $0x5c0] sm:$0xff]  }
 0x8d2   :  { %4460 = vmatmul.mubr.bf16.vlgmr.msra.gmra.mxu0 %v3381_v34  ;;  %4500 = vmatmul.mubr.bf16.vlgmr.msra.gmra.mxu1 %v3383_v35 }
 0x8d3   :  { %6727 = vmatpush3.bf16.msra.mxu0 %v7260_v24  ;;  %6749 = vmatpush3.bf16.msra.mxu1 %v7261_v25 }
 0x8d4   :  { %6728 = vmatprep.subr.bf16.mxu0 %v7262_v38  ;;  %6750 = vmatprep.subr.bf16.mxu1 %v7263_v51  ;;  %v7288_v38 = vld [vmem:[%s9248_s4 + $0x500] sm:$0xff]  }
 0x8d5   :  { %v7289_v51 = vld [vmem:[%s9248_s4 + $0x580] sm:$0xff]  }
 0x8d7   :  { %6729 = vmatpush3.bf16.msra.mxu0 %v7264_v39  ;;  %6751 = vmatpush3.bf16.msra.mxu1 %v7265_v42 }
 0x8d8   :  { %v3153_v30 = vpop.f32.mrf.mxu0  ;;  %v3194_v48 = vpop.f32.mrf.mxu1  ;;  %6730 = vmatprep.subr.bf16.mxu0 %v7266_v43  ;;  %6752 = vmatprep.subr.bf16.mxu1 %v7267_v44 }
 0x8d9   :  { %v3154_v21 = vadd.f32 %v3153_v30, %v2653_v15  ;;  %v3195_v12 = vadd.f32 %v3194_v48, %v2661_v26  ;;  %v7306_v15 = vld [vmem:[%s9248_s4 + $0x658] sm:$0xff]  }
 0x8da   :  { %v3155_v54 = vpop.f32.mrf.mxu0  ;;  %v3196_v57 = vpop.f32.mrf.mxu1  ;;  %v7307_v26 = vld [vmem:[%s9248_s4 + $0x6d8] sm:$0xff]  }
 0x8db   :  { %v3156_v58 = vadd.f32 %v3155_v54, %v2657_v27  ;;  %v3197_v59 = vadd.f32 %v3196_v57, %v2665_v45  ;;  %6731 = vmatpush3.bf16.msra.mxu0 %v7268_v46  ;;  %6753 = vmatpush3.bf16.msra.mxu1 %v7269_v47  ;;  %v3369_v39 = vmax.f32 %v3154_v21, 0.0  ;;  %v3371_v42 = vmax.f32 %v3195_v12, 0.0  ;;  %v7290_v27 = vld [vmem:[%s9248_s4 + $0x678] sm:$0xff]   ;;  %v7312_v21 = vld [vmem:[%s9248_s4 + $0x610] sm:$0xff]  }
 0x8dc   :  { %v3157_v62 = vpop.f32.mrf.mxu0  ;;  %v3198_v63 = vpop.f32.mrf.mxu1  ;;  %6732 = vmatprep.subr.bf16.mxu0 %v7270_v52  ;;  %6754 = vmatprep.subr.bf16.mxu1 %v7271_v53  ;;  %v7291_v45 = vld [vmem:[%s9248_s4 + $0x6f8] sm:$0xff]   ;;  %v2669_v12 = vrot.slane %v8707_v17, %v7881_v28  ;;  %v2689_v28 = vrot.slane %v8707_v17, %v7924_v31  ;;  %v7318_v31 = vld [vmem:[%s9248_s4 + $0x640] sm:$0xff]  }
 0x8dd   :  { %v3370_v49 = vmax.f32 %v3156_v58, 0.0  ;;  %v3372_v4 = vmax.f32 %v3197_v59, 0.0  ;;  %v7292_v52 = vld [vmem:[%s9248_s4 + $0x638] sm:$0xff]   ;;  %v3385_v53 = vpack.c.bf16 %v3369_v39, %v3369_v39  ;;  %v3387_v54 = vpack.c.bf16 %v3371_v42, %v3371_v42  ;;  %v7294_v59 = vld [vmem:[%s9248_s4 + $0x670] sm:$0xff]  }
 0x8de   :  { %v3158_v36 = vpop.f32.mrf.mxu0  ;;  %v3199_v6 = vpop.f32.mrf.mxu1  ;;  %v7293_v57 = vld [vmem:[%s9248_s4 + $0x6b8] sm:$0xff]   ;;  %v7296_v62 = vld [vmem:[%s9248_s4 + $0x630] sm:$0xff]  }
 0x8df   :  { %v3386_v7 = vpack.c.bf16 %v3370_v49, %v3370_v49  ;;  %v3388_v8 = vpack.c.bf16 %v3372_v4, %v3372_v4  ;;  %6733 = vmatpush3.bf16.msra.mxu0 %v7272_v60  ;;  %6755 = vmatpush3.bf16.msra.mxu1 %v7273_v61  ;;  %v7295_v60 = vld [vmem:[%s9248_s4 + $0x6f0] sm:$0xff]   ;;  %v7300_v49 = vld [vmem:[%s9248_s4 + $0x628] sm:$0xff]  }
 0x8e0   :  { %6734 = vmatprep.subr.bf16.mxu0 %v7274_v2  ;;  %6756 = vmatprep.subr.bf16.mxu1 %v7275_v3  ;;  %v7297_v63 = vld [vmem:[%s9248_s4 + $0x6b0] sm:$0xff]   ;;  %v7298_v2 = vld [vmem:[%s9248_s4 + $0x668] sm:$0xff]  }
 0x8e1   :  { %4539 = vmatprep.mubr.bf16.mxu0 %v3386_v7  ;;  %4579 = vmatprep.mubr.bf16.mxu1 %v3388_v8  ;;  %v7299_v3 = vld [vmem:[%s9248_s4 + $0x6e8] sm:$0xff]   ;;  %v7302_v7 = vld [vmem:[%s9248_s4 + $0x660] sm:$0xff]  }
 0x8e2   :  { %v7301_v6 = vld [vmem:[%s9248_s4 + $0x6a8] sm:$0xff]   ;;  %v7303_v8 = vld [vmem:[%s9248_s4 + $0x6e0] sm:$0xff]  }
 0x8e3   :  { %6735 = vmatpush3.bf16.msra.mxu0 %v7276_v37  ;;  %6757 = vmatpush3.bf16.msra.mxu1 %v7277_v9 }
 0x8e4   :  { %6736 = vmatprep.subr.bf16.mxu0 %v7278_v10  ;;  %6758 = vmatprep.subr.bf16.mxu1 %v7279_v11  ;;  %v7304_v10 = vld [vmem:[%s9248_s4 + $0x620] sm:$0xff]  }
 0x8e7   :  { %6737 = vmatpush3.bf16.msra.mxu0 %v7280_v55  ;;  %6759 = vmatpush3.bf16.msra.mxu1 %v7281_v14  ;;  %v7305_v14 = vld [vmem:[%s9248_s4 + $0x6a0] sm:$0xff]  }
 0x8e8   :  { %v8719_v22 = vpop.f32.mrf.mxu0  ;;  %v8721_v23 = vpop.f32.mrf.mxu1  ;;  %6738 = vmatprep.subr.bf16.mxu0 %v7282_v56  ;;  %6760 = vmatprep.subr.bf16.mxu1 %v7283_v16 }
 0x8ea   :  { %v3237_v24 = vpop.f32.mrf.mxu0  ;;  %v3278_v25 = vpop.f32.mrf.mxu1 }
 0x8eb   :  { %v3238_v34 = vadd.f32 %v3237_v24, %v2673_v5  ;;  %v3279_v35 = vadd.f32 %v3278_v25, %v2681_v18  ;;  %6739 = vmatpush3.bf16.msra.mxu0 %v7284_v19  ;;  %6761 = vmatpush3.bf16.msra.mxu1 %v7285_v20  ;;  %v7308_v5 = vld [vmem:[%s9248_s4 + $0x618] sm:$0xff]   ;;  %v7310_v19 = vld [vmem:[%s9248_s4 + $0x650] sm:$0xff]   ;;  %v2677_v24 = vrot.slane %v8707_v17, %v7884_v29  ;;  %v7315_v25 = vld [vmem:[%s9248_s4 + $0x6c8] sm:$0xff]  }
 0x8ec   :  { %v3239_v43 = vpop.f32.mrf.mxu0  ;;  %v3280_v44 = vpop.f32.mrf.mxu1  ;;  %6740 = vmatprep.subr.bf16.mxu0 %v7286_v32  ;;  %6762 = vmatprep.subr.bf16.mxu1 %v7287_v33  ;;  %v7309_v18 = vld [vmem:[%s9248_s4 + $0x698] sm:$0xff]   ;;  %v7311_v20 = vld [vmem:[%s9248_s4 + $0x6d0] sm:$0xff]   ;;  %v7314_v33 = vld [vmem:[%s9248_s4 + $0x648] sm:$0xff]  }
 0x8ed   :  { %v3374_v46 = vmax.f32 %v3238_v34, 0.0  ;;  %v3376_v47 = vmax.f32 %v3279_v35, 0.0  ;;  %v7313_v32 = vld [vmem:[%s9248_s4 + $0x690] sm:$0xff]   ;;  %v2697_v34 = vrot.slane %v8707_v17, %v7927_v1  ;;  %v7316_v35 = vld [vmem:[%s9248_s4 + $0x608] sm:$0xff]   ;;  %v7319_v1 = vld [vmem:[%s9248_s4 + $0x6c0] sm:$0xff]  }
 0x8ee   :  { %v3240_v30 = vpop.f32.mrf.mxu0  ;;  %v3281_v48 = vpop.f32.mrf.mxu1  ;;  %v7317_v29 = vld [vmem:[%s9248_s4 + $0x688] sm:$0xff]   ;;  %v7321_v44 = vld [vmem:[%s9248_s4 + $0x680] sm:$0xff]  }
 0x8ef   :  { %6741 = vmatpush3.bf16.msra.mxu0 %v7288_v38  ;;  %6763 = vmatpush3.bf16.msra.mxu1 %v7289_v51  ;;  %v3390_v58 = vpack.c.bf16 %v3374_v46, %v3374_v46  ;;  %v3392_v61 = vpack.c.bf16 %v3376_v47, %v3376_v47  ;;  %v3236_v38 = vadd.f32 %v8719_v22, %v2669_v12  ;;  %v7320_v22 = vld [vmem:[%s9248_s4 + $0x600] sm:$0xff]   ;;  %v7324_v30 = vld [vmem:[%s9248_s4 + $0x738] sm:$0xff]  }
 0x8f0   :  { %6770 = vmatprep.subr.bf16.mxu0 %v7290_v27  ;;  %6792 = vmatprep.subr.bf16.mxu1 %v7291_v45  ;;  %v3277_v51 = vadd.f32 %v8721_v23, %v2677_v24  ;;  %v7322_v23 = vld [vmem:[%s9248_s4 + $0x778] sm:$0xff]  }
 0x8f1   :  { %v3373_v43 = vmax.f32 %v3236_v38, 0.0  ;;  %v7323_v45 = vld [vmem:[%s9248_s4 + $0x7f8] sm:$0xff]  }
 0x8f2   :  { %4540 = vmatmul.mubr.bf16.vlgmr.msra.gmra.mxu0 %v3385_v53  ;;  %4580 = vmatmul.mubr.bf16.vlgmr.msra.gmra.mxu1 %v3387_v54  ;;  %v3375_v27 = vmax.f32 %v3277_v51, 0.0  ;;  %v7326_v54 = vld [vmem:[%s9248_s4 + $0x770] sm:$0xff]  }
 0x8f3   :  { %6771 = vmatpush3.bf16.msra.mxu0 %v7292_v52  ;;  %4619 = vmatprep.mubr.bf16.mxu0 %v3390_v58  ;;  %v3389_v48 = vpack.c.bf16 %v3373_v43, %v3373_v43  ;;  %v7325_v52 = vld [vmem:[%s9248_s4 + $0x7b8] sm:$0xff]   ;;  %v7327_v58 = vld [vmem:[%s9248_s4 + $0x7f0] sm:$0xff]  }
 0x8f4   :  { %6793 = vmatpush3.bf16.msra.mxu1 %v7293_v57  ;;  %4659 = vmatprep.mubr.bf16.mxu1 %v3392_v61  ;;  %v3391_v53 = vpack.c.bf16 %v3375_v27, %v3375_v27  ;;  %v7329_v61 = vld [vmem:[%s9248_s4 + $0x7b0] sm:$0xff]  }
 0x8f5   :  { %6772 = vmatprep.subr.bf16.mxu0 %v7294_v59  ;;  %6794 = vmatprep.subr.bf16.mxu1 %v7295_v60  ;;  %v7328_v60 = vld [vmem:[%s9248_s4 + $0x730] sm:$0xff]  }
 0x8f7   :  { %6773 = vmatpush3.bf16.msra.mxu0 %v7296_v62  ;;  %v7330_v62 = vld [vmem:[%s9248_s4 + $0x768] sm:$0xff]  }
 0x8f8   :  { %6795 = vmatpush3.bf16.msra.mxu1 %v7297_v63  ;;  %v8768_v4 = vpop.f32.mrf.mxu0  ;;  %v8770_v36 = vpop.f32.mrf.mxu1  ;;  %6774 = vmatprep.subr.bf16.mxu0 %v7298_v2  ;;  %v7331_v63 = vld [vmem:[%s9248_s4 + $0x7e8] sm:$0xff]  }
 0x8f9   :  { %6796 = vmatprep.subr.bf16.mxu1 %v7299_v3  ;;  %v7332_v2 = vld [vmem:[%s9248_s4 + $0x728] sm:$0xff]  }
 0x8fa   :  { %v3319_v37 = vpop.f32.mrf.mxu0  ;;  %v3360_v9 = vpop.f32.mrf.mxu1  ;;  %v7333_v3 = vld [vmem:[%s9248_s4 + $0x7a8] sm:$0xff]  }
 0x8fb   :  { %6775 = vmatpush3.bf16.msra.mxu0 %v7300_v49  ;;  %v3320_v39 = vadd.f32 %v3319_v37, %v2689_v28  ;;  %v3361_v42 = vadd.f32 %v3360_v9, %v2697_v34  ;;  %v7334_v49 = vld [vmem:[%s9248_s4 + $0x760] sm:$0xff]   ;;  %v7338_v37 = vld [vmem:[%s9248_s4 + $0x758] sm:$0xff]   ;;  %v6280_v34 = vld [vmem:[%s9246_s6 + $0xa] ss:$0 sm:$0xff] }
 0x8fc   :  { %6797 = vmatpush3.bf16.msra.mxu1 %v7301_v6  ;;  %v3321_v11 = vpop.f32.mrf.mxu0  ;;  %v3362_v55 = vpop.f32.mrf.mxu1  ;;  %6776 = vmatprep.subr.bf16.mxu0 %v7302_v7  ;;  %v7335_v6 = vld [vmem:[%s9248_s4 + $0x7e0] sm:$0xff]   ;;  %v7339_v9 = vld [vmem:[%s9248_s4 + $0x7d8] sm:$0xff]  }
 0x8fd   :  { %6798 = vmatprep.subr.bf16.mxu1 %v7303_v8  ;;  %v3378_v46 = vmax.f32 %v3320_v39, 0.0  ;;  %v3380_v47 = vmax.f32 %v3361_v42, 0.0  ;;  %v7336_v7 = vld [vmem:[%s9248_s4 + $0x720] sm:$0xff]   ;;  %v7341_v11 = vld [vmem:[%s9248_s4 + $0x798] sm:$0xff]   ;;  %v7342_v55 = vld [vmem:[%s9248_s4 + $0x750] sm:$0xff]  }
 0x8fe   :  { %v3322_v56 = vpop.f32.mrf.mxu0  ;;  %v3363_v16 = vpop.f32.mrf.mxu1  ;;  %v7337_v8 = vld [vmem:[%s9248_s4 + $0x7a0] sm:$0xff]  }
 0x8ff   :  { %6777 = vmatpush3.bf16.msra.mxu0 %v7304_v10  ;;  %v3394_v57 = vpack.c.bf16 %v3378_v46, %v3378_v46  ;;  %v3396_v59 = vpack.c.bf16 %v3380_v47, %v3380_v47  ;;  %v7340_v10 = vld [vmem:[%s9248_s4 + $0x718] sm:$0xff]   ;;  %v7345_v56 = vld [vmem:[%s9248_s4 + $0x790] sm:$0xff]   ;;  %v7346_v16 = vld [vmem:[%s9248_s4 + $0x748] sm:$0xff]  }
 0x900   :  { %6799 = vmatpush3.bf16.msra.mxu1 %v7305_v14  ;;  %6778 = vmatprep.subr.bf16.mxu0 %v7306_v15  ;;  %v7343_v14 = vld [vmem:[%s9248_s4 + $0x7d0] sm:$0xff]  }
 0x901   :  { %6800 = vmatprep.subr.bf16.mxu1 %v7307_v26  ;;  %v7344_v15 = vld [vmem:[%s9248_s4 + $0x710] sm:$0xff]   ;;  %v2685_v26 = vrot.slane %v8707_v17, %v7970_v40  ;;  %v7348_v40 = vld [vmem:[%s9248_s4 + $0x708] sm:$0xff]  }
 0x903   :  { %6779 = vmatpush3.bf16.msra.mxu0 %v7308_v5  ;;  %v2693_v5 = vrot.slane %v8707_v17, %v7973_v41  ;;  %v7350_v41 = vld [vmem:[%s9248_s4 + $0x740] sm:$0xff]  }
 0x904   :  { %6801 = vmatpush3.bf16.msra.mxu1 %v7309_v18  ;;  %6780 = vmatprep.subr.bf16.mxu0 %v7310_v19  ;;  %v7347_v18 = vld [vmem:[%s9248_s4 + $0x7c8] sm:$0xff]   ;;  %v3318_v19 = vadd.f32 %v8768_v4, %v2685_v26  ;;  %v7352_v4 = vld [vmem:[%s9248_s4 + $0x700] sm:$0xff]  }
 0x905   :  { %6802 = vmatprep.subr.bf16.mxu1 %v7311_v20  ;;  %v7349_v20 = vld [vmem:[%s9248_s4 + $0x788] sm:$0xff]   ;;  %v3359_v17 = vadd.f32 %v8770_v36, %v2693_v5 }
 0x906   :  { %v3377_v12 = vmax.f32 %v3318_v19, 0.0 }
 0x907   :  { %6781 = vmatpush3.bf16.msra.mxu0 %v7312_v21  ;;  %v7351_v21 = vld [vmem:[%s9248_s4 + $0x7c0] sm:$0xff]  }
 0x908   :  { %6803 = vmatpush3.bf16.msra.mxu1 %v7313_v32  ;;  %6782 = vmatprep.subr.bf16.mxu0 %v7314_v33  ;;  %v7353_v32 = vld [vmem:[%s9248_s4 + $0x780] sm:$0xff]   ;;  %v3379_v33 = vmax.f32 %v3359_v17, 0.0  ;;  %v3393_v36 = vpack.c.bf16 %v3377_v12, %v3377_v12  ;;  %v7354_v12 = vld [vmem:[%s9250_s2 + $0x18] sm:$0xff]  }
 0x909   :  { %6804 = vmatprep.subr.bf16.mxu1 %v7315_v25 }
 0x90a   :  { %v3395_v24 = vpack.c.bf16 %v3379_v33, %v3379_v33  ;;  %v7357_v33 = vld [vmem:[%s9250_s2] sm:$0xff]  }
 0x90b   :  { %6783 = vmatpush3.bf16.msra.mxu0 %v7316_v35 }
 0x90c   :  { %6805 = vmatpush3.bf16.msra.mxu1 %v7317_v29  ;;  %6784 = vmatprep.subr.bf16.mxu0 %v7318_v31 }
 0x90d   :  { %6806 = vmatprep.subr.bf16.mxu1 %v7319_v1 }
 0x90f   :  { %6785 = vmatpush3.bf16.msra.mxu0 %v7320_v22 }
 0x910   :  { %6807 = vmatpush3.bf16.msra.mxu1 %v7321_v44  ;;  %6814 = vmatprep.subr.bf16.mxu0 %v7322_v23 }
 0x911   :  { %6836 = vmatprep.subr.bf16.mxu1 %v7323_v45 }
 0x912   :  { %4620 = vmatmul.mubr.bf16.vlgmr.msra.gmra.mxu0 %v3389_v48 }
 0x913   :  { %4660 = vmatmul.mubr.bf16.vlgmr.msra.gmra.mxu1 %v3391_v53  ;;  %6815 = vmatpush3.bf16.msra.mxu0 %v7324_v30 }
 0x914   :  { %4699 = vmatprep.mubr.bf16.mxu0 %v3394_v57  ;;  %6837 = vmatpush3.bf16.msra.mxu1 %v7325_v52 }
 0x915   :  { %4739 = vmatprep.mubr.bf16.mxu1 %v3396_v59  ;;  %6816 = vmatprep.subr.bf16.mxu0 %v7326_v54 }
 0x916   :  { %6838 = vmatprep.subr.bf16.mxu1 %v7327_v58 }
 0x917   :  { %6817 = vmatpush3.bf16.msra.mxu0 %v7328_v60 }
 0x918   :  { %6839 = vmatpush3.bf16.msra.mxu1 %v7329_v61  ;;  %6818 = vmatprep.subr.bf16.mxu0 %v7330_v62 }
 0x919   :  { %6840 = vmatprep.subr.bf16.mxu1 %v7331_v63 }
 0x91b   :  { %6819 = vmatpush3.bf16.msra.mxu0 %v7332_v2 }
 0x91c   :  { %6841 = vmatpush3.bf16.msra.mxu1 %v7333_v3  ;;  %6820 = vmatprep.subr.bf16.mxu0 %v7334_v49 }
 0x91d   :  { %6842 = vmatprep.subr.bf16.mxu1 %v7335_v6 }
 0x91f   :  { %6821 = vmatpush3.bf16.msra.mxu0 %v7336_v7 }
 0x920   :  { %6843 = vmatpush3.bf16.msra.mxu1 %v7337_v8  ;;  %6822 = vmatprep.subr.bf16.mxu0 %v7338_v37 }
 0x921   :  { %6844 = vmatprep.subr.bf16.mxu1 %v7339_v9 }
 0x923   :  { %6823 = vmatpush3.bf16.msra.mxu0 %v7340_v10 }
 0x924   :  { %6845 = vmatpush3.bf16.msra.mxu1 %v7341_v11  ;;  %6824 = vmatprep.subr.bf16.mxu0 %v7342_v55 }
 0x925   :  { %6846 = vmatprep.subr.bf16.mxu1 %v7343_v14 }
 0x927   :  { %6825 = vmatpush3.bf16.msra.mxu0 %v7344_v15 }
 0x928   :  { %6847 = vmatpush3.bf16.msra.mxu1 %v7345_v56  ;;  %6826 = vmatprep.subr.bf16.mxu0 %v7346_v16 }
 0x929   :  { %6848 = vmatprep.subr.bf16.mxu1 %v7347_v18 }
 0x92b   :  { %6827 = vmatpush3.bf16.msra.mxu0 %v7348_v40 }
 0x92c   :  { %6849 = vmatpush3.bf16.msra.mxu1 %v7349_v20  ;;  %6828 = vmatprep.subr.bf16.mxu0 %v7350_v41 }
 0x92d   :  { %6850 = vmatprep.subr.bf16.mxu1 %v7351_v21 }
 0x92f   :  { %6829 = vmatpush3.bf16.msra.mxu0 %v7352_v4 }
 0x930   :  { %6851 = vmatpush3.bf16.msra.mxu1 %v7353_v32  ;;  %6987 = vmatprep.subr.bf16.mxu0 %v7433_v0  ;;  %v7356_v32 = vld [vmem:[%s9250_s2 + $0x8] sm:$0xff]  }
 0x931   :  { %6999 = vmatprep.subr.bf16.mxu1 %v7433_v0 }
 0x932   :  { %4700 = vmatmul.mubr.bf16.vlgmr.msra.gmra.mxu0 %v3393_v36  ;;  %v7358_v36 = vld [vmem:[%s9250_s2 + $0x1d8] sm:$0xff]  }
 0x933   :  { %4740 = vmatmul.mubr.bf16.vlgmr.msra.gmra.mxu1 %v3395_v24  ;;  %6995 = vmatprep.mubr.msk.bf16.mxu0 %vm7434_vm0, %v7433_v0  ;;  %v7359_v24 = vld [vmem:[%s9250_s2 + $0x1d0] sm:$0xff]  }
 0x934   :  { %7015 = vmatprep.mubr.msk.bf16.mxu1 %vm7434_vm0, %v7433_v0  ;;  %6988 = vmatpush3.bf16.msra.mxu0 %v7354_v12 }
 0x935   :  { %6989 = vmatprep.subr.bf16.mxu0 %v7433_v0  ;;  %7000 = vmatpush3.bf16.msra.mxu1 %v7358_v36  ;;  %v7385_v36 = vld [vmem:[%s9250_s2 + $0x108] sm:$0xff]  }
 0x936   :  { %7001 = vmatprep.subr.bf16.mxu1 %v7433_v0 }
 0x939   :  { %7002 = vmatpush3.bf16.msra.mxu1 %v7359_v24  ;;  %v7387_v24 = vld [vmem:[%s9250_s2 + $0x100] sm:$0xff]  }
 0x93a   :  { %7003 = vmatprep.subr.bf16.mxu1 %v7433_v0 }
 0x992   :  { %v6698_v25 = vpop.f32.mrf.mxu0  ;;  %v6720_v28 = vpop.f32.mrf.mxu1 }
 0x994   :  { %v6699_v35 = vpop.f32.mrf.mxu0  ;;  %v6721_v38 = vpop.f32.mrf.mxu1 }
 0x995   :  { %v6700_v29 = vadd.f32 %v6699_v35, %v6698_v25  ;;  %v6722_v31 = vadd.f32 %v6721_v38, %v6720_v28  ;;  %v7360_v25 = vld [vmem:[%s9250_s2 + $0x1c8] sm:$0xff]   ;;  %v7361_v28 = vld [vmem:[%s9250_s2 + $0x1c0] sm:$0xff]   ;;  %v7363_v35 = vld [vmem:[%s9250_s2 + $0x1b0] sm:$0xff]  }
 0x996   :  { %v6701_v51 = vpop.f32.mrf.mxu0  ;;  %v6723_v1 = vpop.f32.mrf.mxu1  ;;  %7004 = vmatpush3.bf16.msra.mxu1 %v7360_v25  ;;  %v7389_v25 = vld [vmem:[%s9250_s2 + $0xf8] sm:$0xff]  }
 0x997   :  { %v4462_v39 = vadd.f32 %v6700_v29, %v6280_v34  ;;  %7005 = vmatprep.subr.bf16.mxu1 %v7433_v0  ;;  %v7362_v34 = vld [vmem:[%s9250_s2 + $0x1b8] sm:$0xff]   ;;  %v6409_v1 = vld [vmem:[%s9246_s6 + $0xb] ss:$0 sm:$0xff] }
 0x998   :  { %v6702_v42 = vpop.f32.mrf.mxu0  ;;  %v6724_v22 = vpop.f32.mrf.mxu1 }
 0x999   :  { %v4502_v43 = vadd.f32 %v6722_v31, %v4462_v39  ;;  %v6410_v42 = vld [vmem:[%s9246_s6 + $0xc] ss:$0 sm:$0xff] }
 0x99a   :  { %7006 = vmatpush3.bf16.msra.mxu1 %v7361_v28  ;;  %v7391_v28 = vld [vmem:[%s9250_s2 + $0xf0] sm:$0xff]  }
 0x99b   :  { %7007 = vmatprep.subr.bf16.mxu1 %v7433_v0 }
 0x99e   :  { %7008 = vmatpush3.bf16.msra.mxu1 %v7362_v34  ;;  %v7393_v34 = vld [vmem:[%s9250_s2 + $0xe8] sm:$0xff]  }
 0x99f   :  { %7009 = vmatprep.subr.bf16.mxu1 %v7433_v0 }
 0x9a2   :  { %7010 = vmatpush3.bf16.msra.mxu1 %v7363_v35  ;;  %v7394_v35 = vld [vmem:[%s9250_s2 + $0xb0] sm:$0xff]  }
 0x9a3   :  { %7011 = vmatprep.subr.bf16.mxu1 %v7433_v0 }
 0x9b2   :  { %v6742_v44 = vpop.f32.mrf.mxu0  ;;  %v6764_v23 = vpop.f32.mrf.mxu1 }
 0x9b4   :  { %v6743_v27 = vpop.f32.mrf.mxu0  ;;  %v6765_v45 = vpop.f32.mrf.mxu1 }
 0x9b5   :  { %v6744_v62 = vadd.f32 %v6743_v27, %v6742_v44  ;;  %v6766_v2 = vadd.f32 %v6765_v45, %v6764_v23  ;;  %v7364_v23 = vld [vmem:[%s9250_s2 + $0x1a8] sm:$0xff]   ;;  %v7365_v27 = vld [vmem:[%s9250_s2 + $0x1a0] sm:$0xff]   ;;  %v7366_v45 = vld [vmem:[%s9250_s2 + $0x98] sm:$0xff]  }
 0x9b6   :  { %v6745_v46 = vpop.f32.mrf.mxu0  ;;  %v6767_v47 = vpop.f32.mrf.mxu1  ;;  %7012 = vmatpush3.bf16.msra.mxu1 %v7364_v23 }
 0x9b7   :  { %v4542_v63 = vadd.f32 %v6744_v62, %v4502_v43  ;;  %7013 = vmatprep.subr.bf16.mxu1 %v7433_v0  ;;  %v7367_v46 = vld [vmem:[%s9250_s2 + $0x58] sm:$0xff]   ;;  %v7368_v47 = vld [vmem:[%s9250_s2 + $0x90] sm:$0xff]   ;;  %v7371_v62 = vld [vmem:[%s9250_s2 + $0x48] sm:$0xff]  }
 0x9b8   :  { %v6746_v30 = vpop.f32.mrf.mxu0  ;;  %v6768_v48 = vpop.f32.mrf.mxu1 }
 0x9b9   :  { %v4582_v49 = vadd.f32 %v6766_v2, %v4542_v63  ;;  %v7369_v30 = vld [vmem:[%s9250_s2 + $0x50] sm:$0xff]   ;;  %v6411_v48 = vld [vmem:[%s9246_s6 + $0xd] ss:$0 sm:$0xff]  ;;  %v7372_v63 = vld [vmem:[%s9250_s2 + $0x80] sm:$0xff]  }
 0x9ba   :  { %7014 = vmatpush3.bf16.msra.mxu1 %v7365_v27  ;;  %v7373_v2 = vld [vmem:[%s9250_s2 + $0x40] sm:$0xff]   ;;  %v7399_v27 = vld [vmem:[%s9250_s2 + $0x158] sm:$0xff]  }
 0x9bb   :  { %7019 = vmatprep.subr.bf16.mxu1 %v7433_v0 }
 0x9d2   :  { %v6786_v52 = vpop.f32.mrf.mxu0 }
 0x9d3   :  { %v6808_v53 = vpop.f32.mrf.mxu1 }
 0x9d4   :  { %v6787_v54 = vpop.f32.mrf.mxu0 }
 0x9d5   :  { %v6809_v57 = vpop.f32.mrf.mxu1  ;;  %v6788_v3 = vadd.f32 %v6787_v54, %v6786_v52 }
 0x9d6   :  { %v6789_v58 = vpop.f32.mrf.mxu0  ;;  %v6810_v8 = vadd.f32 %v6809_v57, %v6808_v53 }
 0x9d7   :  { %v6811_v59 = vpop.f32.mrf.mxu1  ;;  %v4622_v6 = vadd.f32 %v6788_v3, %v4582_v49  ;;  %v7374_v3 = vld [vmem:[%s9250_s2 + $0x78] sm:$0xff]  }
 0x9d8   :  { %v6790_v60 = vpop.f32.mrf.mxu0  ;;  %v7375_v49 = vld [vmem:[%s9250_s2 + $0x38] sm:$0xff]  }
 0x9d9   :  { %v6812_v61 = vpop.f32.mrf.mxu1  ;;  %v4662_v10 = vadd.f32 %v6810_v8, %v4622_v6  ;;  %v7376_v6 = vld [vmem:[%s9250_s2 + $0x70] sm:$0xff]   ;;  %v7378_v8 = vld [vmem:[%s9250_s2 + $0x68] sm:$0xff]  }
 0x9da   :  { %v7370_v61 = vld [vmem:[%s9250_s2 + $0x88] sm:$0xff]  }
 0x9f2   :  { %v6830_v7 = vpop.f32.mrf.mxu0 }
 0x9f3   :  { %v6852_v37 = vpop.f32.mrf.mxu1 }
 0x9f4   :  { %v6831_v9 = vpop.f32.mrf.mxu0 }
 0x9f5   :  { %v6832_v11 = vadd.f32 %v6831_v9, %v6830_v7  ;;  %v6853_v55 = vpop.f32.mrf.mxu1  ;;  %v7377_v7 = vld [vmem:[%s9250_s2 + $0x30] sm:$0xff]   ;;  %v7380_v9 = vld [vmem:[%s9250_s2 + $0x60] sm:$0xff]  }
 0x9f6   :  { %v6833_v14 = vpop.f32.mrf.mxu0  ;;  %v6854_v26 = vadd.f32 %v6853_v55, %v6852_v37  ;;  %v7379_v37 = vld [vmem:[%s9250_s2 + $0x28] sm:$0xff]   ;;  %v7386_v55 = vld [vmem:[%s9250_s2 + $0xd0] sm:$0xff]  }
 0x9f7   :  { %v4702_v15 = vadd.f32 %v6832_v11, %v4662_v10  ;;  %v6855_v56 = vpop.f32.mrf.mxu1  ;;  %v7381_v10 = vld [vmem:[%s9250_s2 + $0x20] sm:$0xff]   ;;  %v7384_v11 = vld [vmem:[%s9250_s2 + $0xd8] sm:$0xff]   ;;  %v7388_v14 = vld [vmem:[%s9250_s2 + $0xc8] sm:$0xff]  }
 0x9f8   :  { %v6834_v16 = vpop.f32.mrf.mxu0  ;;  %v6417_v56 = vld [vmem:[%s9246_s6 + $0xe] ss:$0 sm:$0xff] }
 0x9f9   :  { %v4742_v5 = vadd.f32 %v6854_v26, %v4702_v15  ;;  %v6856_v18 = vpop.f32.mrf.mxu1  ;;  %v7390_v15 = vld [vmem:[%s9250_s2 + $0xc0] sm:$0xff]   ;;  %v7392_v26 = vld [vmem:[%s9250_s2 + $0xb8] sm:$0xff]  }
 0x9fb   :  { %v4747_v40 = vadd.f32 %v4742_v5, %v8361_v50  ;;  %v7355_v50 = vld [vmem:[%s9250_s2 + $0x10] sm:$0xff]  }
 0x9fc   :  { %6990 = vmatpush3.bf16.msra.mxu0 %v7355_v50  ;;  %v7382_v50 = vld [vmem:[%s9250_s2 + $0x118] sm:$0xff]  }
 0x9fd   :  { %v4750_v19 = vsel %vm176_vm1, %v4747_v40, 0.0  ;;  %6991 = vmatprep.subr.bf16.mxu0 %v7433_v0 }
 0x9fe   :  { %4751 = vadd.xlane.f32.xlu0 %v4750_v19 }
 0xa00   :  { %6992 = vmatpush3.bf16.msra.mxu0 %v7356_v32 }
 0xa01   :  { %6993 = vmatprep.subr.bf16.mxu0 %v7433_v0 }
 0xa04   :  { %6994 = vmatpush3.bf16.msra.mxu0 %v7357_v33  ;;  %v7383_v33 = vld [vmem:[%s9250_s2 + $0x110] sm:$0xff]  }
 0xa05   :  { %6872 = vmatprep.subr.bf16.mxu0 %v7366_v45 }
 0xa87   :  { %v4752_v20 = vpop.xlane.xlu0 %4751 }
 0xa88   :  { %v4753_v41 = vmul.f32 0.015625, %v4752_v20 }
 0xa8a   :  { %v4754_v17 = vsub.f32 %v4747_v40, %v4753_v41 }
 0xa8c   :  { %v4755_v21 = vmul.f32 %v4754_v17, %v4754_v17 }
 0xa8e   :  { %v4756_v4 = vsel %vm176_vm1, %v4755_v21, 0.0  ;;  %v7432_v21 = vld [vmem:[%s9245_s0] sm:$0xff] }
 0xa8f   :  { %4757 = vadd.xlane.f32.xlu1 %v4756_v4 }
 0xb18   :  { %v4758_v38 = vpop.xlane.xlu1 %4757 }
 0xb19   :  { %v4759_v29 = vmul.f32 0.015625, %v4758_v38  ;;  %v7395_v38 = vld [vmem:[%s9250_s2 + $0xe0] sm:$0xff]  }
 0xb1b   :  { %v4760_v31 = vadd.f32 1e-05, %v4759_v29  ;;  %v7396_v29 = vld [vmem:[%s9250_s2 + $0xa8] sm:$0xff]  }
 0xb1d   :  { %7428 = vrsqrt.f32 %v4760_v31  ;;  %v7397_v31 = vld [vmem:[%s9250_s2 + $0xa0] sm:$0xff]  }
 0xb2a   :  { %v7429_v51 = vpop.eup %7428 }
 0xb2b   :  { %v4762_v39 = vmul.f32 %v7429_v51, %v4754_v17  ;;  %v7398_v51 = vld [vmem:[%s9250_s2 + $0x198] sm:$0xff]  }
 0xb2d   :  { %v4767_v22 = vmul.f32 %v6409_v1, %v4762_v39  ;;  %v6426_v39 = vld [vmem:[%s9246_s6 + $0xf] ss:$0 sm:$0xff] }
 0xb2f   :  { %v4772_v43 = vadd.f32 %v6410_v42, %v4767_v22 }
 0xb31   :  { %v4773_v44 = vpack.c.bf16 %v4772_v43, %v4772_v43 }
 0xb33   :  { %6996 = vmatmul.mubr.msk.bf16.vlgmr.msra.gmra.mxu0 %vm176_vm1, %v4773_v44 }
 0xb34   :  { %6873 = vmatpush3.bf16.msra.mxu0 %v7367_v46  ;;  %v7400_v46 = vld [vmem:[%s9250_s2 + $0x190] sm:$0xff]  }
 0xb35   :  { %6874 = vmatprep.subr.bf16.mxu0 %v7368_v47  ;;  %v7401_v47 = vld [vmem:[%s9250_s2 + $0x150] sm:$0xff]  }
 0xb38   :  { %6875 = vmatpush3.bf16.msra.mxu0 %v7369_v30  ;;  %v7402_v30 = vld [vmem:[%s9250_s2 + $0x188] sm:$0xff]  }
 0xb39   :  { %6876 = vmatprep.subr.bf16.mxu0 %v7370_v61  ;;  %v6452_v61 = vld [vmem:[%s9246_s6 + $0x11] ss:$0 sm:$0xff] }
 0xb3c   :  { %6877 = vmatpush3.bf16.msra.mxu0 %v7371_v62 }
 0xb3d   :  { %6878 = vmatprep.subr.bf16.mxu0 %v7372_v63 }
 0xb40   :  { %6879 = vmatpush3.bf16.msra.mxu0 %v7373_v2 }
 0xb41   :  { %6880 = vmatprep.subr.bf16.mxu0 %v7374_v3 }
 0xb44   :  { %6881 = vmatpush3.bf16.msra.mxu0 %v7375_v49  ;;  %v7411_v49 = vld [vmem:[%s9250_s2 + $0x128] sm:$0xff]  }
 0xb45   :  { %6882 = vmatprep.subr.bf16.mxu0 %v7376_v6 }
 0xb48   :  { %6883 = vmatpush3.bf16.msra.mxu0 %v7377_v7 }
 0xb49   :  { %6884 = vmatprep.subr.bf16.mxu0 %v7378_v8  ;;  %v7412_v8 = vld [vmem:[%s9250_s2 + $0x160] sm:$0xff]  }
 0xb4c   :  { %6885 = vmatpush3.bf16.msra.mxu0 %v7379_v37  ;;  %v7413_v37 = vld [vmem:[%s9250_s2 + $0x120] sm:$0xff]  }
 0xb4d   :  { %6886 = vmatprep.subr.bf16.mxu0 %v7380_v9  ;;  %v7414_v9 = vld [vmem:[%s9250_s2 + $0x218] sm:$0xff]  }
 0xb50   :  { %6887 = vmatpush3.bf16.msra.mxu0 %v7381_v10  ;;  %v7415_v10 = vld [vmem:[%s9250_s2 + $0x210] sm:$0xff]  }
 0xb51   :  { %7039 = vmatprep.subr.bf16.mxu0 %v7433_v0 }
 0xbf3   :  { %v4848_v52 = vpop.f32.mrf.mxu0 }
 0xbf4   :  { %v4849_v53 = vadd.f32 %v6411_v48, %v4848_v52  ;;  %v7403_v48 = vld [vmem:[%s9250_s2 + $0x148] sm:$0xff]   ;;  %v7404_v52 = vld [vmem:[%s9250_s2 + $0x180] sm:$0xff]  }
 0xbf5   :  { %v6997_v54 = vpop.f32.mrf.mxu0 }
 0xbf6   :  { %v4854_v57 = vmax.f32 %v4849_v53, 0.0  ;;  %v7405_v53 = vld [vmem:[%s9250_s2 + $0x140] sm:$0xff]   ;;  %v7406_v54 = vld [vmem:[%s9250_s2 + $0x178] sm:$0xff]  }
 0xbf7   :  { %v4851_v58 = vpop.f32.mrf.mxu0 }
 0xbf8   :  { %v4855_v59 = vpack.c.bf16 %v4854_v57, %v4854_v57  ;;  %v7407_v57 = vld [vmem:[%s9250_s2 + $0x138] sm:$0xff]   ;;  %v7408_v58 = vld [vmem:[%s9250_s2 + $0x170] sm:$0xff]  }
 0xbf9   :  { %v6998_v60 = vpop.f32.mrf.mxu0 }
 0xbfa   :  { %7016 = vmatmul.mubr.bf16.vlgmr.msra.gmra.mxu1 %v4855_v59  ;;  %v7409_v59 = vld [vmem:[%s9250_s2 + $0x130] sm:$0xff]   ;;  %v7410_v60 = vld [vmem:[%s9250_s2 + $0x168] sm:$0xff]  }
 0xbfb   :  { %7035 = vmatprep.mubr.msk.bf16.mxu1 %vm7434_vm0, %v7433_v0  ;;  %7020 = vmatpush3.bf16.msra.mxu1 %v7384_v11  ;;  %v7416_v11 = vld [vmem:[%s9250_s2 + $0x208] sm:$0xff]  }
 0xbfc   :  { %7021 = vmatprep.subr.bf16.mxu1 %v7433_v0 }
 0xbff   :  { %7022 = vmatpush3.bf16.msra.mxu1 %v7386_v55  ;;  %v7417_v55 = vld [vmem:[%s9250_s2 + $0x200] sm:$0xff]  }
 0xc00   :  { %7023 = vmatprep.subr.bf16.mxu1 %v7433_v0 }
 0xc03   :  { %7024 = vmatpush3.bf16.msra.mxu1 %v7388_v14  ;;  %v7418_v14 = vld [vmem:[%s9250_s2 + $0x1f8] sm:$0xff]  }
 0xc04   :  { %7025 = vmatprep.subr.bf16.mxu1 %v7433_v0 }
 0xc07   :  { %7026 = vmatpush3.bf16.msra.mxu1 %v7390_v15  ;;  %v6443_v15 = vld [vmem:[%s9246_s6 + $0x10] ss:$0 sm:$0xff] }
 0xc08   :  { %7027 = vmatprep.subr.bf16.mxu1 %v7433_v0 }
 0xc0b   :  { %7028 = vmatpush3.bf16.msra.mxu1 %v7392_v26 }
 0xc0c   :  { %7029 = vmatprep.subr.bf16.mxu1 %v7433_v0 }
 0xc0f   :  { %7030 = vmatpush3.bf16.msra.mxu1 %v7394_v35 }
 0xc10   :  { %7031 = vmatprep.subr.bf16.mxu1 %v7433_v0 }
 0xc13   :  { %7032 = vmatpush3.bf16.msra.mxu1 %v7396_v29 }
 0xc14   :  { %7033 = vmatprep.subr.bf16.mxu1 %v7433_v0 }
 0xc17   :  { %7034 = vmatpush3.bf16.msra.mxu1 %v7397_v31 }
 0xc18   :  { %6912 = vmatprep.subr.bf16.mxu1 %v7398_v51 }
 0xcba   :  { %v4959_v16 = vpop.f32.mrf.mxu1 }
 0xcbb   :  { %v9090_v5 = vadd.f32 %v6417_v56, %v4959_v16 }
 0xcbc   :  { %v7017_v18 = vpop.f32.mrf.mxu1 }
 0xcbd   :  { %v4965_v40 = vmul.f32 0.5, %v9090_v5  ;;  %v4969_v32 = vpack.c.bf16 %v9090_v5, %v9090_v5 }
 0xcbe   :  { %v4962_v19 = vpop.f32.mrf.mxu1 }
 0xcbf   :  { %v4966_v20 = vmul.f32 1.442695, %v4965_v40 }
 0xcc0   :  { %v7018_v41 = vpop.f32.mrf.mxu1 }
 0xcc1   :  { %7430 = vpow2.f32 %v4966_v20  ;;  %v7419_v41 = vld [vmem:[%s9250_s2 + $0x1f0] sm:$0xff]  }
 0xcce   :  { %v7431_v17 = vpop.eup %7430 }
 0xccf   :  { %v4968_v4 = vmul.f32 %v7432_v21, %v7431_v17  ;;  %v7420_v17 = vld [vmem:[%s9250_s2 + $0x1e8] sm:$0xff]   ;;  %v7421_v21 = vld [vmem:[%s9250_s2 + $0x1e0] sm:$0xff]  }
 0xcd1   :  { %v4970_v12 = vpack.c.bf16 %v4968_v4, %v4968_v4 }
 0xcd3   :  { %5136 = vmatprep.mubr.bf16.mxu0 %v4970_v12  ;;  %v6461_v12 = vld [vmem:[%s9246_s6 + $0x12] ss:$0 sm:$0xff] }
 0xcd4   :  { %5137 = vmatmul.mubr.bf16.vlgmr.msra.gmra.mxu0 %v4969_v32 }
 0xcd5   :  { %7040 = vmatpush3.bf16.msra.mxu0 %v7382_v50  ;;  %7055 = vmatprep.mubr.msk.bf16.mxu0 %vm7434_vm0, %v7433_v0 }
 0xcd6   :  { %7041 = vmatprep.subr.bf16.mxu0 %v7433_v0 }
 0xcd9   :  { %7042 = vmatpush3.bf16.msra.mxu0 %v7383_v33 }
 0xcda   :  { %7043 = vmatprep.subr.bf16.mxu0 %v7433_v0 }
 0xcdd   :  { %7044 = vmatpush3.bf16.msra.mxu0 %v7385_v36 }
 0xcde   :  { %7045 = vmatprep.subr.bf16.mxu0 %v7433_v0 }
 0xce1   :  { %7046 = vmatpush3.bf16.msra.mxu0 %v7387_v24 }
 0xce2   :  { %7047 = vmatprep.subr.bf16.mxu0 %v7433_v0 }
 0xce5   :  { %7048 = vmatpush3.bf16.msra.mxu0 %v7389_v25 }
 0xce6   :  { %7049 = vmatprep.subr.bf16.mxu0 %v7433_v0 }
 0xce9   :  { %7050 = vmatpush3.bf16.msra.mxu0 %v7391_v28 }
 0xcea   :  { %7051 = vmatprep.subr.bf16.mxu0 %v7433_v0 }
 0xced   :  { %7052 = vmatpush3.bf16.msra.mxu0 %v7393_v34 }
 0xcee   :  { %7053 = vmatprep.subr.bf16.mxu0 %v7433_v0 }
 0xcf1   :  { %7054 = vmatpush3.bf16.msra.mxu0 %v7395_v38 }
 0xcf2   :  { %7059 = vmatprep.subr.bf16.mxu0 %v7433_v0 }
 0xcf4   :  { %7056 = vmatmul.mubr.bf16.vlgmr.msra.gmra.mxu0 %v7528_v13 }
 0xcf5   :  { %7075 = vmatprep.mubr.msk.bf16.mxu0 %vm7434_vm0, %v7433_v0  ;;  %7060 = vmatpush3.bf16.msra.mxu0 %v7414_v9 }
 0xcf6   :  { %7061 = vmatprep.subr.bf16.mxu0 %v7433_v0 }
 0xcf9   :  { %7062 = vmatpush3.bf16.msra.mxu0 %v7415_v10 }
 0xcfa   :  { %7063 = vmatprep.subr.bf16.mxu0 %v7433_v0 }
 0xcfd   :  { %7064 = vmatpush3.bf16.msra.mxu0 %v7416_v11 }
 0xcfe   :  { %7065 = vmatprep.subr.bf16.mxu0 %v7433_v0 }
 0xd01   :  { %7066 = vmatpush3.bf16.msra.mxu0 %v7417_v55 }
 0xd02   :  { %7067 = vmatprep.subr.bf16.mxu0 %v7433_v0 }
 0xd05   :  { %7068 = vmatpush3.bf16.msra.mxu0 %v7418_v14 }
 0xd06   :  { %7069 = vmatprep.subr.bf16.mxu0 %v7433_v0 }
 0xd09   :  { %7070 = vmatpush3.bf16.msra.mxu0 %v7419_v41 }
 0xd0a   :  { %7071 = vmatprep.subr.bf16.mxu0 %v7433_v0 }
 0xd0d   :  { %7072 = vmatpush3.bf16.msra.mxu0 %v7420_v17 }
 0xd0e   :  { %7073 = vmatprep.subr.bf16.mxu0 %v7433_v0  ;;  %v6486_v0 = vld [vmem:[%s9246_s6 + $0x13] ss:$0 sm:$0xff] }
 0xd11   :  { %7074 = vmatpush3.bf16.msra.mxu0 %v7421_v21 }
 0xd94   :  { %v6888_v1 = vpop.f32.mrf.mxu0 }
 0xd96   :  { %v6889_v42 = vpop.f32.mrf.mxu0 }
 0xd97   :  { %v6890_v13 = vadd.f32 %v6889_v42, %v6888_v1 }
 0xd98   :  { %v6891_v22 = vpop.f32.mrf.mxu0 }
 0xd99   :  { %v5139_v43 = vadd.f32 %v6890_v13, %v6426_v39 }
 0xd9a   :  { %v6892_v44 = vpop.f32.mrf.mxu0 }
 0xd9b   :  { %v5144_v23 = vmax.f32 %v5139_v43, 0.0 }
 0xd9d   :  { %v5145_v45 = vpack.c.bf16 %v5144_v23, %v5144_v23 }
 0xd9f   :  { %7036 = vmatmul.mubr.bf16.vlgmr.msra.gmra.mxu1 %v5145_v45 }
 0xda0   :  { %6913 = vmatpush3.bf16.msra.mxu1 %v7399_v27 }
 0xda1   :  { %6914 = vmatprep.subr.bf16.mxu1 %v7400_v46 }
 0xda4   :  { %6915 = vmatpush3.bf16.msra.mxu1 %v7401_v47 }
 0xda5   :  { %6916 = vmatprep.subr.bf16.mxu1 %v7402_v30 }
 0xda8   :  { %6917 = vmatpush3.bf16.msra.mxu1 %v7403_v48 }
 0xda9   :  { %6918 = vmatprep.subr.bf16.mxu1 %v7404_v52 }
 0xdac   :  { %6919 = vmatpush3.bf16.msra.mxu1 %v7405_v53 }
 0xdad   :  { %6920 = vmatprep.subr.bf16.mxu1 %v7406_v54 }
 0xdb0   :  { %6921 = vmatpush3.bf16.msra.mxu1 %v7407_v57 }
 0xdb1   :  { %6922 = vmatprep.subr.bf16.mxu1 %v7408_v58 }
 0xdb4   :  { %6923 = vmatpush3.bf16.msra.mxu1 %v7409_v59  ;;  %v5359_v62 = vpop.f32.mrf.mxu0 }
 0xdb5   :  { %6924 = vmatprep.subr.bf16.mxu1 %v7410_v60  ;;  %v5360_v63 = vadd.f32 %v6452_v61, %v5359_v62 }
 0xdb6   :  { %v7057_v2 = vpop.f32.mrf.mxu0 }
 0xdb7   :  { %v5366_v3 = vpack.c.bf16 %v5360_v63, %v5360_v63 }
 0xdb8   :  { %v5362_v6 = vpop.f32.mrf.mxu0  ;;  %6925 = vmatpush3.bf16.msra.mxu1 %v7411_v49 }
 0xdb9   :  { %5532 = vmatprep.mubr.bf16.mxu1 %v5366_v3  ;;  %6926 = vmatprep.subr.bf16.mxu1 %v7412_v8 }
 0xdba   :  { %v7058_v7 = vpop.f32.mrf.mxu0 }
 0xdbc   :  { %6927 = vmatpush3.bf16.msra.mxu1 %v7413_v37 }
 0xe5f   :  { %v5249_v26 = vpop.f32.mrf.mxu1 }
 0xe60   :  { %v5250_v56 = vadd.f32 %v6443_v15, %v5249_v26 }
 0xe61   :  { %v7037_v16 = vpop.f32.mrf.mxu1 }
 0xe62   :  { %v5255_v18 = vmax.f32 %v5250_v56, 0.0 }
 0xe63   :  { %v5252_v40 = vpop.f32.mrf.mxu1 }
 0xe64   :  { %v5365_v19 = vpack.c.bf16 %v5255_v18, %v5255_v18 }
 0xe65   :  { %v7038_v20 = vpop.f32.mrf.mxu1 }
 0xe66   :  { %5533 = vmatmul.mubr.bf16.vlgmr.msra.gmra.mxu1 %v5365_v19 }
 0xf26   :  { %v6928_v4 = vpop.f32.mrf.mxu1 }
 0xf28   :  { %v6929_v50 = vpop.f32.mrf.mxu1 }
 0xf29   :  { %v6930_v32 = vadd.f32 %v6929_v50, %v6928_v4 }
 0xf2a   :  { %v6931_v33 = vpop.f32.mrf.mxu1 }
 0xf2b   :  { %v5535_v36 = vadd.f32 %v6930_v32, %v6461_v12 }
 0xf2c   :  { %v6932_v24 = vpop.f32.mrf.mxu1 }
 0xf2d   :  { %v5540_v25 = vmax.f32 %v5535_v36, 0.0 }
 0xf2f   :  { %v5541_v28 = vpack.c.bf16 %v5540_v25, %v5540_v25 }
 0xf31   :  { %7076 = vmatmul.mubr.bf16.vlgmr.msra.gmra.mxu0 %v5541_v28 }
 0xff1   :  { %v5640_v34 = vpop.f32.mrf.mxu0 }
 0xff2   :  { %v5641_v35 = vadd.f32 %v5640_v34, %v9090_v5 }
 0xff3   :  { %v7077_v38 = vpop.f32.mrf.mxu0 }
 0xff4   :  { %v5651_v29 = vadd.f32 %v6486_v0, %v5641_v35 }
 0xff5   :  { %v5643_v31 = vpop.f32.mrf.mxu0 }
 0xff6   :  { %5652 = vst [vmem:[%s9251_s7] sm:$0xff] %v5651_v29 }
 0xff7   :  { %v7078_v51 = vpop.f32.mrf.mxu0 }

</bundles_post_ra>
